<compile_context>
chip_gen: v7x
topology: tpu7x:2x2x1
jax: 0.10.0
libtpu: 0.0.40
codegen_flags: <defaults>
</compile_context>

<pallas_src>
import math
import functools

import jax
import jax.numpy as jnp
from jax import lax
from jax.experimental import pallas as pl
from jax.experimental.pallas import tpu as pltpu


# ---------------------------------------------------------------------------
# VMEM limit per TPU generation (v7x has only 64 MiB physical VMEM)
# ---------------------------------------------------------------------------
def _vmem_limit_bytes():
    cap = 128 * 1024 * 1024
    try:
        info = pltpu.get_tpu_info()
        cap = int(getattr(info, "vmem_capacity_bytes", cap))
    except Exception:
        pass
    # ~38 MiB on a 64 MiB chip (v7x), capped at 64 MiB on 128 MiB chips (v5e/v6e).
    return max(32 * 1024 * 1024, min(cap * 3 // 5, 64 * 1024 * 1024))


# ---------------------------------------------------------------------------
# Kernels
# ---------------------------------------------------------------------------
def _qkv_proj_kernel(x_ref, w_ref, cq_ref, sq_ref, ck_ref, sk_ref,
                     q_ref, k_ref, v_ref, *, n_rep, head_dim, half):
    # x: (1, ts, D) bf16 ; w: (1, D, (n_rep+2)*hd) bf16 (q heads of this kv group | k | v)
    proj = jnp.dot(x_ref[0], w_ref[0], preferred_element_type=jnp.float32)  # (ts, (R+2)*hd) f32

    cq = cq_ref[...]                                   # (ts, hd) f32, 1/sqrt(hd) folded in
    sq = sq_ref[...]
    for r in range(n_rep):                             # static unroll over the q heads of group g
        qh = proj[:, r * head_dim:(r + 1) * head_dim]
        qh = qh * cq + pltpu.roll(qh, shift=half, axis=1) * sq       # RoPE (half-split)
        q_ref[0, 0, r] = qh.astype(q_ref.dtype)

    kh = proj[:, n_rep * head_dim:(n_rep + 1) * head_dim]
    kh = kh * ck_ref[...] + pltpu.roll(kh, shift=half, axis=1) * sk_ref[...]
    k_ref[0, 0] = kh.astype(k_ref.dtype)

    v_ref[0, 0] = proj[:, (n_rep + 1) * head_dim:].astype(v_ref.dtype)


def _flash_kernel(q_ref, k_ref, v_ref, o_ref, m_scr, l_scr, acc_scr,
                  *, tq, tk, n_rep, head_dim):
    qi = pl.program_id(2)
    ki = pl.program_id(3)
    nk = pl.num_programs(3)

    @pl.when(ki == 0)
    def _():
        m_scr[...] = jnp.full_like(m_scr, -1e30)
        l_scr[...] = jnp.zeros_like(l_scr)
        acc_scr[...] = jnp.zeros_like(acc_scr)

    q_start = qi * tq
    kv_start = ki * tk
    m_rows = n_rep * tq

    def update(masked):
        q = q_ref[0, 0].reshape(m_rows, head_dim)       # (n_rep*tq, hd) bf16 (GQA folded into M)
        k = k_ref[0, 0]                                  # (tk, hd) bf16
        s = lax.dot_general(q, k, (((1,), (1,)), ((), ())),
                            preferred_element_type=jnp.float32)       # (n_rep*tq, tk) f32
        if masked:
            row = q_start + (lax.broadcasted_iota(jnp.int32, (m_rows, tk), 0) % tq)
            col = kv_start + lax.broadcasted_iota(jnp.int32, (m_rows, tk), 1)
            s = jnp.where(col <= row, s, -1e30)
        m_prev = m_scr[...]
        m_new = jnp.maximum(m_prev, jnp.max(s, axis=-1, keepdims=True))
        alpha = jnp.exp(m_prev - m_new)
        p = jnp.exp(s - m_new)
        l_scr[...] = alpha * l_scr[...] + jnp.sum(p, axis=-1, keepdims=True)
        acc_scr[...] = alpha * acc_scr[...] + jnp.dot(
            p.astype(v_ref.dtype), v_ref[0, 0], preferred_element_type=jnp.float32)
        m_scr[...] = m_new

    # Fully visible tile (strictly below the diagonal): no per-element mask needed.
    @pl.when(kv_start + tk <= q_start + 1)
    def _():
        update(masked=False)

    # Tile straddling the diagonal: apply the causal mask.
    @pl.when((kv_start + tk > q_start + 1) & (kv_start < q_start + tq))
    def _():
        update(masked=True)

    # Fully-masked tiles (kv_start >= q_start + tq) run no compute; their K/V DMA is also
    # skipped because the k/v index_map clamps to the last needed (already resident) tile.

    @pl.when(ki == nk - 1)
    def _():
        out = acc_scr[...] * pl.reciprocal(l_scr[...], approx=True)   # (n_rep*tq, hd) f32
        # Write directly into the (B, S, Hq*hd) layout: head r of this kv group occupies the
        # r-th 128-lane-aligned column block of the output tile.
        for r in range(n_rep):
            o_ref[0, :, r * head_dim:(r + 1) * head_dim] = (
                out[r * tq:(r + 1) * tq, :].astype(o_ref.dtype))


def _out_proj_kernel(o_ref, wo_ref, y_ref):
    # o: (1, ts, Hq*hd) bf16 ; wo: (Hq*hd, D) bf16 ; y: (1, ts, D) f32
    y_ref[0] = jnp.dot(o_ref[0], wo_ref[...],
                       preferred_element_type=jnp.float32).astype(y_ref.dtype)


# ---------------------------------------------------------------------------
# Wrapper
# ---------------------------------------------------------------------------
def attention_forward(x, wq, wk, wv, wo, *, n_heads, n_kv_heads, head_dim,
                      rope_theta, start_pos=0, tq=256, tk=256, ts_proj=256,
                      ts_out=256, compute_dtype=jnp.bfloat16):
    """x: (B, S, D) f32.  wq/wk/wv/wo in torch layout (out_features, in_features)."""
    B, S, D = x.shape
    assert n_heads % n_kv_heads == 0
    n_rep = n_heads // n_kv_heads
    half = head_dim // 2
    scale = 1.0 / math.sqrt(head_dim)

    tq = min(tq, S)
    tk = min(tk, S)
    ts_proj = min(ts_proj, S)
    ts_out = min(ts_out, S)
    assert S % tq == 0 and S % tk == 0 and S % ts_proj == 0 and S % ts_out == 0
    nq, nk = S // tq, S // tk
    kd_all = n_heads * head_dim                                     # K of the output projection

    # ---- weight layout plumbing (host side) -------------------------------
    # Interleaved -> half-split permutation of the head_dim axis (q/k only; scores are invariant
    # to a consistent permutation of q and k; v / wo stay in the original order).
    perm = jnp.concatenate([jnp.arange(0, head_dim, 2), jnp.arange(1, head_dim, 2)])

    wq_t = wq.T.reshape(D, n_kv_heads, n_rep, head_dim)[..., perm]          # (D, G, R, hd)
    wk_t = wk.T.reshape(D, n_kv_heads, head_dim)[..., perm]                 # (D, G, hd)
    wv_t = wv.T.reshape(D, n_kv_heads, head_dim)                            # (D, G, hd)
    wq_g = wq_t.transpose(1, 0, 2, 3).reshape(n_kv_heads, D, n_rep * head_dim)
    wk_g = wk_t.transpose(1, 0, 2)
    wv_g = wv_t.transpose(1, 0, 2)
    wqkv = jnp.concatenate([wq_g, wk_g, wv_g], axis=-1).astype(compute_dtype)  # (G, D, (R+2)*hd)
    wo_t = wo.T.astype(compute_dtype)                                          # (Hq*hd, D)

    # ---- RoPE tables in half-split form (f32, sign folded into sin) -------
    inv_freq = 1.0 / (rope_theta ** (jnp.arange(0, head_dim, 2, dtype=jnp.float32) / head_dim))
    pos = jnp.arange(start_pos, start_pos + S, dtype=jnp.float32)
    ang = jnp.outer(pos, inv_freq)                                    # (S, hd/2)
    cos_h = jnp.concatenate([jnp.cos(ang), jnp.cos(ang)], axis=-1)    # (S, hd)
    sin_h = jnp.concatenate([-jnp.sin(ang), jnp.sin(ang)], axis=-1)   # (S, hd)
    cos_q = cos_h * scale                                             # fold 1/sqrt(hd) into q
    sin_q = sin_h * scale

    xb = x.astype(compute_dtype)

    cparams = functools.partial(pltpu.CompilerParams,
                                vmem_limit_bytes=_vmem_limit_bytes())

    # ---- 1. Fused QKV projection + RoPE ------------------------------------
    q_heads, k_heads, v_heads = pl.pallas_call(
        functools.partial(_qkv_proj_kernel, n_rep=n_rep, head_dim=head_dim, half=half),
        out_shape=(
            jax.ShapeDtypeStruct((B, n_kv_heads, n_rep, S, head_dim), compute_dtype),
            jax.ShapeDtypeStruct((B, n_kv_heads, S, head_dim), compute_dtype),
            jax.ShapeDtypeStruct((B, n_kv_heads, S, head_dim), compute_dtype),
        ),
        grid=(B, S // ts_proj, n_kv_heads),
        in_specs=[
            pl.BlockSpec((1, ts_proj, D), lambda b, si, g: (b, si, 0)),            # x (resident over g)
            pl.BlockSpec((1, D, (n_rep + 2) * head_dim), lambda b, si, g: (g, 0, 0)),
            pl.BlockSpec((ts_proj, head_dim), lambda b, si, g: (si, 0)),           # cos_q
            pl.BlockSpec((ts_proj, head_dim), lambda b, si, g: (si, 0)),           # sin_q
            pl.BlockSpec((ts_proj, head_dim), lambda b, si, g: (si, 0)),           # cos_k
            pl.BlockSpec((ts_proj, head_dim), lambda b, si, g: (si, 0)),           # sin_k
        ],
        out_specs=(
            pl.BlockSpec((1, 1, n_rep, ts_proj, head_dim), lambda b, si, g: (b, g, 0, si, 0)),
            pl.BlockSpec((1, 1, ts_proj, head_dim), lambda b, si, g: (b, g, si, 0)),
            pl.BlockSpec((1, 1, ts_proj, head_dim), lambda b, si, g: (b, g, si, 0)),
        ),
        compiler_params=cparams(dimension_semantics=("parallel", "parallel", "parallel")),
        cost_estimate=pl.CostEstimate(
            flops=int(2 * B * S * D * (n_heads + 2 * n_kv_heads) * head_dim),
            transcendentals=0,
            bytes_accessed=int(2 * (B * S * D
                                    + n_kv_heads * D * (n_rep + 2) * head_dim
                                    + B * S * (n_heads + 2 * n_kv_heads) * head_dim))),
    )(xb, wqkv, cos_q, sin_q, cos_h, sin_h)

    # ---- 2. Flash attention (online softmax, causal, GQA folded into M) ----
    def kv_index_map(b, g, qi, ki):
        # Clamp to the last causally-needed kv tile so fully-masked tiles reuse the resident
        # block (Pallas skips the DMA when the block index is unchanged).
        kmax = (qi * tq + tq - 1) // tk
        return (b, g, jnp.minimum(ki, kmax), 0)

    o_flat = pl.pallas_call(
        functools.partial(_flash_kernel, tq=tq, tk=tk, n_rep=n_rep, head_dim=head_dim),
        out_shape=jax.ShapeDtypeStruct((B, S, kd_all), compute_dtype),
        grid=(B, n_kv_heads, nq, nk),
        in_specs=[
            pl.BlockSpec((1, 1, n_rep, tq, head_dim), lambda b, g, qi, ki: (b, g, 0, qi, 0)),
            pl.BlockSpec((1, 1, tk, head_dim), kv_index_map),
            pl.BlockSpec((1, 1, tk, head_dim), kv_index_map),
        ],
        out_specs=pl.BlockSpec((1, tq, n_rep * head_dim), lambda b, g, qi, ki: (b, qi, g)),
        scratch_shapes=[
            pltpu.VMEM((n_rep * tq, 1), jnp.float32),           # running max
            pltpu.VMEM((n_rep * tq, 1), jnp.float32),           # running denom
            pltpu.VMEM((n_rep * tq, head_dim), jnp.float32),    # output accumulator
        ],
        compiler_params=cparams(
            dimension_semantics=("parallel", "parallel", "parallel", "arbitrary")),
        cost_estimate=pl.CostEstimate(
            flops=int(2 * B * n_heads * S * S * head_dim),            # causal half of QK^T + PV
            transcendentals=int(B * n_heads * S * S // 2),
            bytes_accessed=int(2 * (2 * B * n_heads * S * head_dim
                                    + B * n_kv_heads * S * head_dim * (nq + 1)))),
    )(q_heads, k_heads, v_heads)

    # ---- 3. Output projection (plain tiled matmul, K = Hq*hd per step) -----
    out = pl.pallas_call(
        _out_proj_kernel,
        out_shape=jax.ShapeDtypeStruct((B, S, D), jnp.float32),
        grid=(B, S // ts_out),
        in_specs=[
            pl.BlockSpec((1, ts_out, kd_all), lambda b, si: (b, si, 0)),
            pl.BlockSpec((kd_all, D), lambda b, si: (0, 0)),
        ],
        out_specs=pl.BlockSpec((1, ts_out, D), lambda b, si: (b, si, 0)),
        compiler_params=cparams(dimension_semantics=("parallel", "parallel")),
        cost_estimate=pl.CostEstimate(
            flops=int(2 * B * S * kd_all * D),
            transcendentals=0,
            bytes_accessed=int(2 * B * S * kd_all + 2 * kd_all * D + 4 * B * S * D)),
    )(o_flat, wo_t)

    return out


# ---------------------------------------------------------------------------
# Pure-JAX reference (original interleaved-RoPE semantics, f32)
# ---------------------------------------------------------------------------
def attention_reference(x, wq, wk, wv, wo, *, n_heads, n_kv_heads, head_dim,
                        rope_theta, start_pos=0):
    B, S, D = x.shape
    n_rep = n_heads // n_kv_heads
    xq = (x @ wq.T).reshape(B, S, n_heads, head_dim)
    xk = (x @ wk.T).reshape(B, S, n_kv_heads, head_dim)
    xv = (x @ wv.T).reshape(B, S, n_kv_heads, head_dim)

    inv_freq = 1.0 / (rope_theta ** (jnp.arange(0, head_dim, 2, dtype=jnp.float32) / head_dim))
    pos = jnp.arange(start_pos, start_pos + S, dtype=jnp.float32)
    ang = jnp.outer(pos, inv_freq)
    cos = jnp.cos(ang)[None, :, None, :]
    sin = jnp.sin(ang)[None, :, None, :]

    def rope(t):
        tr, ti = t[..., 0::2], t[..., 1::2]
        out_r = tr * cos - ti * sin
        out_i = ti * cos + tr * sin
        return jnp.stack([out_r, out_i], axis=-1).reshape(t.shape)

    xq, xk = rope(xq), rope(xk)
    k = jnp.repeat(xk, n_rep, axis=2)
    v = jnp.repeat(xv, n_rep, axis=2)
    q, k, v = (t.transpose(0, 2, 1, 3) for t in (xq, k, v))
    s = jnp.einsum("bhqd,bhkd->bhqk", q, k) / math.sqrt(head_dim)
    mask = jnp.tril(jnp.ones((S, S), bool))
    s = jnp.where(mask, s, -jnp.inf)
    p = jax.nn.softmax(s, axis=-1)
    o = jnp.einsum("bhqk,bhkd->bhqd", p, v).transpose(0, 2, 1, 3).reshape(B, S, -1)
    return o @ wo.T


if __name__ == "__main__":
    # Small but TPU-tile-aligned config (head_dim multiple of 128, S multiple of the tiles)
    B, S = 2, 256
    n_heads, n_kv_heads, head_dim = 4, 2, 128
    dim = n_heads * head_dim                                  # 512
    rope_theta = 500000.0

    key = jax.random.PRNGKey(0)
    kx, kq, kk, kv, ko = jax.random.split(key, 5)

    x = jax.random.normal(kx, (B, S, dim), dtype=jnp.float32)

    # kaiming_uniform_(a=sqrt(5)) on (out, in) weight => U(-1/sqrt(fan_in), 1/sqrt(fan_in))
    def linear_w(k, out_f, in_f):
        bound = 1.0 / math.sqrt(in_f)
        return jax.random.uniform(k, (out_f, in_f), jnp.float32, -bound, bound)

    wq = linear_w(kq, n_heads * head_dim, dim)
    wk = linear_w(kk, n_kv_heads * head_dim, dim)
    wv = linear_w(kv, n_kv_heads * head_dim, dim)
    wo = linear_w(ko, dim, n_heads * head_dim)

    out = attention_forward(x, wq, wk, wv, wo,
                            n_heads=n_heads, n_kv_heads=n_kv_heads,
                            head_dim=head_dim, rope_theta=rope_theta)
    out = jax.block_until_ready(out)

    ref = attention_reference(x, wq, wk, wv, wo,
                              n_heads=n_heads, n_kv_heads=n_kv_heads,
                              head_dim=head_dim, rope_theta=rope_theta)

    assert out.shape == (B, S, dim)
    # bf16 matmul inputs + approx reciprocal vs f32 reference -> relaxed tolerance
    assert jnp.allclose(out, ref, atol=5e-2, rtol=5e-2), "mismatch vs reference"

    print("KERNEL_OK")
</pallas_src>

<mosaic_0001>
module attributes {stable_mosaic.version = 11 : i64} {
  func.func @_qkv_proj_kernel(%arg0: i32, %arg1: i32, %arg2: i32, %arg3: memref<1x256x512xbf16, #tpu.memory_space<vmem>>, %arg4: memref<1x512x512xbf16, #tpu.memory_space<vmem>>, %arg5: memref<256x128xf32, #tpu.memory_space<vmem>>, %arg6: memref<256x128xf32, #tpu.memory_space<vmem>>, %arg7: memref<256x128xf32, #tpu.memory_space<vmem>>, %arg8: memref<256x128xf32, #tpu.memory_space<vmem>>, %arg9: memref<1x1x2x256x128xbf16, #tpu.memory_space<vmem>>, %arg10: memref<1x1x256x128xbf16, #tpu.memory_space<vmem>>, %arg11: memref<1x1x256x128xbf16, #tpu.memory_space<vmem>>) attributes {dimension_semantics = [#tpu.dimension_semantics<parallel>, #tpu.dimension_semantics<parallel>, #tpu.dimension_semantics<parallel>], iteration_bounds = array<i64: 2, 1, 2>, scalar_prefetch = 0 : i64, scratch_operands = 0 : i64, tpu.core_type = #tpu.core_type<tc>, window_params = [{transform_indices = @transform_0, window_bounds = array<i64: 1, 256, 512>}, {transform_indices = @transform_1, window_bounds = array<i64: 1, 512, 512>}, {transform_indices = @transform_2, window_bounds = array<i64: 256, 128>}, {transform_indices = @transform_3, window_bounds = array<i64: 256, 128>}, {transform_indices = @transform_4, window_bounds = array<i64: 256, 128>}, {transform_indices = @transform_5, window_bounds = array<i64: 256, 128>}, {transform_indices = @transform_6, window_bounds = array<i64: 1, 1, 2, 256, 128>}, {transform_indices = @transform_7, window_bounds = array<i64: 1, 1, 256, 128>}, {transform_indices = @transform_8, window_bounds = array<i64: 1, 1, 256, 128>}]} {
    %c0 = arith.constant 0 : index
    %c0_0 = arith.constant 0 : index
    %c0_1 = arith.constant 0 : index
    %0 = vector.load %arg3[%c0, %c0_0, %c0_1] : memref<1x256x512xbf16, #tpu.memory_space<vmem>>, vector<1x256x512xbf16>
    %1 = vector.shape_cast %0 : vector<1x256x512xbf16> to vector<256x512xbf16>
    %c0_2 = arith.constant 0 : index
    %c0_3 = arith.constant 0 : index
    %c0_4 = arith.constant 0 : index
    %2 = vector.load %arg4[%c0_2, %c0_3, %c0_4] : memref<1x512x512xbf16, #tpu.memory_space<vmem>>, vector<1x512x512xbf16>
    %3 = vector.shape_cast %2 : vector<1x512x512xbf16> to vector<512x512xbf16>
    %cst = arith.constant dense<0.000000e+00> : vector<256x512xf32>
    %4 = tpu.matmul %1, %3, %cst {dimension_numbers = #tpu.dot_dimension_numbers<[1], [0], [0], [1], [0, 0, 1, 1], [], []>} : vector<256x512xbf16>, vector<512x512xbf16>, vector<256x512xf32> -> vector<256x512xf32>
    %c0_5 = arith.constant 0 : index
    %c0_6 = arith.constant 0 : index
    %5 = vector.load %arg5[%c0_5, %c0_6] : memref<256x128xf32, #tpu.memory_space<vmem>>, vector<256x128xf32>
    %c0_7 = arith.constant 0 : index
    %c0_8 = arith.constant 0 : index
    %6 = vector.load %arg6[%c0_7, %c0_8] : memref<256x128xf32, #tpu.memory_space<vmem>>, vector<256x128xf32>
    %7 = vector.extract_strided_slice %4 {offsets = [0, 0], sizes = [256, 128], strides = [1, 1]} : vector<256x512xf32> to vector<256x128xf32>
    %8 = arith.mulf %7, %5 : vector<256x128xf32>
    %c64_i32 = arith.constant 64 : i32
    %9 = tpu.dynamic_rotate %7 by %c64_i32 dim 1 : vector<256x128xf32>, i32 -> vector<256x128xf32>
    %10 = arith.mulf %9, %6 : vector<256x128xf32>
    %11 = arith.addf %8, %10 : vector<256x128xf32>
    %12 = arith.truncf %11 : vector<256x128xf32> to vector<256x128xbf16>
    %c0_9 = arith.constant 0 : index
    %c0_10 = arith.constant 0 : index
    %c0_11 = arith.constant 0 : index
    %c0_12 = arith.constant 0 : index
    %c0_13 = arith.constant 0 : index
    %13 = vector.load %arg9[%c0_9, %c0_10, %c0_11, %c0_12, %c0_13] : memref<1x1x2x256x128xbf16, #tpu.memory_space<vmem>>, vector<1x1x1x256x128xbf16>
    %14 = vector.shape_cast %13 : vector<1x1x1x256x128xbf16> to vector<256x128xbf16>
    %15 = vector.shape_cast %12 : vector<256x128xbf16> to vector<1x1x1x256x128xbf16>
    tpu.vector_store %arg9[%c0_9, %c0_10, %c0_11, %c0_12, %c0_13], %15 {strides = array<i32>} : memref<1x1x2x256x128xbf16, #tpu.memory_space<vmem>>, vector<1x1x1x256x128xbf16>,
    %16 = vector.extract_strided_slice %4 {offsets = [0, 128], sizes = [256, 128], strides = [1, 1]} : vector<256x512xf32> to vector<256x128xf32>
    %17 = arith.mulf %16, %5 : vector<256x128xf32>
    %c64_i32_14 = arith.constant 64 : i32
    %18 = tpu.dynamic_rotate %16 by %c64_i32_14 dim 1 : vector<256x128xf32>, i32 -> vector<256x128xf32>
    %19 = arith.mulf %18, %6 : vector<256x128xf32>
    %20 = arith.addf %17, %19 : vector<256x128xf32>
    %21 = arith.truncf %20 : vector<256x128xf32> to vector<256x128xbf16>
    %c0_15 = arith.constant 0 : index
    %c0_16 = arith.constant 0 : index
    %c1 = arith.constant 1 : index
    %c0_17 = arith.constant 0 : index
    %c0_18 = arith.constant 0 : index
    %22 = vector.load %arg9[%c0_15, %c0_16, %c1, %c0_17, %c0_18] : memref<1x1x2x256x128xbf16, #tpu.memory_space<vmem>>, vector<1x1x1x256x128xbf16>
    %23 = vector.shape_cast %22 : vector<1x1x1x256x128xbf16> to vector<256x128xbf16>
    %24 = vector.shape_cast %21 : vector<256x128xbf16> to vector<1x1x1x256x128xbf16>
    tpu.vector_store %arg9[%c0_15, %c0_16, %c1, %c0_17, %c0_18], %24 {strides = array<i32>} : memref<1x1x2x256x128xbf16, #tpu.memory_space<vmem>>, vector<1x1x1x256x128xbf16>,
    %25 = vector.extract_strided_slice %4 {offsets = [0, 256], sizes = [256, 128], strides = [1, 1]} : vector<256x512xf32> to vector<256x128xf32>
    %c0_19 = arith.constant 0 : index
    %c0_20 = arith.constant 0 : index
    %26 = vector.load %arg7[%c0_19, %c0_20] : memref<256x128xf32, #tpu.memory_space<vmem>>, vector<256x128xf32>
    %27 = arith.mulf %25, %26 : vector<256x128xf32>
    %c64_i32_21 = arith.constant 64 : i32
    %28 = tpu.dynamic_rotate %25 by %c64_i32_21 dim 1 : vector<256x128xf32>, i32 -> vector<256x128xf32>
    %c0_22 = arith.constant 0 : index
    %c0_23 = arith.constant 0 : index
    %29 = vector.load %arg8[%c0_22, %c0_23] : memref<256x128xf32, #tpu.memory_space<vmem>>, vector<256x128xf32>
    %30 = arith.mulf %28, %29 : vector<256x128xf32>
    %31 = arith.addf %27, %30 : vector<256x128xf32>
    %32 = arith.truncf %31 : vector<256x128xf32> to vector<256x128xbf16>
    %c0_24 = arith.constant 0 : index
    %c0_25 = arith.constant 0 : index
    %c0_26 = arith.constant 0 : index
    %c0_27 = arith.constant 0 : index
    %33 = vector.load %arg10[%c0_24, %c0_25, %c0_26, %c0_27] : memref<1x1x256x128xbf16, #tpu.memory_space<vmem>>, vector<1x1x256x128xbf16>
    %34 = vector.shape_cast %33 : vector<1x1x256x128xbf16> to vector<256x128xbf16>
    %35 = vector.shape_cast %32 : vector<256x128xbf16> to vector<1x1x256x128xbf16>
    tpu.vector_store %arg10[%c0_24, %c0_25, %c0_26, %c0_27], %35 {strides = array<i32>} : memref<1x1x256x128xbf16, #tpu.memory_space<vmem>>, vector<1x1x256x128xbf16>,
    %36 = vector.extract_strided_slice %4 {offsets = [0, 384], sizes = [256, 128], strides = [1, 1]} : vector<256x512xf32> to vector<256x128xf32>
    %37 = arith.truncf %36 : vector<256x128xf32> to vector<256x128xbf16>
    %c0_28 = arith.constant 0 : index
    %c0_29 = arith.constant 0 : index
    %c0_30 = arith.constant 0 : index
    %c0_31 = arith.constant 0 : index
    %38 = vector.load %arg11[%c0_28, %c0_29, %c0_30, %c0_31] : memref<1x1x256x128xbf16, #tpu.memory_space<vmem>>, vector<1x1x256x128xbf16>
    %39 = vector.shape_cast %38 : vector<1x1x256x128xbf16> to vector<256x128xbf16>
    %40 = vector.shape_cast %37 : vector<256x128xbf16> to vector<1x1x256x128xbf16>
    tpu.vector_store %arg11[%c0_28, %c0_29, %c0_30, %c0_31], %40 {strides = array<i32>} : memref<1x1x256x128xbf16, #tpu.memory_space<vmem>>, vector<1x1x256x128xbf16>,
    return
  }
  func.func @transform_0(%arg0: i32, %arg1: i32, %arg2: i32) -> (i32, i32, i32) {
    %c0_i32 = arith.constant 0 : i32
    %c0_i32_0 = arith.constant 0 : i32
    return %arg0, %arg1, %c0_i32 : i32, i32, i32
  }
  func.func @transform_1(%arg0: i32, %arg1: i32, %arg2: i32) -> (i32, i32, i32) {
    %c0_i32 = arith.constant 0 : i32
    %c0_i32_0 = arith.constant 0 : i32
    %c0_i32_1 = arith.constant 0 : i32
    return %arg2, %c0_i32, %c0_i32_0 : i32, i32, i32
  }
  func.func @transform_2(%arg0: i32, %arg1: i32, %arg2: i32) -> (i32, i32) {
    %c0_i32 = arith.constant 0 : i32
    %c0_i32_0 = arith.constant 0 : i32
    return %arg1, %c0_i32 : i32, i32
  }
  func.func @transform_3(%arg0: i32, %arg1: i32, %arg2: i32) -> (i32, i32) {
    %c0_i32 = arith.constant 0 : i32
    %c0_i32_0 = arith.constant 0 : i32
    return %arg1, %c0_i32 : i32, i32
  }
  func.func @transform_4(%arg0: i32, %arg1: i32, %arg2: i32) -> (i32, i32) {
    %c0_i32 = arith.constant 0 : i32
    %c0_i32_0 = arith.constant 0 : i32
    return %arg1, %c0_i32 : i32, i32
  }
  func.func @transform_5(%arg0: i32, %arg1: i32, %arg2: i32) -> (i32, i32) {
    %c0_i32 = arith.constant 0 : i32
    %c0_i32_0 = arith.constant 0 : i32
    return %arg1, %c0_i32 : i32, i32
  }
  func.func @transform_6(%arg0: i32, %arg1: i32, %arg2: i32) -> (i32, i32, i32, i32, i32) {
    %c0_i32 = arith.constant 0 : i32
    %c0_i32_0 = arith.constant 0 : i32
    %c0_i32_1 = arith.constant 0 : i32
    return %arg0, %arg2, %c0_i32, %arg1, %c0_i32_0 : i32, i32, i32, i32, i32
  }
  func.func @transform_7(%arg0: i32, %arg1: i32, %arg2: i32) -> (i32, i32, i32, i32) {
    %c0_i32 = arith.constant 0 : i32
    %c0_i32_0 = arith.constant 0 : i32
    return %arg0, %arg2, %arg1, %c0_i32 : i32, i32, i32, i32
  }
  func.func @transform_8(%arg0: i32, %arg1: i32, %arg2: i32) -> (i32, i32, i32, i32) {
    %c0_i32 = arith.constant 0 : i32
    %c0_i32_0 = arith.constant 0 : i32
    return %arg0, %arg2, %arg1, %c0_i32 : i32, i32, i32, i32
  }
}

</mosaic_0001>

<bundles_post_ra>
// kernel: tpu_custom_call.1
= control target key start
LH: loop header
LB: loop body
LE: loop exit
PB: predicated region body
PF: predicated region fallthrough
CT: control target
= control target key end

     0   :  { %s7248_s0 = inlined_call_operand.hbm [shape: bf16[2,256,512], index: 0, kind: input, shape index: {}]   ;;  %s7249_s1 = inlined_call_operand.hbm [shape: bf16[2,512,512], index: 1, kind: input, shape index: {}]   ;;  %s7250_s2 = inlined_call_operand.hbm [shape: f32[256,128], index: 2, kind: input, shape index: {}]   ;;  %s7251_s3 = inlined_call_operand.hbm [shape: f32[256,128], index: 3, kind: input, shape index: {}]   ;;  %s7252_s4 = inlined_call_operand.hbm [shape: f32[256,128], index: 4, kind: input, shape index: {}]   ;;  %s7253_s5 = inlined_call_operand.hbm [shape: f32[256,128], index: 5, kind: input, shape index: {}]   ;;  %s7254_s6 = inlined_call_operand.hbm [shape: bf16[2,2,2,256,128], index: 6, kind: output, shape index: {0}]   ;;  %s7255_s7 = inlined_call_operand.hbm [shape: bf16[2,2,256,128], index: 7, kind: output, shape index: {1}]   ;;  %s7256_s8 = inlined_call_operand.hbm [shape: bf16[2,2,256,128], index: 8, kind: output, shape index: {2}]  }
   0x1   :  { %7340 = sst [smem:[#allocation90_spill]] %s7248_s0 }
   0x2   :  { %7341 = sst [smem:[#allocation91_spill]] %s7249_s1 }
   0x3   :  { %7342 = sst [smem:[#allocation92_spill]] %s7250_s2 }
   0x4   :  { %7343 = sst [smem:[#allocation93_spill]] %s7251_s3 }
   0x5   :  { %7344 = sst [smem:[#allocation94_spill]] %s7252_s4 }
   0x6   :  { %7345 = sst [smem:[#allocation95_spill]] %s7253_s5 }
   0x7   :  { %7346 = sst [smem:[#allocation96_spill]] %s7254_s6 }
   0x8   :  { %7347 = sst [smem:[#allocation97_spill]] %s7255_s7 }
   0x9   :  { %7348 = sst [smem:[#allocation98_spill]] %s7256_s8 }
   0xa   :  { %14 = vsyncpa [#allocation3], 0 }
   0xb   :  { %16 = vsyncpa [#allocation3 + $0x1], 0 }
   0xc   :  { %17 = vsyncpa [#allocation6], 0 }
   0xd   :  { %19 = vsyncpa [#allocation6 + $0x1], 0 }
   0xe   :  { %20 = vsyncpa [#allocation9], 0 }
   0xf   :  { %21 = vsyncpa [#allocation12], 0 }
  0x10   :  { %22 = vsyncpa [#allocation4], 0 }
  0x11   :  { %24 = vsyncpa [#allocation4 + $0x1], 0 }
  0x12   :  { %25 = vsyncpa [#allocation15], 0 }
  0x13   :  { %27 = vsyncpa [#allocation15 + $0x1], 0  ;;  %s5953_s27 = smov 0   ;;  %s5955_s28 = smov 0  }
  0x14   :  { %s5957_s29 = smov 0   ;;  %s5959_s30 = smov 0  }
  0x15   :  { %s5961_s9 = smov 0   ;;  %s5963_s10 = smov 0  }
  0x16   :  { %s5965_s11 = smov 0   ;;  %s5967_s12 = smov 0  }
  0x17   :  { %s5969_s13 = smov 0   ;;  %s5971_s14 = smov 0  }
  0x18   :  { %s5973_s15 = smov 0   ;;  %s5975_s16 = smov 0  }
  0x19   :  { %s5977_s17 = smov 0   ;;  %s5979_s18 = smov 0  }
  0x1a LB: > { %7349 = sst [smem:[#allocation24_spill]] %s5839_s27  ;;  %s6022_s19 = sadd.s32 4294967295, %s5891_s18   ;;  %s5891_s18 = sphi %s5979_s18, %s33_s18   ;;  %s5887_s17 = sphi %s5977_s17, %s7521_s17   ;;  %s5883_s16 = sphi %s5975_s16, %s7531_s16   ;;  %s5879_s15 = sphi %s5973_s15, %s7519_s15   ;;  %s5875_s14 = sphi %s5971_s14, %s7530_s14   ;;  %s5871_s13 = sphi %s5969_s13, %s7529_s13   ;;  %s5867_s12 = sphi %s5967_s12, %s7528_s12   ;;  %s5863_s11 = sphi %s5965_s11, %s7527_s11   ;;  %s5859_s10 = sphi %s5963_s10, %s7526_s10   ;;  %s5855_s9 = sphi %s5961_s9, %s7525_s9   ;;  %s5851_s30 = sphi %s5959_s30, %s7524_s30   ;;  %s5847_s29 = sphi %s5957_s29, %s7523_s29   ;;  %s5843_s28 = sphi %s5955_s28, %s7522_s28   ;;  %s5839_s27 = sphi %s5953_s27, %s7516_s27  }
  0x1b   : > { %7350 = sst [smem:[#allocation25_spill]] %s5843_s28  ;;  %s7257_s20 = sadd.s32 4294967294, %s5891_s18  }
  0x1c   : > { %7351 = sst [smem:[#allocation26_spill]] %s5875_s14  ;;  %p7266_p0 = scmp.eq.s32.totalorder %s6022_s19, 0 }
  0x1d   : > { %7352 = sst [smem:[#allocation27_spill]] %s5879_s15  ;;  %p100_p1 = scmp.ne.s32.totalorder %s5855_s9, %s5851_s30 }
  0x1e   : > { %7353 = sst [smem:[#allocation28_spill]] %s5887_s17  ;;  %p231_p2 = scmp.ne.s32.totalorder %s5847_s29, %s5843_s28 }
  0x1f   : > { %p232_p3 = scmp.eq.s32.totalorder %s6022_s19, 3  ;;  %p6032_p4 = por %p100_p1, %p7266_p0 }
  0x20   : > { %p237_p5 = scmp.ne.s32.totalorder %s5843_s28, %s5839_s27  ;;  %p238_p7 = scmp.eq.s32.totalorder %s7257_s20, 3 }
  0x21   : > { %s7354_s21 = scalar_select %p6032_p4, 1, 0 }
  0x22   : > { %p6038_p6 = por %p232_p3, %p231_p2  ;;  %p3994_p8 = scmp.ge.s32.totalorder %s5891_s18, 1 }
  0x23   : > { %7355 = sst [smem:[#allocation29_spill]] %s7354_s21  ;;  %p305_p9 = scmp.lt.s32.totalorder %s5891_s18, 5 }
  0x24   : > { %s7356_s22 = scalar_select %p6038_p6, 1, 0 }
  0x25   : > { %p6046_p10 = por %p238_p7, %p237_p5  ;;  %p6050_p11 = pnand %p3994_p8, %p305_p9 }
  0x26   : > { %7357 = sst [smem:[#allocation30_spill]] %s7356_s22  ;;  %s5893_s25 = smov [#allocation7]  }
  0x27   : > { %s7358_s23 = scalar_select %p6046_p10, 1, 0 }
  0x28   : > { %s7360_s24 = scalar_select %p6050_p11, 1, 0 }
  0x29   : > { %7359 = sst [smem:[#allocation31_spill]] %s7358_s23  ;;  %s320_s26 = sshll.u32 %s5893_s25, 4  ;;  %s321_s26 = int_to_ptr.vmem [resolvable:$true] %s320_s26 }
  0x2a   : > { %7361 = sst [smem:[#allocation32_spill]] %s7360_s24  ;;  %p5047_p12 = pneg %p6050_p11 }
  0x2b   : > { %s5894_s20 = smov [#allocation8]   ;;  %s7363_s2 = sld [smem:[#allocation92_spill]] }
  0x2c   : > { %p6058_p13 = pnand %p5047_p12, %p7266_p0  ;;  %s336_s27 = sshll.u32 %s5894_s20, 4  ;;  %s6062_s27 = int_to_ptr.vmem [resolvable:$true] %s336_s27 }
  0x2e   : > { %p6072_p2 = pneg %p6058_p13 }
  0x31   : > { %s5497_s7 = scalar_lea.hbm %s7363_s2, 4096 }
  0x32   : > { %p5498_p1 = scmp.ne.s32.totalorder %s7363_s2, %s5497_s7  ;;  %p5504_p7 = scmp.lt.u32.totalorder %s5497_s7, %s7363_s2 }
  0x34   : > { %p5500_p3 = pnand %p6072_p2, %p5498_p1 }
  0x36   : > { %p5501_p5 = pneg %p5500_p3 }
  0x38   : > { %p5506_p8 = pnand %p5504_p7, %p5501_p5 }
  0x3a   : > { %5509 = shalt.err (!%p5506_p8)
}
  0x3b   : > { %s5510_s8 = scalar_lea.vmem %s321_s26, 4096  ;;  %p5518_p10 = scmp.lt.s32.totalorder %s321_s26, %s321_s26 }
  0x3c   : > { %p5511_p9 = scmp.ne.s32.totalorder %s321_s26, %s5510_s8  ;;  %p5519_p6 = scmp.lt.s32.totalorder %s5510_s8, %s5510_s8 }
  0x3e   : > { %p5513_p12 = pnand %p5511_p9, %p6072_p2  ;;  %p5520_p4 = por %p5519_p6, %p5518_p10 }
  0x40   : > { %p5514_p0 = pneg %p5513_p12 }
  0x42   : > { %p5521_p11 = pnand %p5520_p4, %p5514_p0 }
  0x44   : > { %5524 = shalt.err (!%p5521_p11)
}
  0x45   : > { %s5895_s6 = smov 128   ;;  %s5896_s22 = smov 8  }
  0x46   : > { %5050 = dma.hbm_to_vmem [thread:$0]  (!%p6058_p13), %s7363_s2, 4096, %s321_s26, [#allocation6], %s5895_s6, %s5895_s6, %s5896_s22  }
  0x47   : > { %s7365_s3 = sld [smem:[#allocation93_spill]] }
  0x4d   : > { %s5525_s14 = scalar_lea.hbm %s7365_s3, 4096 }
  0x4e   : > { %p5526_p0 = scmp.ne.s32.totalorder %s7365_s3, %s5525_s14  ;;  %p5532_p10 = scmp.lt.u32.totalorder %s5525_s14, %s7365_s3 }
  0x50   : > { %p5528_p4 = pnand %p5526_p0, %p6072_p2 }
  0x52   : > { %p5529_p6 = pneg %p5528_p4 }
  0x54   : > { %p5534_p11 = pnand %p5532_p10, %p5529_p6 }
  0x56   : > { %5537 = shalt.err (!%p5534_p11)
}
  0x57   : > { %s5538_s26 = scalar_lea.vmem %s6062_s27, 4096  ;;  %p5546_p7 = scmp.lt.s32.totalorder %s6062_s27, %s6062_s27 }
  0x58   : > { %p5539_p1 = scmp.ne.s32.totalorder %s6062_s27, %s5538_s26  ;;  %p5547_p8 = scmp.lt.s32.totalorder %s5538_s26, %s5538_s26 }
  0x5a   : > { %p5541_p3 = pnand %p5539_p1, %p6072_p2  ;;  %p5548_p9 = por %p5547_p8, %p5546_p7 }
  0x5c   : > { %p5542_p5 = pneg %p5541_p3 }
  0x5e   : > { %p5549_p12 = pnand %p5548_p9, %p5542_p5 }
  0x60   : > { %5552 = shalt.err (!%p5549_p12)
}
  0x61   : > { %5053 = dma.hbm_to_vmem [thread:$0]  (!%p6058_p13), %s7365_s3, 4096, %s6062_s27, [#allocation9], %s5895_s6, %s5895_s6, %s5896_s22  }
  0x62   : > { %s5897_s21 = smov [#allocation10]   ;;  %s5898_s7 = smov [#allocation11]  }
  0x63   : > { %s352_s24 = sshll.u32 %s5897_s21, 4  ;;  %s368_s15 = sshll.u32 %s5898_s7, 4  ;;  %s353_s24 = int_to_ptr.vmem [resolvable:$true] %s352_s24  ;;  %s369_s15 = int_to_ptr.vmem [resolvable:$true] %s368_s15 }
  0x64   : > { %s7366_s4 = sld [smem:[#allocation94_spill]] }
  0x6a   : > { %s5553_s8 = scalar_lea.hbm %s7366_s4, 4096 }
  0x6b   : > { %p5554_p0 = scmp.ne.s32.totalorder %s7366_s4, %s5553_s8  ;;  %p5560_p10 = scmp.lt.u32.totalorder %s5553_s8, %s7366_s4 }
  0x6d   : > { %p5556_p4 = pnand %p5554_p0, %p6072_p2 }
  0x6f   : > { %p5557_p6 = pneg %p5556_p4 }
  0x71   : > { %p5562_p11 = pnand %p5560_p10, %p5557_p6 }
  0x73   : > { %5565 = shalt.err (!%p5562_p11)
}
  0x74   : > { %s5566_s27 = scalar_lea.vmem %s353_s24, 4096  ;;  %p5574_p7 = scmp.lt.s32.totalorder %s353_s24, %s353_s24 }
  0x75   : > { %p5567_p1 = scmp.ne.s32.totalorder %s353_s24, %s5566_s27  ;;  %p5575_p8 = scmp.lt.s32.totalorder %s5566_s27, %s5566_s27 }
  0x77   : > { %p5569_p3 = pnand %p5567_p1, %p6072_p2  ;;  %p5576_p9 = por %p5575_p8, %p5574_p7 }
  0x79   : > { %p5570_p5 = pneg %p5569_p3 }
  0x7b   : > { %p5577_p12 = pnand %p5576_p9, %p5570_p5 }
  0x7d   : > { %5580 = shalt.err (!%p5577_p12)
}
  0x7e   : > { %5056 = dma.hbm_to_vmem [thread:$0]  (!%p6058_p13), %s7366_s4, 4096, %s353_s24, [#allocation9], %s5895_s6, %s5895_s6, %s5896_s22  }
  0x7f   : > { %s7367_s5 = sld [smem:[#allocation95_spill]] }
  0x85   : > { %s5581_s7 = scalar_lea.hbm %s7367_s5, 4096 }
  0x86   : > { %p5582_p0 = scmp.ne.s32.totalorder %s7367_s5, %s5581_s7  ;;  %p5588_p10 = scmp.lt.u32.totalorder %s5581_s7, %s7367_s5 }
  0x88   : > { %p5584_p4 = pnand %p5582_p0, %p6072_p2 }
  0x8a   : > { %p5585_p6 = pneg %p5584_p4 }
  0x8c   : > { %p5590_p11 = pnand %p5588_p10, %p5585_p6 }
  0x8e   : > { %5593 = shalt.err (!%p5590_p11)
}
  0x8f   : > { %s5594_s28 = scalar_lea.vmem %s369_s15, 4096  ;;  %p5602_p7 = scmp.lt.s32.totalorder %s369_s15, %s369_s15 }
  0x90   : > { %p5595_p1 = scmp.ne.s32.totalorder %s369_s15, %s5594_s28  ;;  %p5603_p8 = scmp.lt.s32.totalorder %s5594_s28, %s5594_s28 }
  0x92   : > { %p5597_p3 = pnand %p5595_p1, %p6072_p2  ;;  %p5604_p9 = por %p5603_p8, %p5602_p7 }
  0x94   : > { %p5598_p5 = pneg %p5597_p3 }
  0x96   : > { %p5605_p12 = pnand %p5604_p9, %p5598_p5 }
  0x98   : > { %5608 = shalt.err (!%p5605_p12)
}
  0x99   : > { %5059 = dma.hbm_to_vmem [thread:$0]  (!%p6058_p13), %s7367_s5, 4096, %s369_s15, [#allocation12], %s5895_s6, %s5895_s6, %s5896_s22  }
  0x9a   : > { %s52_s30 = sadd.s32 1, %s5887_s17  ;;  %s61_s25 = sadd.s32 1, %s5871_s13 }
  0x9b   : > { %p68_p2 = scmp.ne.s32.totalorder %s5871_s13, %s5867_s12  ;;  %p7277_p0 = scmp.eq.s32.totalorder %s5891_s18, 0 }
  0x9c   : > { %p74_p4 = scmp.ne.s32.totalorder %s5867_s12, %s5863_s11  ;;  %p7276_p6 = scmp.lt.s32.totalorder %s5891_s18, 4 }
  0x9d   : > { %s382_s1 = sand.u32 1, %s5871_s13   ;;  %p70_p10 = por %p7277_p0, %p68_p2 }
  0x9e   : > { %p7368_p11 = scmp.eq.s32.totalorder %s6022_s19, 0  ;;  %s4000_s14 = sshll.u32 %s382_s1, 9 }
  0x9f   : > { %s4382_s21 = sshll.u32 %s5887_s17, 13  ;;  %s7370_s0 = sld [smem:[#allocation90_spill]] }
  0xa0   : > { %p6172_p1 = por %p7368_p11, %p74_p4  ;;  %s386_s11 = scalar_lea.vmem [#allocation2], %s4000_s14 }
  0xa1   : > { %s396_s22 = sshll.u32 %s386_s11, 4  ;;  %p6186_p13 = pnand %p7276_p6, %p70_p10  ;;  %s6182_s22 = int_to_ptr.vmem [resolvable:$true] %s396_s22 }
  0xa2   : > { %s6190_s20 = scalar_lea.sflag [#allocation3], %s382_s1 }
  0xa3   : > { %p5611_p5 = pneg %p6186_p13 }
  0xa5   : > { %s6180_s6 = scalar_lea.hbm %s7370_s0, %s4382_s21  ;;  %s5614_s24 = scalar_lea.hbm %s7370_s0, 16384 }
  0xa6   : > { %s5609_s8 = scalar_lea.hbm %s6180_s6, 8192  ;;  %p5615_p9 = scmp.lt.u32.totalorder %s6180_s6, %s7370_s0 }
  0xa7   : > { %p5610_p3 = scmp.ne.s32.totalorder %s6180_s6, %s5609_s8  ;;  %p5616_p12 = scmp.lt.u32.totalorder %s5614_s24, %s5609_s8 }
  0xa8   : > { %p5618_p4 = scmp.lt.u32.totalorder %s5609_s8, %s6180_s6 }
  0xa9   : > { %p5612_p7 = pnand %p5611_p5, %p5610_p3  ;;  %p5617_p2 = por %p5616_p12, %p5615_p9 }
  0xab   : > { %p5613_p8 = pneg %p5612_p7  ;;  %p5619_p10 = por %p5618_p4, %p5617_p2 }
  0xad   : > { %p5620_p11 = pnand %p5619_p10, %p5613_p8 }
  0xaf   : > { %5623 = shalt.err (!%p5620_p11)
}
  0xb0   : > { %s5624_s1 = scalar_lea.vmem %s6182_s22, 8192  ;;  %s5899_s21 = smov [#allocation2]  }
  0xb1   : > { %p5625_p3 = scmp.ne.s32.totalorder %s6182_s22, %s5624_s1  ;;  %s5629_s7 = sshll.u32 %s5899_s21, 4  ;;  %s5630_s7 = int_to_ptr.vmem [resolvable:$false] %s5629_s7 }
  0xb2   : > { %s5631_s23 = scalar_lea.vmem %s5630_s7, 16384  ;;  %p5632_p0 = scmp.lt.s32.totalorder %s6182_s22, %s5630_s7 }
  0xb3   : > { %p5627_p7 = pnand %p5625_p3, %p5611_p5  ;;  %p5633_p9 = scmp.lt.s32.totalorder %s5631_s23, %s5624_s1 }
  0xb5   : > { %p5628_p6 = pneg %p5627_p7  ;;  %p5634_p12 = por %p5633_p9, %p5632_p0 }
  0xb7   : > { %p5635_p2 = pnand %p5634_p12, %p5628_p6 }
  0xb9   : > { %5638 = shalt.err (!%p5635_p2)
}
  0xba   : > { %s7278_s11 = smov 256   ;;  %s7279_s8 = smov 16  }
  0xbb   : > { %5063 = dma.hbm_to_vmem [thread:$0]  (!%p6186_p13), %s6180_s6, 8192, %s6182_s22, %s6190_s20, %s7278_s11, %s7278_s11, %s7279_s8  }
  0xbc   : > { %s87_s26 = sadd.s32 1, %s5859_s10  ;;  %s45_s28 = sadd.s32 1, %s5883_s16 }
  0xbd   : > { %p94_p0 = scmp.ne.s32.totalorder %s5859_s10, %s5855_s9  ;;  %p46_p6 = scmp.ge.s32.totalorder %s45_s28, 2 }
  0xbe   : > { %s221_s24 = sadd.s32 1, %s5847_s29  ;;  %p7372_p5 = scmp.eq.s32.totalorder %s5891_s18, 0 }
  0xbf   : > { %s406_s14 = sand.u32 1, %s5891_s18   ;;  %s7533_s28 = smov (%p46_p6, %s45_s28), 0 }
  0xc0   : > { %p6228_p8 = por %p94_p0, %p7372_p5  ;;  %7374 = sst [smem:[#allocation33_spill]] %s7533_s28 }
  0xc1   : > { %s7535_s30 = smov (!%p46_p6, %s52_s30), %s5887_s17  ;;  %s84_s6 = ssub.s32 %s5883_s16, %s7533_s28 }
  0xc2   : > { %p54_p13 = scmp.ge.s32.totalorder %s7535_s30, 2  ;;  %p85_p4 = scmp.eq.s32.totalorder %s84_s6, 0 }
  0xc3   : > { %s408_s22 = sand.u32 1, %s5859_s10   ;;  %s4383_s15 = sshll.u32 %s5883_s16, 14 }
  0xc4   : > { %s7537_s30 = smov (%p54_p13, %s7535_s30), 0  ;;  %s4003_s21 = sshll.u32 %s408_s22, 10 }
  0xc5   : > { %7375 = sst [smem:[#allocation34_spill]] %s7537_s30  ;;  %s56_s1 = ssub.s32 %s5887_s17, %s7537_s30 }
  0xc6   : > { %s6245_s20 = scalar_select %p85_p4, %s5859_s10, %s87_s26  }
  0xc7   : > { %p59_p10 = scmp.eq.s32.totalorder %s56_s1, 0  ;;  %s216_s7 = sor.u32 %s84_s6, %s56_s1 }
  0xc8   : > { %7376 = sst [smem:[#allocation35_spill]] %s6245_s20  ;;  %p219_p11 = scmp.eq.s32.totalorder %s216_s7, 0 }
  0xc9   : > { %s6252_s23 = scalar_select %p59_p10, %s5871_s13, %s61_s25  }
  0xca   : > { %s6255_s11 = scalar_select %p219_p11, %s5847_s29, %s221_s24  }
  0xcb   : > { %7377 = sst [smem:[#allocation36_spill]] %s6252_s23  ;;  %s7378_s3 = sld [smem:[#allocation91_spill]] }
  0xcc   : > { %s410_s26 = scalar_lea.vmem [#allocation5], %s4003_s21  ;;  %p7379_p3 = scmp.lt.s32.totalorder %s5891_s18, 4 }
  0xcd   : > { %s417_s5 = sshll.u32 %s410_s26, 4  ;;  %s6272_s24 = scalar_lea.sflag [#allocation6], %s406_s14  ;;  %s6262_s5 = int_to_ptr.vmem [resolvable:$true] %s417_s5 }
  0xce   : > { %p6268_p7 = pnand %p7379_p3, %p6228_p8 }
  0xd0   : > { %p5641_p12 = pneg %p6268_p7 }
  0xd1   : > { %s6260_s4 = scalar_lea.hbm %s7378_s3, %s4383_s15  ;;  %s5644_s27 = scalar_lea.hbm %s7378_s3, 32768 }
  0xd2   : > { %s5639_s0 = scalar_lea.hbm %s6260_s4, 16384  ;;  %p5645_p6 = scmp.lt.u32.totalorder %s6260_s4, %s7378_s3 }
  0xd3   : > { %p5640_p9 = scmp.ne.s32.totalorder %s6260_s4, %s5639_s0  ;;  %p5646_p5 = scmp.lt.u32.totalorder %s5644_s27, %s5639_s0 }
  0xd4   : > { %p5648_p13 = scmp.lt.u32.totalorder %s5639_s0, %s6260_s4 }
  0xd5   : > { %p5642_p2 = pnand %p5641_p12, %p5640_p9  ;;  %p5647_p8 = por %p5646_p5, %p5645_p6 }
  0xd7   : > { %p5643_p0 = pneg %p5642_p2  ;;  %p5649_p4 = por %p5648_p13, %p5647_p8 }
  0xd9   : > { %p5650_p10 = pnand %p5649_p4, %p5643_p0 }
  0xdb   : > { %5653 = shalt.err (!%p5650_p10)
}
  0xdc   : > { %s5654_s14 = scalar_lea.vmem %s6262_s5, 16384  ;;  %s5902_s1 = smov [#allocation5]  }
  0xdd   : > { %p5655_p11 = scmp.ne.s32.totalorder %s6262_s5, %s5654_s14  ;;  %s5659_s21 = sshll.u32 %s5902_s1, 4  ;;  %s5660_s21 = int_to_ptr.vmem [resolvable:$false] %s5659_s21 }
  0xde   : > { %s5661_s7 = scalar_lea.vmem %s5660_s21, 32768  ;;  %p5662_p2 = scmp.lt.s32.totalorder %s6262_s5, %s5660_s21 }
  0xdf   : > { %p5657_p3 = pnand %p5655_p11, %p5641_p12  ;;  %p5663_p6 = scmp.lt.s32.totalorder %s5661_s7, %s5654_s14 }
  0xe1   : > { %p5658_p9 = pneg %p5657_p3  ;;  %p5664_p5 = por %p5663_p6, %p5662_p2 }
  0xe3   : > { %p5665_p8 = pnand %p5664_p5, %p5658_p9 }
  0xe5   : > { %5668 = shalt.err (!%p5665_p8)
}
  0xe6   : > { %s7381_s26 = smov 16   ;;  %s7382_s0 = smov 256  }
  0xe7   : > { %5066 = dma.hbm_to_vmem [thread:$0]  (!%p6268_p7), %s6260_s4, 16384, %s6262_s5, %s6272_s24, %s7382_s0, %s7382_s0, %s7381_s26  }
  0xe8   : > { %s7383_s8 = sld [smem:[#allocation32_spill]] }
  0xee   : > { %p7384_p12 = scmp.ne.s32.totalorder %s7383_s8, 0 }
  0xf0   : > { %429 = sbr.rel (%p7384_p12) target bundleno = 1045 (0x415), region = 44 }
  0xf7   : > { %s431_s6 = sand.u32 1, %s5867_s12  }
  0xf8   : > { %s4007_s27 = sshll.u32 %s431_s6, 9  ;;  %s432_s22 = scalar_lea.sflag [#allocation3], %s431_s6 }
  0xf9   : > { %s6306_s15 = scalar_lea.vmem [#allocation2], %s4007_s27 }
  0xfa   : > { %5810 = dma.done.wait (%p6172_p1), %s432_s22, 8192  }
  0xfb   : > { %5812 = vsyncadd (%p6172_p1), %s432_s22, 4294959104  ;;  %s7385_s25 = sld [smem:[#allocation29_spill]]  ;;  %s7333_s4 = sand.u32 1, %s6022_s19  }
  0xfc   : > { %s442_s5 = sand.u32 1, %s5855_s9   ;;  %s441_s14 = scalar_lea.sflag [#allocation6], %s7333_s4 }
  0xfd   : > { %s4008_s24 = sshll.u32 %s442_s5, 10 }
  0xfe   : > { %s6316_s1 = scalar_lea.vmem [#allocation5], %s4008_s24 }
 0x101   : > { %p7386_p7 = scmp.ne.s32.totalorder %s7385_s25, 0 }
 0x103   : > { %5814 = dma.done.wait (%p7386_p7), %s441_s14, 16384  }
 0x104   : > { %5816 = vsyncadd (%p7386_p7), %s441_s14, 4294950912  ;;  %p7387_p0 = scmp.eq.s32.totalorder %s6022_s19, 0 }
 0x106   : > { %5818 = dma.done.wait (%p7387_p0), [#allocation6], 4096   ;;  %p7388_p1 = pmov %p7387_p0 }
 0x107   : > { %p7389_p13 = pmov %p7387_p0 }
 0x108   : > { %5820 = vsyncadd (%p7388_p1), [#allocation6], 4294963200 }
 0x109   : > { %5822 = dma.done.wait (%p7389_p13), [#allocation9], 8192   ;;  %p7390_p4 = pmov %p7387_p0 }
 0x10a   : > { %p7391_p10 = pmov %p7387_p0 }
 0x10b   : > { %5824 = vsyncadd (%p7390_p4), [#allocation9], 4294959104 }
 0x10c   : > { %5826 = dma.done.wait (%p7391_p10), [#allocation12], 4096   ;;  %p7392_p11 = pmov %p7387_p0 }
 0x10d   : > { %v5209_v0 = vld [vmem:[%s6316_s1 + $0x4] ss:$16 sps:$4 sm:$0xff]   ;;  %v5211_v1 = vld [vmem:[%s6316_s1 + $0xc] ss:$16 sps:$4 sm:$0xff]   ;;  %v5213_v2 = vld [vmem:[%s6316_s1] ss:$16 sps:$4 sm:$0xff]  }
 0x10e   : > { %5828 = vsyncadd (%p7392_p11), [#allocation12], 4294963200  ;;  %1668 = vmatprep.subr.bf16.mxu0 %v5209_v0  ;;  %v5214_v3 = vld [vmem:[%s6316_s1 + $0x8] ss:$16 sps:$4 sm:$0xff]   ;;  %2054 = vmatprep.subr.bf16.mxu1 %v5211_v1  ;;  %v5215_v4 = vld [vmem:[%s6316_s1 + $0x24] ss:$16 sps:$4 sm:$0xff]  }
 0x10f   : > { %1669 = vmatpush1.bf16.msra.mxu0 %v5213_v2  ;;  %2055 = vmatpush1.bf16.msra.mxu1 %v5214_v3  ;;  %v5217_v5 = vld [vmem:[%s6316_s1 + $0x2c] ss:$16 sps:$4 sm:$0xff]   ;;  %v5219_v6 = vld [vmem:[%s6316_s1 + $0x20] ss:$16 sps:$4 sm:$0xff]   ;;  %v5220_v7 = vld [vmem:[%s6316_s1 + $0x28] ss:$16 sps:$4 sm:$0xff]  }
 0x110   : > { %1670 = vmatprep.subr.bf16.mxu0 %v5215_v4  ;;  %2056 = vmatprep.subr.bf16.mxu1 %v5217_v5  ;;  %v5221_v8 = vld [vmem:[%s6316_s1 + $0x44] ss:$16 sps:$4 sm:$0xff]   ;;  %v5223_v9 = vld [vmem:[%s6316_s1 + $0x4c] ss:$16 sps:$4 sm:$0xff]   ;;  %v5225_v10 = vld [vmem:[%s6316_s1 + $0x40] ss:$16 sps:$4 sm:$0xff]  }
 0x111   : > { %v5226_v11 = vld [vmem:[%s6316_s1 + $0x48] ss:$16 sps:$4 sm:$0xff]   ;;  %v5227_v12 = vld [vmem:[%s6316_s1 + $0x64] ss:$16 sps:$4 sm:$0xff]   ;;  %v5229_v13 = vld [vmem:[%s6316_s1 + $0x6c] ss:$16 sps:$4 sm:$0xff]  }
 0x112   : > { %v5231_v14 = vld [vmem:[%s6316_s1 + $0x60] ss:$16 sps:$4 sm:$0xff]   ;;  %v5232_v15 = vld [vmem:[%s6316_s1 + $0x68] ss:$16 sps:$4 sm:$0xff]   ;;  %v5233_v16 = vld [vmem:[%s6316_s1 + $0x84] ss:$16 sps:$4 sm:$0xff]  }
 0x113   : > { %1671 = vmatpush1.bf16.msra.mxu0 %v5219_v6  ;;  %2057 = vmatpush1.bf16.msra.mxu1 %v5220_v7  ;;  %v5235_v17 = vld [vmem:[%s6316_s1 + $0x8c] ss:$16 sps:$4 sm:$0xff]   ;;  %v5237_v18 = vld [vmem:[%s6316_s1 + $0x80] ss:$16 sps:$4 sm:$0xff]   ;;  %v5238_v19 = vld [vmem:[%s6316_s1 + $0x88] ss:$16 sps:$4 sm:$0xff]  }
 0x114   : > { %1672 = vmatprep.subr.bf16.mxu0 %v5221_v8  ;;  %2058 = vmatprep.subr.bf16.mxu1 %v5223_v9  ;;  %v5239_v20 = vld [vmem:[%s6316_s1 + $0xa4] ss:$16 sps:$4 sm:$0xff]   ;;  %v5241_v21 = vld [vmem:[%s6316_s1 + $0xac] ss:$16 sps:$4 sm:$0xff]   ;;  %v5243_v22 = vld [vmem:[%s6316_s1 + $0xa0] ss:$16 sps:$4 sm:$0xff]  }
 0x115   : > { %v5244_v23 = vld [vmem:[%s6316_s1 + $0xa8] ss:$16 sps:$4 sm:$0xff]   ;;  %v5245_v24 = vld [vmem:[%s6316_s1 + $0xc4] ss:$16 sps:$4 sm:$0xff]   ;;  %v5247_v25 = vld [vmem:[%s6316_s1 + $0xcc] ss:$16 sps:$4 sm:$0xff]  }
 0x116   : > { %v5249_v26 = vld [vmem:[%s6316_s1 + $0xc0] ss:$16 sps:$4 sm:$0xff]   ;;  %v5250_v27 = vld [vmem:[%s6316_s1 + $0xc8] ss:$16 sps:$4 sm:$0xff]   ;;  %v5251_v28 = vld [vmem:[%s6316_s1 + $0xe4] ss:$16 sps:$4 sm:$0xff]  }
 0x117   : > { %1673 = vmatpush1.bf16.msra.mxu0 %v5225_v10  ;;  %2059 = vmatpush1.bf16.msra.mxu1 %v5226_v11  ;;  %v5253_v29 = vld [vmem:[%s6316_s1 + $0xec] ss:$16 sps:$4 sm:$0xff]   ;;  %v5255_v30 = vld [vmem:[%s6316_s1 + $0xe0] ss:$16 sps:$4 sm:$0xff]   ;;  %v5256_v31 = vld [vmem:[%s6316_s1 + $0xe8] ss:$16 sps:$4 sm:$0xff]  }
 0x118   : > { %1674 = vmatprep.subr.bf16.mxu0 %v5227_v12  ;;  %2060 = vmatprep.subr.bf16.mxu1 %v5229_v13  ;;  %v5257_v32 = vld [vmem:[%s6316_s1 + $0x104] ss:$16 sps:$4 sm:$0xff]   ;;  %v5259_v33 = vld [vmem:[%s6316_s1 + $0x10c] ss:$16 sps:$4 sm:$0xff]   ;;  %v5261_v34 = vld [vmem:[%s6316_s1 + $0x100] ss:$16 sps:$4 sm:$0xff]  }
 0x119   : > { %v5262_v35 = vld [vmem:[%s6316_s1 + $0x108] ss:$16 sps:$4 sm:$0xff]   ;;  %v5263_v36 = vld [vmem:[%s6316_s1 + $0x124] ss:$16 sps:$4 sm:$0xff]   ;;  %v5265_v37 = vld [vmem:[%s6316_s1 + $0x12c] ss:$16 sps:$4 sm:$0xff]  }
 0x11a   : > { %v5267_v38 = vld [vmem:[%s6316_s1 + $0x120] ss:$16 sps:$4 sm:$0xff]   ;;  %v5268_v39 = vld [vmem:[%s6316_s1 + $0x128] ss:$16 sps:$4 sm:$0xff]   ;;  %v5269_v40 = vld [vmem:[%s6316_s1 + $0x144] ss:$16 sps:$4 sm:$0xff]  }
 0x11b   : > { %1675 = vmatpush1.bf16.msra.mxu0 %v5231_v14  ;;  %2061 = vmatpush1.bf16.msra.mxu1 %v5232_v15  ;;  %v5271_v41 = vld [vmem:[%s6316_s1 + $0x14c] ss:$16 sps:$4 sm:$0xff]   ;;  %v5273_v42 = vld [vmem:[%s6316_s1 + $0x140] ss:$16 sps:$4 sm:$0xff]   ;;  %v5274_v43 = vld [vmem:[%s6316_s1 + $0x148] ss:$16 sps:$4 sm:$0xff]  }
 0x11c   : > { %1676 = vmatprep.subr.bf16.mxu0 %v5233_v16  ;;  %2062 = vmatprep.subr.bf16.mxu1 %v5235_v17  ;;  %v5275_v44 = vld [vmem:[%s6316_s1 + $0x164] ss:$16 sps:$4 sm:$0xff]   ;;  %v5277_v45 = vld [vmem:[%s6316_s1 + $0x16c] ss:$16 sps:$4 sm:$0xff]   ;;  %v5279_v46 = vld [vmem:[%s6316_s1 + $0x160] ss:$16 sps:$4 sm:$0xff]  }
 0x11d   : > { %v5280_v47 = vld [vmem:[%s6316_s1 + $0x168] ss:$16 sps:$4 sm:$0xff]   ;;  %v5307_v48 = vld [vmem:[%s6306_s15 + $0x4] ss:$16 sps:$4 sm:$0xff]   ;;  %v5283_v50 = vld [vmem:[%s6316_s1 + $0x18c] ss:$16 sps:$4 sm:$0xff]  }
 0x11e   : > { %v5281_v49 = vld [vmem:[%s6316_s1 + $0x184] ss:$16 sps:$4 sm:$0xff]   ;;  %1700 = vmatprep.mubr.bf16.mxu0 %v5307_v48  ;;  %2086 = vmatprep.mubr.bf16.mxu1 %v5307_v48  ;;  %v5285_v51 = vld [vmem:[%s6316_s1 + $0x180] ss:$16 sps:$4 sm:$0xff]   ;;  %v5286_v52 = vld [vmem:[%s6316_s1 + $0x188] ss:$16 sps:$4 sm:$0xff]  }
 0x11f   : > { %1677 = vmatpush1.bf16.msra.mxu0 %v5237_v18  ;;  %2063 = vmatpush1.bf16.msra.mxu1 %v5238_v19  ;;  %v5287_v53 = vld [vmem:[%s6316_s1 + $0x1a4] ss:$16 sps:$4 sm:$0xff]   ;;  %v5289_v54 = vld [vmem:[%s6316_s1 + $0x1ac] ss:$16 sps:$4 sm:$0xff]   ;;  %v5291_v55 = vld [vmem:[%s6316_s1 + $0x1a0] ss:$16 sps:$4 sm:$0xff]  }
 0x120   : > { %1678 = vmatprep.subr.bf16.mxu0 %v5239_v20  ;;  %2064 = vmatprep.subr.bf16.mxu1 %v5241_v21  ;;  %v5292_v56 = vld [vmem:[%s6316_s1 + $0x1a8] ss:$16 sps:$4 sm:$0xff]   ;;  %v5293_v57 = vld [vmem:[%s6316_s1 + $0x1c4] ss:$16 sps:$4 sm:$0xff]   ;;  %v5295_v58 = vld [vmem:[%s6316_s1 + $0x1cc] ss:$16 sps:$4 sm:$0xff]  }
 0x121   : > { %v5297_v59 = vld [vmem:[%s6316_s1 + $0x1c0] ss:$16 sps:$4 sm:$0xff]   ;;  %v5298_v60 = vld [vmem:[%s6316_s1 + $0x1c8] ss:$16 sps:$4 sm:$0xff]   ;;  %v5299_v61 = vld [vmem:[%s6316_s1 + $0x1e4] ss:$16 sps:$4 sm:$0xff]  }
 0x122   : > { %v5301_v62 = vld [vmem:[%s6316_s1 + $0x1ec] ss:$16 sps:$4 sm:$0xff]   ;;  %v5303_v63 = vld [vmem:[%s6316_s1 + $0x1e0] ss:$16 sps:$4 sm:$0xff]   ;;  %v5304_v0 = vld [vmem:[%s6316_s1 + $0x1e8] ss:$16 sps:$4 sm:$0xff]  }
 0x123   : > { %1679 = vmatpush1.bf16.msra.mxu0 %v5243_v22  ;;  %2065 = vmatpush1.bf16.msra.mxu1 %v5244_v23  ;;  %v5310_v1 = vld [vmem:[%s6316_s1 + $0x204] ss:$16 sps:$4 sm:$0xff]   ;;  %v5313_v2 = vld [vmem:[%s6316_s1 + $0x20c] ss:$16 sps:$4 sm:$0xff]   ;;  %v5305_v3 = vld [vmem:[%s6306_s15] ss:$16 sps:$4 sm:$0xff]  }
 0x124   : > { %1680 = vmatprep.subr.bf16.mxu0 %v5245_v24  ;;  %2066 = vmatprep.subr.bf16.mxu1 %v5247_v25  ;;  %v5308_v4 = vld [vmem:[%s6316_s1 + $0x200] ss:$16 sps:$4 sm:$0xff]   ;;  %v5311_v5 = vld [vmem:[%s6316_s1 + $0x208] ss:$16 sps:$4 sm:$0xff]   ;;  %v5314_v6 = vld [vmem:[%s6306_s15 + $0x24] ss:$16 sps:$4 sm:$0xff]  }
 0x125   : > { %v5319_v7 = vld [vmem:[%s6316_s1 + $0x224] ss:$16 sps:$4 sm:$0xff]   ;;  %v5322_v8 = vld [vmem:[%s6316_s1 + $0x22c] ss:$16 sps:$4 sm:$0xff]   ;;  %v5317_v9 = vld [vmem:[%s6316_s1 + $0x220] ss:$16 sps:$4 sm:$0xff]  }
 0x126   : > { %v5320_v10 = vld [vmem:[%s6316_s1 + $0x228] ss:$16 sps:$4 sm:$0xff]   ;;  %v5328_v11 = vld [vmem:[%s6316_s1 + $0x244] ss:$16 sps:$4 sm:$0xff]   ;;  %v5331_v12 = vld [vmem:[%s6316_s1 + $0x24c] ss:$16 sps:$4 sm:$0xff]  }
 0x127   : > { %1681 = vmatpush1.bf16.msra.mxu0 %v5249_v26  ;;  %2067 = vmatpush1.bf16.msra.mxu1 %v5250_v27  ;;  %v5316_v13 = vld [vmem:[%s6306_s15 + $0x20] ss:$16 sps:$4 sm:$0xff]   ;;  %v5323_v14 = vld [vmem:[%s6306_s15 + $0x44] ss:$16 sps:$4 sm:$0xff]   ;;  %v5329_v16 = vld [vmem:[%s6316_s1 + $0x248] ss:$16 sps:$4 sm:$0xff]  }
 0x128   : > { %1682 = vmatprep.subr.bf16.mxu0 %v5251_v28  ;;  %2068 = vmatprep.subr.bf16.mxu1 %v5253_v29  ;;  %v5326_v15 = vld [vmem:[%s6316_s1 + $0x240] ss:$16 sps:$4 sm:$0xff]   ;;  %v5337_v17 = vld [vmem:[%s6316_s1 + $0x264] ss:$16 sps:$4 sm:$0xff]   ;;  %v5340_v18 = vld [vmem:[%s6316_s1 + $0x26c] ss:$16 sps:$4 sm:$0xff]  }
 0x129   : > { %v5335_v19 = vld [vmem:[%s6316_s1 + $0x260] ss:$16 sps:$4 sm:$0xff]   ;;  %v5338_v20 = vld [vmem:[%s6316_s1 + $0x268] ss:$16 sps:$4 sm:$0xff]   ;;  %v5346_v21 = vld [vmem:[%s6316_s1 + $0x284] ss:$16 sps:$4 sm:$0xff]  }
 0x12a   : > { %v5349_v22 = vld [vmem:[%s6316_s1 + $0x28c] ss:$16 sps:$4 sm:$0xff]   ;;  %v5325_v23 = vld [vmem:[%s6306_s15 + $0x40] ss:$16 sps:$4 sm:$0xff]   ;;  %v5332_v24 = vld [vmem:[%s6306_s15 + $0x64] ss:$16 sps:$4 sm:$0xff]  }
 0x12b   : > { %1683 = vmatpush1.bf16.msra.mxu0 %v5255_v30  ;;  %2069 = vmatpush1.bf16.msra.mxu1 %v5256_v31  ;;  %v5344_v25 = vld [vmem:[%s6316_s1 + $0x280] ss:$16 sps:$4 sm:$0xff]   ;;  %v5347_v26 = vld [vmem:[%s6316_s1 + $0x288] ss:$16 sps:$4 sm:$0xff]   ;;  %v5355_v27 = vld [vmem:[%s6316_s1 + $0x2a4] ss:$16 sps:$4 sm:$0xff]  }
 0x12c   : > { %1684 = vmatprep.subr.bf16.mxu0 %v5257_v32  ;;  %2070 = vmatprep.subr.bf16.mxu1 %v5259_v33  ;;  %v5358_v28 = vld [vmem:[%s6316_s1 + $0x2ac] ss:$16 sps:$4 sm:$0xff]   ;;  %v5353_v29 = vld [vmem:[%s6316_s1 + $0x2a0] ss:$16 sps:$4 sm:$0xff]   ;;  %v5356_v30 = vld [vmem:[%s6316_s1 + $0x2a8] ss:$16 sps:$4 sm:$0xff]  }
 0x12d   : > { %v5364_v31 = vld [vmem:[%s6316_s1 + $0x2c4] ss:$16 sps:$4 sm:$0xff]   ;;  %v5367_v32 = vld [vmem:[%s6316_s1 + $0x2cc] ss:$16 sps:$4 sm:$0xff]   ;;  %v5334_v33 = vld [vmem:[%s6306_s15 + $0x60] ss:$16 sps:$4 sm:$0xff]  }
 0x12e   : > { %v5394_v48 = vld [vmem:[%s6316_s1 + $0x32c] ss:$16 sps:$4 sm:$0xff]   ;;  %s7393_s2 = sld [smem:[#allocation25_spill]]  ;;  %s7334_s26 = smov 64  }
 0x12f   : > { %1685 = vmatpush1.bf16.msra.mxu0 %v5261_v34  ;;  %2071 = vmatpush1.bf16.msra.mxu1 %v5262_v35  ;;  %v5341_v34 = vld [vmem:[%s6306_s15 + $0x84] ss:$16 sps:$4 sm:$0xff]   ;;  %v5362_v35 = vld [vmem:[%s6316_s1 + $0x2c0] ss:$16 sps:$4 sm:$0xff]   ;;  %s7499_s22 = sld [smem:[#allocation26_spill]]  ;;  %s7503_s4 = sld [smem:[#allocation96_spill]] }
 0x130   : > { %1686 = vmatprep.subr.bf16.mxu0 %v5263_v36  ;;  %2072 = vmatprep.subr.bf16.mxu1 %v5265_v37  ;;  %v5365_v36 = vld [vmem:[%s6316_s1 + $0x2c8] ss:$16 sps:$4 sm:$0xff]   ;;  %v5373_v37 = vld [vmem:[%s6316_s1 + $0x2e4] ss:$16 sps:$4 sm:$0xff]   ;;  %s7504_s30 = sld [smem:[#allocation97_spill]]  ;;  %s7506_s17 = sld [smem:[#allocation98_spill]] }
 0x131   : > { %s5904_s3 = smov [#allocation13]  }
 0x133   : > { %1687 = vmatpush1.bf16.msra.mxu0 %v5267_v38  ;;  %2073 = vmatpush1.bf16.msra.mxu1 %v5268_v39  ;;  %v5376_v38 = vld [vmem:[%s6316_s1 + $0x2ec] ss:$16 sps:$4 sm:$0xff]   ;;  %v5371_v39 = vld [vmem:[%s6316_s1 + $0x2e0] ss:$16 sps:$4 sm:$0xff]  }
 0x134   : > { %1688 = vmatprep.subr.bf16.mxu0 %v5269_v40  ;;  %2074 = vmatprep.subr.bf16.mxu1 %v5271_v41  ;;  %v5374_v40 = vld [vmem:[%s6316_s1 + $0x2e8] ss:$16 sps:$4 sm:$0xff]   ;;  %v5382_v41 = vld [vmem:[%s6316_s1 + $0x304] ss:$16 sps:$4 sm:$0xff]   ;;  %s6527_s21 = sand.u32 1, %s7393_s2  }
 0x135   : > { %s4014_s7 = sshll.u32 %s6527_s21, 7  ;;  %s4013_s8 = sshll.u32 %s6527_s21, 8 }
 0x136   : > { %s6552_s0 = scalar_lea.vmem [#allocation16], %s4014_s7  ;;  %s6874_s6 = scalar_lea.vmem [#allocation13], %s4013_s8 }
 0x137   : > { %1689 = vmatpush1.bf16.msra.mxu0 %v5273_v42  ;;  %2075 = vmatpush1.bf16.msra.mxu1 %v5274_v43  ;;  %v5385_v42 = vld [vmem:[%s6316_s1 + $0x30c] ss:$16 sps:$4 sm:$0xff]   ;;  %v5343_v43 = vld [vmem:[%s6306_s15 + $0x80] ss:$16 sps:$4 sm:$0xff]   ;;  %s6893_s27 = scalar_lea.vmem [#allocation14], %s4014_s7  ;;  %s4371_s25 = sshll.u32 %s7499_s22, 6 }
 0x138   : > { %1690 = vmatprep.subr.bf16.mxu0 %v5275_v44  ;;  %2076 = vmatprep.subr.bf16.mxu1 %v5277_v45  ;;  %v5350_v44 = vld [vmem:[%s6306_s15 + $0xa4] ss:$16 sps:$4 sm:$0xff]   ;;  %v5380_v45 = vld [vmem:[%s6316_s1 + $0x300] ss:$16 sps:$4 sm:$0xff]   ;;  %s4374_s24 = sshll.u32 %s7499_s22, 5  ;;  %s3717_s8 = sshll.u32 %s6874_s6, 4  ;;  %s7095_s8 = int_to_ptr.vmem [resolvable:$true] %s3717_s8 }
 0x139   : > { %s7505_s23 = smov %s7504_s30  ;;  %s7507_s20 = smov %s7506_s17 }
 0x13b   : > { %1691 = vmatpush1.bf16.msra.mxu0 %v5279_v46  ;;  %2077 = vmatpush1.bf16.msra.mxu1 %v5280_v47  ;;  %v5383_v46 = vld [vmem:[%s6316_s1 + $0x308] ss:$16 sps:$4 sm:$0xff]   ;;  %v5391_v47 = vld [vmem:[%s6316_s1 + $0x324] ss:$16 sps:$4 sm:$0xff]  }
 0x13c   : > { %1692 = vmatprep.subr.bf16.mxu0 %v5281_v49  ;;  %2078 = vmatprep.subr.bf16.mxu1 %v5283_v50  ;;  %v5389_v49 = vld [vmem:[%s6316_s1 + $0x320] ss:$16 sps:$4 sm:$0xff]   ;;  %v5392_v50 = vld [vmem:[%s6316_s1 + $0x328] ss:$16 sps:$4 sm:$0xff]  }
 0x13f   : > { %1693 = vmatpush1.bf16.msra.mxu0 %v5285_v51  ;;  %2079 = vmatpush1.bf16.msra.mxu1 %v5286_v52  ;;  %v5400_v51 = vld [vmem:[%s6316_s1 + $0x344] ss:$16 sps:$4 sm:$0xff]   ;;  %v5403_v52 = vld [vmem:[%s6316_s1 + $0x34c] ss:$16 sps:$4 sm:$0xff]  }
 0x140   : > { %1694 = vmatprep.subr.bf16.mxu0 %v5287_v53  ;;  %2080 = vmatprep.subr.bf16.mxu1 %v5289_v54  ;;  %v5352_v53 = vld [vmem:[%s6306_s15 + $0xa0] ss:$16 sps:$4 sm:$0xff]   ;;  %v5359_v54 = vld [vmem:[%s6306_s15 + $0xc4] ss:$16 sps:$4 sm:$0xff]  }
 0x143   : > { %1695 = vmatpush1.bf16.msra.mxu0 %v5291_v55  ;;  %2081 = vmatpush1.bf16.msra.mxu1 %v5292_v56  ;;  %v5398_v55 = vld [vmem:[%s6316_s1 + $0x340] ss:$16 sps:$4 sm:$0xff]   ;;  %v5401_v56 = vld [vmem:[%s6316_s1 + $0x348] ss:$16 sps:$4 sm:$0xff]  }
 0x144   : > { %1696 = vmatprep.subr.bf16.mxu0 %v5293_v57  ;;  %2082 = vmatprep.subr.bf16.mxu1 %v5295_v58  ;;  %v5409_v57 = vld [vmem:[%s6316_s1 + $0x364] ss:$16 sps:$4 sm:$0xff]   ;;  %v5412_v58 = vld [vmem:[%s6316_s1 + $0x36c] ss:$16 sps:$4 sm:$0xff]  }
 0x147   : > { %1697 = vmatpush1.bf16.msra.mxu0 %v5297_v59  ;;  %2083 = vmatpush1.bf16.msra.mxu1 %v5298_v60  ;;  %v5407_v59 = vld [vmem:[%s6316_s1 + $0x360] ss:$16 sps:$4 sm:$0xff]   ;;  %v5410_v60 = vld [vmem:[%s6316_s1 + $0x368] ss:$16 sps:$4 sm:$0xff]  }
 0x148   : > { %1698 = vmatprep.subr.bf16.mxu0 %v5299_v61  ;;  %2084 = vmatprep.subr.bf16.mxu1 %v5301_v62  ;;  %v5418_v61 = vld [vmem:[%s6316_s1 + $0x384] ss:$16 sps:$4 sm:$0xff]   ;;  %v5421_v62 = vld [vmem:[%s6316_s1 + $0x38c] ss:$16 sps:$4 sm:$0xff]  }
 0x14b   : > { %1699 = vmatpush1.bf16.msra.mxu0 %v5303_v63  ;;  %2085 = vmatpush1.bf16.msra.mxu1 %v5304_v0  ;;  %v5361_v63 = vld [vmem:[%s6306_s15 + $0xc0] ss:$16 sps:$4 sm:$0xff]   ;;  %v5368_v0 = vld [vmem:[%s6306_s15 + $0xe4] ss:$16 sps:$4 sm:$0xff]  }
 0x14c   : > { %1861 = vmatprep.subr.bf16.mxu0 %v5310_v1  ;;  %2247 = vmatprep.subr.bf16.mxu1 %v5313_v2  ;;  %v5416_v1 = vld [vmem:[%s6316_s1 + $0x380] ss:$16 sps:$4 sm:$0xff]   ;;  %v5419_v2 = vld [vmem:[%s6316_s1 + $0x388] ss:$16 sps:$4 sm:$0xff]  }
 0x14e   : > { %1701 = vmatmul.mubr.bf16.vlgmr.msra.gmra.mrb[0].mxu0 %v5305_v3  ;;  %2087 = vmatmul.mubr.bf16.vlgmr.msra.gmra.mrb[0].mxu1 %v5305_v3  ;;  %v5427_v3 = vld [vmem:[%s6316_s1 + $0x3a4] ss:$16 sps:$4 sm:$0xff]  }
 0x14f   : > { %1862 = vmatpush1.bf16.msra.mxu0 %v5308_v4  ;;  %2248 = vmatpush1.bf16.msra.mxu1 %v5311_v5  ;;  %v5430_v4 = vld [vmem:[%s6316_s1 + $0x3ac] ss:$16 sps:$4 sm:$0xff]   ;;  %v5425_v5 = vld [vmem:[%s6316_s1 + $0x3a0] ss:$16 sps:$4 sm:$0xff]  }
 0x150   : > { %1710 = vmatprep.mubr.bf16.mxu0 %v5314_v6  ;;  %2096 = vmatprep.mubr.bf16.mxu1 %v5314_v6  ;;  %v5428_v6 = vld [vmem:[%s6316_s1 + $0x3a8] ss:$16 sps:$4 sm:$0xff]  }
 0x151   : > { %1863 = vmatprep.subr.bf16.mxu0 %v5319_v7  ;;  %2249 = vmatprep.subr.bf16.mxu1 %v5322_v8  ;;  %v5436_v7 = vld [vmem:[%s6316_s1 + $0x3c4] ss:$16 sps:$4 sm:$0xff]   ;;  %v5370_v8 = vld [vmem:[%s6306_s15 + $0xe0] ss:$16 sps:$4 sm:$0xff]  }
 0x153   : > { %1864 = vmatpush1.bf16.msra.mxu0 %v5317_v9  ;;  %2250 = vmatpush1.bf16.msra.mxu1 %v5320_v10  ;;  %v5439_v9 = vld [vmem:[%s6316_s1 + $0x3cc] ss:$16 sps:$4 sm:$0xff]   ;;  %v5377_v10 = vld [vmem:[%s6306_s15 + $0x104] ss:$16 sps:$4 sm:$0xff]  }
 0x154   : > { %1865 = vmatprep.subr.bf16.mxu0 %v5328_v11  ;;  %2251 = vmatprep.subr.bf16.mxu1 %v5331_v12  ;;  %v5434_v11 = vld [vmem:[%s6316_s1 + $0x3c0] ss:$16 sps:$4 sm:$0xff]   ;;  %v5437_v12 = vld [vmem:[%s6316_s1 + $0x3c8] ss:$16 sps:$4 sm:$0xff]  }
 0x156   : > { %1711 = vmatmul.mubr.bf16.gmra.mrb[4].mxu0 %v5316_v13  ;;  %2097 = vmatmul.mubr.bf16.gmra.mrb[4].mxu1 %v5316_v13  ;;  %v5445_v13 = vld [vmem:[%s6316_s1 + $0x3e4] ss:$16 sps:$4 sm:$0xff]  }
 0x157   : > { %1720 = vmatprep.mubr.bf16.mxu0 %v5323_v14  ;;  %2106 = vmatprep.mubr.bf16.mxu1 %v5323_v14  ;;  %v5448_v14 = vld [vmem:[%s6316_s1 + $0x3ec] ss:$16 sps:$4 sm:$0xff]  }
 0x158   : > { %1866 = vmatpush1.bf16.msra.mxu0 %v5326_v15  ;;  %2252 = vmatpush1.bf16.msra.mxu1 %v5329_v16  ;;  %v5443_v15 = vld [vmem:[%s6316_s1 + $0x3e0] ss:$16 sps:$4 sm:$0xff]   ;;  %v5446_v16 = vld [vmem:[%s6316_s1 + $0x3e8] ss:$16 sps:$4 sm:$0xff]  }
 0x159   : > { %1867 = vmatprep.subr.bf16.mxu0 %v5337_v17  ;;  %2253 = vmatprep.subr.bf16.mxu1 %v5340_v18  ;;  %v5379_v17 = vld [vmem:[%s6306_s15 + $0x100] ss:$16 sps:$4 sm:$0xff]   ;;  %v5386_v18 = vld [vmem:[%s6306_s15 + $0x124] ss:$16 sps:$4 sm:$0xff]  }
 0x15c   : > { %1868 = vmatpush1.bf16.msra.mxu0 %v5335_v19  ;;  %2254 = vmatpush1.bf16.msra.mxu1 %v5338_v20  ;;  %v5388_v19 = vld [vmem:[%s6306_s15 + $0x120] ss:$16 sps:$4 sm:$0xff]   ;;  %v5395_v20 = vld [vmem:[%s6306_s15 + $0x144] ss:$16 sps:$4 sm:$0xff]  }
 0x15d   : > { %1869 = vmatprep.subr.bf16.mxu0 %v5346_v21  ;;  %2255 = vmatprep.subr.bf16.mxu1 %v5349_v22  ;;  %v5397_v21 = vld [vmem:[%s6306_s15 + $0x140] ss:$16 sps:$4 sm:$0xff]   ;;  %v5404_v22 = vld [vmem:[%s6306_s15 + $0x164] ss:$16 sps:$4 sm:$0xff]  }
 0x15e   : > { %1721 = vmatmul.mubr.bf16.gmra.mrb[8].mxu0 %v5325_v23  ;;  %2107 = vmatmul.mubr.bf16.gmra.mrb[8].mxu1 %v5325_v23  ;;  %v5406_v23 = vld [vmem:[%s6306_s15 + $0x160] ss:$16 sps:$4 sm:$0xff]  }
 0x15f   : > { %1730 = vmatprep.mubr.bf16.mxu0 %v5332_v24  ;;  %2116 = vmatprep.mubr.bf16.mxu1 %v5332_v24  ;;  %v5413_v24 = vld [vmem:[%s6306_s15 + $0x184] ss:$16 sps:$4 sm:$0xff]  }
 0x160   : > { %1870 = vmatpush1.bf16.msra.mxu0 %v5344_v25  ;;  %2256 = vmatpush1.bf16.msra.mxu1 %v5347_v26  ;;  %v5415_v25 = vld [vmem:[%s6306_s15 + $0x180] ss:$16 sps:$4 sm:$0xff]   ;;  %v5422_v26 = vld [vmem:[%s6306_s15 + $0x1a4] ss:$16 sps:$4 sm:$0xff]  }
 0x161   : > { %1871 = vmatprep.subr.bf16.mxu0 %v5355_v27  ;;  %2257 = vmatprep.subr.bf16.mxu1 %v5358_v28  ;;  %v5424_v27 = vld [vmem:[%s6306_s15 + $0x1a0] ss:$16 sps:$4 sm:$0xff]   ;;  %v5431_v28 = vld [vmem:[%s6306_s15 + $0x1c4] ss:$16 sps:$4 sm:$0xff]  }
 0x164   : > { %1872 = vmatpush1.bf16.msra.mxu0 %v5353_v29  ;;  %2258 = vmatpush1.bf16.msra.mxu1 %v5356_v30  ;;  %v5433_v29 = vld [vmem:[%s6306_s15 + $0x1c0] ss:$16 sps:$4 sm:$0xff]   ;;  %v5440_v30 = vld [vmem:[%s6306_s15 + $0x1e4] ss:$16 sps:$4 sm:$0xff]  }
 0x165   : > { %1873 = vmatprep.subr.bf16.mxu0 %v5364_v31  ;;  %2259 = vmatprep.subr.bf16.mxu1 %v5367_v32  ;;  %v5442_v31 = vld [vmem:[%s6306_s15 + $0x1e0] ss:$16 sps:$4 sm:$0xff]   ;;  %v5451_v32 = vld [vmem:[%s6306_s15 + $0xc] ss:$16 sps:$4 sm:$0xff]  }
 0x166   : > { %1731 = vmatmul.mubr.bf16.gmra.mrb[12].mxu0 %v5334_v33  ;;  %2117 = vmatmul.mubr.bf16.gmra.mrb[12].mxu1 %v5334_v33  ;;  %v5449_v33 = vld [vmem:[%s6306_s15 + $0x8] ss:$16 sps:$4 sm:$0xff]  }
 0x167   : > { %1740 = vmatprep.mubr.bf16.mxu0 %v5341_v34  ;;  %2126 = vmatprep.mubr.bf16.mxu1 %v5341_v34  ;;  %v5452_v34 = vld [vmem:[%s6306_s15 + $0x2c] ss:$16 sps:$4 sm:$0xff]  }
 0x168   : > { %1874 = vmatpush1.bf16.msra.mxu0 %v5362_v35  ;;  %2260 = vmatpush1.bf16.msra.mxu1 %v5365_v36  ;;  %v5454_v35 = vld [vmem:[%s6306_s15 + $0x28] ss:$16 sps:$4 sm:$0xff]   ;;  %v5455_v36 = vld [vmem:[%s6306_s15 + $0x4c] ss:$16 sps:$4 sm:$0xff]  }
 0x169   : > { %1875 = vmatprep.subr.bf16.mxu0 %v5373_v37  ;;  %2261 = vmatprep.subr.bf16.mxu1 %v5376_v38  ;;  %v5457_v37 = vld [vmem:[%s6306_s15 + $0x48] ss:$16 sps:$4 sm:$0xff]   ;;  %v5458_v38 = vld [vmem:[%s6306_s15 + $0x6c] ss:$16 sps:$4 sm:$0xff]  }
 0x16c   : > { %1876 = vmatpush1.bf16.msra.mxu0 %v5371_v39  ;;  %2262 = vmatpush1.bf16.msra.mxu1 %v5374_v40  ;;  %v5460_v39 = vld [vmem:[%s6306_s15 + $0x68] ss:$16 sps:$4 sm:$0xff]   ;;  %v5461_v40 = vld [vmem:[%s6306_s15 + $0x8c] ss:$16 sps:$4 sm:$0xff]  }
 0x16d   : > { %1877 = vmatprep.subr.bf16.mxu0 %v5382_v41  ;;  %2263 = vmatprep.subr.bf16.mxu1 %v5385_v42  ;;  %v5463_v41 = vld [vmem:[%s6306_s15 + $0x88] ss:$16 sps:$4 sm:$0xff]   ;;  %v5464_v42 = vld [vmem:[%s6306_s15 + $0xac] ss:$16 sps:$4 sm:$0xff]  }
 0x16e   : > { %1741 = vmatmul.mubr.bf16.gmra.mrb[16].mxu0 %v5343_v43  ;;  %2127 = vmatmul.mubr.bf16.gmra.mrb[16].mxu1 %v5343_v43  ;;  %v5466_v43 = vld [vmem:[%s6306_s15 + $0xa8] ss:$16 sps:$4 sm:$0xff]  }
 0x16f   : > { %1750 = vmatprep.mubr.bf16.mxu0 %v5350_v44  ;;  %2136 = vmatprep.mubr.bf16.mxu1 %v5350_v44  ;;  %v5467_v44 = vld [vmem:[%s6306_s15 + $0xcc] ss:$16 sps:$4 sm:$0xff]  }
 0x170   : > { %1878 = vmatpush1.bf16.msra.mxu0 %v5380_v45  ;;  %2264 = vmatpush1.bf16.msra.mxu1 %v5383_v46  ;;  %v5469_v45 = vld [vmem:[%s6306_s15 + $0xc8] ss:$16 sps:$4 sm:$0xff]   ;;  %v5470_v46 = vld [vmem:[%s6306_s15 + $0xec] ss:$16 sps:$4 sm:$0xff]  }
 0x171   : > { %1879 = vmatprep.subr.bf16.mxu0 %v5391_v47  ;;  %2265 = vmatprep.subr.bf16.mxu1 %v5394_v48  ;;  %v5472_v47 = vld [vmem:[%s6306_s15 + $0xe8] ss:$16 sps:$4 sm:$0xff]   ;;  %v5473_v48 = vld [vmem:[%s6306_s15 + $0x10c] ss:$16 sps:$4 sm:$0xff]  }
 0x174   : > { %1880 = vmatpush1.bf16.msra.mxu0 %v5389_v49  ;;  %2266 = vmatpush1.bf16.msra.mxu1 %v5392_v50  ;;  %v5475_v49 = vld [vmem:[%s6306_s15 + $0x108] ss:$16 sps:$4 sm:$0xff]   ;;  %v5476_v50 = vld [vmem:[%s6306_s15 + $0x12c] ss:$16 sps:$4 sm:$0xff]  }
 0x175   : > { %1881 = vmatprep.subr.bf16.mxu0 %v5400_v51  ;;  %2267 = vmatprep.subr.bf16.mxu1 %v5403_v52  ;;  %v5478_v51 = vld [vmem:[%s6306_s15 + $0x128] ss:$16 sps:$4 sm:$0xff]   ;;  %v5479_v52 = vld [vmem:[%s6306_s15 + $0x14c] ss:$16 sps:$4 sm:$0xff]  }
 0x176   : > { %1751 = vmatmul.mubr.bf16.gmra.mrb[20].mxu0 %v5352_v53  ;;  %2137 = vmatmul.mubr.bf16.gmra.mrb[20].mxu1 %v5352_v53  ;;  %v5481_v53 = vld [vmem:[%s6306_s15 + $0x148] ss:$16 sps:$4 sm:$0xff]  }
 0x177   : > { %1760 = vmatprep.mubr.bf16.mxu0 %v5359_v54  ;;  %2146 = vmatprep.mubr.bf16.mxu1 %v5359_v54  ;;  %v5482_v54 = vld [vmem:[%s6306_s15 + $0x16c] ss:$16 sps:$4 sm:$0xff]  }
 0x178   : > { %1882 = vmatpush1.bf16.msra.mxu0 %v5398_v55  ;;  %2268 = vmatpush1.bf16.msra.mxu1 %v5401_v56  ;;  %v5484_v55 = vld [vmem:[%s6306_s15 + $0x168] ss:$16 sps:$4 sm:$0xff]   ;;  %v5485_v56 = vld [vmem:[%s6306_s15 + $0x18c] ss:$16 sps:$4 sm:$0xff]  }
 0x179   : > { %1883 = vmatprep.subr.bf16.mxu0 %v5409_v57  ;;  %2269 = vmatprep.subr.bf16.mxu1 %v5412_v58  ;;  %v5487_v57 = vld [vmem:[%s6306_s15 + $0x188] ss:$16 sps:$4 sm:$0xff]   ;;  %v5488_v58 = vld [vmem:[%s6306_s15 + $0x1ac] ss:$16 sps:$4 sm:$0xff]  }
 0x17c   : > { %1884 = vmatpush1.bf16.msra.mxu0 %v5407_v59  ;;  %2270 = vmatpush1.bf16.msra.mxu1 %v5410_v60  ;;  %v5490_v59 = vld [vmem:[%s6306_s15 + $0x1a8] ss:$16 sps:$4 sm:$0xff]   ;;  %v5491_v60 = vld [vmem:[%s6306_s15 + $0x1cc] ss:$16 sps:$4 sm:$0xff]  }
 0x17d   : > { %1885 = vmatprep.subr.bf16.mxu0 %v5418_v61  ;;  %2271 = vmatprep.subr.bf16.mxu1 %v5421_v62  ;;  %v5493_v61 = vld [vmem:[%s6306_s15 + $0x1c8] ss:$16 sps:$4 sm:$0xff]   ;;  %v5494_v62 = vld [vmem:[%s6306_s15 + $0x1ec] ss:$16 sps:$4 sm:$0xff]  }
 0x17e   : > { %1761 = vmatmul.mubr.bf16.gmra.mrb[24].mxu0 %v5361_v63  ;;  %2147 = vmatmul.mubr.bf16.gmra.mrb[24].mxu1 %v5361_v63  ;;  %v5496_v63 = vld [vmem:[%s6306_s15 + $0x1e8] ss:$16 sps:$4 sm:$0xff]   ;;  %s7500_s15 = sld [smem:[#allocation27_spill]] }
 0x17f   : > { %1770 = vmatprep.mubr.bf16.mxu0 %v5368_v0  ;;  %2156 = vmatprep.mubr.bf16.mxu1 %v5368_v0 }
 0x180   : > { %1886 = vmatpush1.bf16.msra.mxu0 %v5416_v1  ;;  %2272 = vmatpush1.bf16.msra.mxu1 %v5419_v2 }
 0x181   : > { %1887 = vmatprep.subr.bf16.mxu0 %v5427_v3  ;;  %2273 = vmatprep.subr.bf16.mxu1 %v5430_v4 }
 0x184   : > { %1888 = vmatpush1.bf16.msra.mxu0 %v5425_v5  ;;  %2274 = vmatpush1.bf16.msra.mxu1 %v5428_v6  ;;  %s4372_s5 = sshll.u32 %s7500_s15, 7  ;;  %s4375_s14 = sshll.u32 %s7500_s15, 6 }
 0x185   : > { %1889 = vmatprep.subr.bf16.mxu0 %v5436_v7  ;;  %2275 = vmatprep.subr.bf16.mxu1 %v5439_v9  ;;  %s3714_s1 = sadd.s32 %s4372_s5, %s4371_s25  ;;  %s3734_s2 = sadd.s32 %s4375_s14, %s4374_s24 }
 0x186   : > { %1771 = vmatmul.mubr.bf16.gmra.mrb[28].mxu0 %v5370_v8  ;;  %2157 = vmatmul.mubr.bf16.gmra.mrb[28].mxu1 %v5370_v8  ;;  %s4373_s7 = sshll.u32 %s3714_s1, 6  ;;  %s4376_s22 = sshll.u32 %s3734_s2, 6 }
 0x187   : > { %1780 = vmatprep.mubr.bf16.mxu0 %v5377_v10  ;;  %2166 = vmatprep.mubr.bf16.mxu1 %v5377_v10  ;;  %s3737_s15 = sshll.u32 %s6893_s27, 4  ;;  %s7502_s25 = sld [smem:[#allocation30_spill]]  ;;  %s7102_s15 = int_to_ptr.vmem [resolvable:$true] %s3737_s15 }
 0x188   : > { %1890 = vmatpush1.bf16.msra.mxu0 %v5434_v11  ;;  %2276 = vmatpush1.bf16.msra.mxu1 %v5437_v12  ;;  %s3757_s5 = sshll.u32 %s6552_s0, 4  ;;  %s7100_s2 = scalar_lea.hbm %s7504_s30, %s4376_s22  ;;  %s7110_s5 = int_to_ptr.vmem [resolvable:$true] %s3757_s5 }
 0x189   : > { %1891 = vmatprep.subr.bf16.mxu0 %v5445_v13  ;;  %2277 = vmatprep.subr.bf16.mxu1 %v5448_v14  ;;  %s7108_s24 = scalar_lea.hbm %s7506_s17, %s4376_s22  ;;  %s5669_s14 = scalar_lea.vmem %s7095_s8, 4096 }
 0x18a   : > { %p5670_p3 = scmp.ne.s32.totalorder %s7095_s8, %s5669_s14  ;;  %s5673_s30 = sshll.u32 %s5904_s3, 4  ;;  %s5674_s30 = int_to_ptr.vmem [resolvable:$false] %s5673_s30 }
 0x18b   : > { %s5675_s1 = scalar_lea.vmem %s5674_s30, 8192  ;;  %p5676_p5 = scmp.lt.s32.totalorder %s7095_s8, %s5674_s30 }
 0x18c   : > { %1892 = vmatpush1.bf16.msra.mxu0 %v5443_v15  ;;  %2278 = vmatpush1.bf16.msra.mxu1 %v5446_v16  ;;  %p5677_p8 = scmp.lt.s32.totalorder %s5675_s1, %s5669_s14 }
 0x18d   : > { %p7508_p9 = scmp.ne.s32.totalorder %s7502_s25, 0 }
 0x18e   : > { %1781 = vmatmul.mubr.bf16.gmra.mrb[32].mxu0 %v5379_v17  ;;  %2167 = vmatmul.mubr.bf16.gmra.mrb[32].mxu1 %v5379_v17  ;;  %p5678_p12 = por %p5677_p8, %p5676_p5 }
 0x18f   : > { %1790 = vmatprep.mubr.bf16.mxu0 %v5386_v18  ;;  %2176 = vmatprep.mubr.bf16.mxu1 %v5386_v18  ;;  %p5671_p2 = pnand %p5670_p3, %p7508_p9 }
 0x191   : > { %p5672_p6 = pneg %p5671_p2 }
 0x193   : > { %p5679_p7 = pnand %p5678_p12, %p5672_p6 }
 0x196   : > { %1791 = vmatmul.mubr.bf16.gmra.mrb[36].mxu0 %v5388_v19  ;;  %2177 = vmatmul.mubr.bf16.gmra.mrb[36].mxu1 %v5388_v19 }
 0x197   : > { %1800 = vmatprep.mubr.bf16.mxu0 %v5395_v20  ;;  %2186 = vmatprep.mubr.bf16.mxu1 %v5395_v20 }
 0x19e   : > { %1801 = vmatmul.mubr.bf16.gmra.mrb[40].mxu0 %v5397_v21  ;;  %2187 = vmatmul.mubr.bf16.gmra.mrb[40].mxu1 %v5397_v21 }
 0x19f   : > { %1810 = vmatprep.mubr.bf16.mxu0 %v5404_v22  ;;  %2196 = vmatprep.mubr.bf16.mxu1 %v5404_v22 }
 0x1a6   : > { %1811 = vmatmul.mubr.bf16.gmra.mrb[44].mxu0 %v5406_v23  ;;  %2197 = vmatmul.mubr.bf16.gmra.mrb[44].mxu1 %v5406_v23 }
 0x1a7   : > { %1820 = vmatprep.mubr.bf16.mxu0 %v5413_v24  ;;  %2206 = vmatprep.mubr.bf16.mxu1 %v5413_v24 }
 0x1ae   : > { %1821 = vmatmul.mubr.bf16.gmra.mrb[48].mxu0 %v5415_v25  ;;  %2207 = vmatmul.mubr.bf16.gmra.mrb[48].mxu1 %v5415_v25 }
 0x1af   : > { %1830 = vmatprep.mubr.bf16.mxu0 %v5422_v26  ;;  %2216 = vmatprep.mubr.bf16.mxu1 %v5422_v26 }
 0x1b6   : > { %1831 = vmatmul.mubr.bf16.gmra.mrb[52].mxu0 %v5424_v27  ;;  %2217 = vmatmul.mubr.bf16.gmra.mrb[52].mxu1 %v5424_v27 }
 0x1b7   : > { %1840 = vmatprep.mubr.bf16.mxu0 %v5431_v28  ;;  %2226 = vmatprep.mubr.bf16.mxu1 %v5431_v28 }
 0x1be   : > { %1841 = vmatmul.mubr.bf16.gmra.mrb[56].mxu0 %v5433_v29  ;;  %2227 = vmatmul.mubr.bf16.gmra.mrb[56].mxu1 %v5433_v29 }
 0x1bf   : > { %1850 = vmatprep.mubr.bf16.mxu0 %v5440_v30  ;;  %2236 = vmatprep.mubr.bf16.mxu1 %v5440_v30 }
 0x1c6   : > { %1851 = vmatmul.mubr.bf16.gmra.mrb[60].mxu0 %v5442_v31  ;;  %2237 = vmatmul.mubr.bf16.gmra.mrb[60].mxu1 %v5442_v31 }
 0x1c7   : > { %1893 = vmatprep.mubr.bf16.mxu0 %v5451_v32  ;;  %2279 = vmatprep.mubr.bf16.mxu1 %v5451_v32 }
 0x1ce   : > { %1894 = vmatmul.mubr.bf16.vlgmr.msra.gmra.mrb[0].mxu0 %v5449_v33  ;;  %2280 = vmatmul.mubr.bf16.vlgmr.msra.gmra.mrb[0].mxu1 %v5449_v33 }
 0x1cf   : > { %1903 = vmatprep.mubr.bf16.mxu0 %v5452_v34  ;;  %2289 = vmatprep.mubr.bf16.mxu1 %v5452_v34 }
 0x1d6   : > { %1904 = vmatmul.mubr.bf16.gmra.mrb[4].mxu0 %v5454_v35  ;;  %2290 = vmatmul.mubr.bf16.gmra.mrb[4].mxu1 %v5454_v35 }
 0x1d7   : > { %1913 = vmatprep.mubr.bf16.mxu0 %v5455_v36  ;;  %2299 = vmatprep.mubr.bf16.mxu1 %v5455_v36 }
 0x1de   : > { %1914 = vmatmul.mubr.bf16.gmra.mrb[8].mxu0 %v5457_v37  ;;  %2300 = vmatmul.mubr.bf16.gmra.mrb[8].mxu1 %v5457_v37 }
 0x1df   : > { %1923 = vmatprep.mubr.bf16.mxu0 %v5458_v38  ;;  %2309 = vmatprep.mubr.bf16.mxu1 %v5458_v38 }
 0x1e6   : > { %1924 = vmatmul.mubr.bf16.gmra.mrb[12].mxu0 %v5460_v39  ;;  %2310 = vmatmul.mubr.bf16.gmra.mrb[12].mxu1 %v5460_v39 }
 0x1e7   : > { %1933 = vmatprep.mubr.bf16.mxu0 %v5461_v40  ;;  %2319 = vmatprep.mubr.bf16.mxu1 %v5461_v40 }
 0x1ee   : > { %1934 = vmatmul.mubr.bf16.gmra.mrb[16].mxu0 %v5463_v41  ;;  %2320 = vmatmul.mubr.bf16.gmra.mrb[16].mxu1 %v5463_v41 }
 0x1ef   : > { %1943 = vmatprep.mubr.bf16.mxu0 %v5464_v42  ;;  %2329 = vmatprep.mubr.bf16.mxu1 %v5464_v42 }
 0x1f6   : > { %1944 = vmatmul.mubr.bf16.gmra.mrb[20].mxu0 %v5466_v43  ;;  %2330 = vmatmul.mubr.bf16.gmra.mrb[20].mxu1 %v5466_v43 }
 0x1f7   : > { %1953 = vmatprep.mubr.bf16.mxu0 %v5467_v44  ;;  %2339 = vmatprep.mubr.bf16.mxu1 %v5467_v44 }
 0x1fe   : > { %1954 = vmatmul.mubr.bf16.gmra.mrb[24].mxu0 %v5469_v45  ;;  %2340 = vmatmul.mubr.bf16.gmra.mrb[24].mxu1 %v5469_v45 }
 0x1ff   : > { %1963 = vmatprep.mubr.bf16.mxu0 %v5470_v46  ;;  %2349 = vmatprep.mubr.bf16.mxu1 %v5470_v46 }
 0x206   : > { %1964 = vmatmul.mubr.bf16.gmra.mrb[28].mxu0 %v5472_v47  ;;  %2350 = vmatmul.mubr.bf16.gmra.mrb[28].mxu1 %v5472_v47 }
 0x207   : > { %1973 = vmatprep.mubr.bf16.mxu0 %v5473_v48  ;;  %2359 = vmatprep.mubr.bf16.mxu1 %v5473_v48 }
 0x20e   : > { %1974 = vmatmul.mubr.bf16.gmra.mrb[32].mxu0 %v5475_v49  ;;  %2360 = vmatmul.mubr.bf16.gmra.mrb[32].mxu1 %v5475_v49 }
 0x20f   : > { %1983 = vmatprep.mubr.bf16.mxu0 %v5476_v50  ;;  %2369 = vmatprep.mubr.bf16.mxu1 %v5476_v50 }
 0x216   : > { %1984 = vmatmul.mubr.bf16.gmra.mrb[36].mxu0 %v5478_v51  ;;  %2370 = vmatmul.mubr.bf16.gmra.mrb[36].mxu1 %v5478_v51 }
 0x217   : > { %1993 = vmatprep.mubr.bf16.mxu0 %v5479_v52  ;;  %2379 = vmatprep.mubr.bf16.mxu1 %v5479_v52 }
 0x21e   : > { %1994 = vmatmul.mubr.bf16.gmra.mrb[40].mxu0 %v5481_v53  ;;  %2380 = vmatmul.mubr.bf16.gmra.mrb[40].mxu1 %v5481_v53 }
 0x21f   : > { %2003 = vmatprep.mubr.bf16.mxu0 %v5482_v54  ;;  %2389 = vmatprep.mubr.bf16.mxu1 %v5482_v54 }
 0x226   : > { %2004 = vmatmul.mubr.bf16.gmra.mrb[44].mxu0 %v5484_v55  ;;  %2390 = vmatmul.mubr.bf16.gmra.mrb[44].mxu1 %v5484_v55 }
 0x227   : > { %2013 = vmatprep.mubr.bf16.mxu0 %v5485_v56  ;;  %2399 = vmatprep.mubr.bf16.mxu1 %v5485_v56 }
 0x22e   : > { %2014 = vmatmul.mubr.bf16.gmra.mrb[48].mxu0 %v5487_v57  ;;  %2400 = vmatmul.mubr.bf16.gmra.mrb[48].mxu1 %v5487_v57 }
 0x22f   : > { %2023 = vmatprep.mubr.bf16.mxu0 %v5488_v58  ;;  %2409 = vmatprep.mubr.bf16.mxu1 %v5488_v58 }
 0x236   : > { %2024 = vmatmul.mubr.bf16.gmra.mrb[52].mxu0 %v5490_v59  ;;  %2410 = vmatmul.mubr.bf16.gmra.mrb[52].mxu1 %v5490_v59 }
 0x237   : > { %2033 = vmatprep.mubr.bf16.mxu0 %v5491_v60  ;;  %2419 = vmatprep.mubr.bf16.mxu1 %v5491_v60 }
 0x23e   : > { %2034 = vmatmul.mubr.bf16.gmra.mrb[56].mxu0 %v5493_v61  ;;  %2420 = vmatmul.mubr.bf16.gmra.mrb[56].mxu1 %v5493_v61 }
 0x23f   : > { %2043 = vmatprep.mubr.bf16.mxu0 %v5494_v62  ;;  %2429 = vmatprep.mubr.bf16.mxu1 %v5494_v62 }
 0x246   : > { %2044 = vmatmul.mubr.bf16.gmra.mrb[60].mxu0 %v5496_v63  ;;  %2430 = vmatmul.mubr.bf16.gmra.mrb[60].mxu1 %v5496_v63 }
 0x2a1   : > { %v6529_v0 = vpop.f32.mrb[0].mxu0  ;;  %v6531_v1 = vpop.f32.mrb[0].mxu1 }
 0x2a2   : > { %3209 = vrot.lane.b32.xlu1 %v6531_v1, %s7334_s26  ;;  %v2283_v2 = vpop.f32.mrb[1].mxu1  ;;  %2536 = vrot.lane.b32.xlu0 %v6529_v0, %s7334_s26  ;;  %v6538_v3 = vpop.f32.mrb[1].mxu0 }
 0x2a3   : > { %v6540_v4 = vpop.f32.mrb[2].mxu0  ;;  %v6542_v5 = vpop.f32.mrb[2].mxu1 }
 0x2a4   : > { %v6544_v6 = vpop.f32.mrb[3].mxu0  ;;  %v2287_v7 = vpop.f32.mrb[3].mxu1 }
 0x2a5   : > { %v4755_v8 = vpack.c.bf16 %v2287_v7, %v2283_v2 }
 0x2a6   : > { %2856 = vrot.lane.b32.xlu0 %v6538_v3, %s7334_s26  ;;  %2858 = vrot.lane.b32.xlu1 %v6544_v6, %s7334_s26 }
 0x2a7   : > { %4756 = vst [vmem:[%s6552_s0] sm:$0xff] %v4755_v8  }
 0x2a9   : > { %v6555_v9 = vpop.f32.mrb[4].mxu0  ;;  %v6557_v10 = vpop.f32.mrb[4].mxu1 }
 0x2aa   : > { %v2293_v11 = vpop.f32.mrb[5].mxu1  ;;  %2538 = vrot.lane.b32.xlu0 %v6540_v4, %s7334_s26  ;;  %2540 = vrot.lane.b32.xlu1 %v6555_v9, %s7334_s26  ;;  %v6563_v12 = vpop.f32.mrb[5].mxu0 }
 0x2ab   : > { %v6565_v13 = vpop.f32.mrb[6].mxu0  ;;  %v6567_v14 = vpop.f32.mrb[6].mxu1 }
 0x2ac   : > { %v6569_v15 = vpop.f32.mrb[7].mxu0  ;;  %v2297_v16 = vpop.f32.mrb[7].mxu1 }
 0x2ad   : > { %v4760_v17 = vpack.c.bf16 %v2297_v16, %v2293_v11 }
 0x2ae   : > { %3211 = vrot.lane.b32.xlu0 %v6542_v5, %s7334_s26  ;;  %3213 = vrot.lane.b32.xlu1 %v6557_v10, %s7334_s26 }
 0x2af   : > { %4878 = vst [vmem:[%s6552_s0 + $0x8] sm:$0xff] %v4760_v17  }
 0x2b1   : > { %v6576_v18 = vpop.f32.mrb[8].mxu0  ;;  %v6578_v19 = vpop.f32.mrb[8].mxu1 }
 0x2b2   : > { %v2303_v20 = vpop.f32.mrb[9].mxu1  ;;  %2860 = vrot.lane.b32.xlu0 %v6563_v12, %s7334_s26  ;;  %2542 = vrot.lane.b32.xlu1 %v6565_v13, %s7334_s26  ;;  %v6584_v21 = vpop.f32.mrb[9].mxu0 }
 0x2b3   : > { %v6586_v22 = vpop.f32.mrb[10].mxu0  ;;  %v6588_v23 = vpop.f32.mrb[10].mxu1 }
 0x2b4   : > { %v6590_v24 = vpop.f32.mrb[11].mxu0  ;;  %v2307_v25 = vpop.f32.mrb[11].mxu1 }
 0x2b5   : > { %v4765_v26 = vpack.c.bf16 %v2307_v25, %v2303_v20 }
 0x2b6   : > { %3215 = vrot.lane.b32.xlu0 %v6567_v14, %s7334_s26  ;;  %2862 = vrot.lane.b32.xlu1 %v6569_v15, %s7334_s26 }
 0x2b7   : > { %4879 = vst [vmem:[%s6552_s0 + $0x10] sm:$0xff] %v4765_v26  }
 0x2b9   : > { %v6597_v27 = vpop.f32.mrb[12].mxu0  ;;  %v6599_v28 = vpop.f32.mrb[12].mxu1 }
 0x2ba   : > { %v2313_v29 = vpop.f32.mrb[13].mxu1  ;;  %3217 = vrot.lane.b32.xlu1 %v6578_v19, %s7334_s26  ;;  %2544 = vrot.lane.b32.xlu0 %v6576_v18, %s7334_s26  ;;  %v6605_v30 = vpop.f32.mrb[13].mxu0 }
 0x2bb   : > { %v6607_v31 = vpop.f32.mrb[14].mxu0  ;;  %v6609_v32 = vpop.f32.mrb[14].mxu1 }
 0x2bc   : > { %7394 = vst [vmem:[#allocation37_spill] sm:$0xff] %v6609_v32  ;;  %v6611_v33 = vpop.f32.mrb[15].mxu0  ;;  %v2317_v34 = vpop.f32.mrb[15].mxu1 }
 0x2bd   : > { %v4770_v35 = vpack.c.bf16 %v2317_v34, %v2313_v29 }
 0x2be   : > { %2864 = vrot.lane.b32.xlu0 %v6584_v21, %s7334_s26  ;;  %2546 = vrot.lane.b32.xlu1 %v6586_v22, %s7334_s26 }
 0x2bf   : > { %4880 = vst [vmem:[%s6552_s0 + $0x18] sm:$0xff] %v4770_v35  }
 0x2c1   : > { %v6618_v36 = vpop.f32.mrb[16].mxu0  ;;  %v6620_v37 = vpop.f32.mrb[16].mxu1 }
 0x2c2   : > { %7395 = vst [vmem:[#allocation38_spill] sm:$0xff] %v6618_v36  ;;  %7396 = vst [vmem:[#allocation39_spill] sm:$0xff] %v6620_v37  ;;  %v2323_v38 = vpop.f32.mrb[17].mxu1  ;;  %3219 = vrot.lane.b32.xlu0 %v6588_v23, %s7334_s26  ;;  %2866 = vrot.lane.b32.xlu1 %v6590_v24, %s7334_s26  ;;  %v6626_v39 = vpop.f32.mrb[17].mxu0 }
 0x2c3   : > { %7397 = vst [vmem:[#allocation40_spill] sm:$0xff] %v6626_v39  ;;  %v6628_v40 = vpop.f32.mrb[18].mxu0  ;;  %v6630_v41 = vpop.f32.mrb[18].mxu1 }
 0x2c4   : > { %7398 = vst [vmem:[#allocation41_spill] sm:$0xff] %v6628_v40  ;;  %7399 = vst [vmem:[#allocation42_spill] sm:$0xff] %v6630_v41  ;;  %v6632_v42 = vpop.f32.mrb[19].mxu0  ;;  %v2327_v43 = vpop.f32.mrb[19].mxu1 }
 0x2c5   : > { %7400 = vst [vmem:[#allocation43_spill] sm:$0xff] %v6632_v42  ;;  %v4775_v44 = vpack.c.bf16 %v2327_v43, %v2323_v38 }
 0x2c6   : > { %3221 = vrot.lane.b32.xlu1 %v6599_v28, %s7334_s26  ;;  %2548 = vrot.lane.b32.xlu0 %v6597_v27, %s7334_s26 }
 0x2c7   : > { %4881 = vst [vmem:[%s6552_s0 + $0x20] sm:$0xff] %v4775_v44  }
 0x2c9   : > { %v6639_v45 = vpop.f32.mrb[20].mxu0  ;;  %v6641_v46 = vpop.f32.mrb[20].mxu1 }
 0x2ca   : > { %7401 = vst [vmem:[#allocation44_spill] sm:$0xff] %v6639_v45  ;;  %7402 = vst [vmem:[#allocation45_spill] sm:$0xff] %v6641_v46  ;;  %v2333_v47 = vpop.f32.mrb[21].mxu1  ;;  %2868 = vrot.lane.b32.xlu0 %v6605_v30, %s7334_s26  ;;  %2550 = vrot.lane.b32.xlu1 %v6607_v31, %s7334_s26  ;;  %v6647_v48 = vpop.f32.mrb[21].mxu0 }
 0x2cb   : > { %7403 = vst [vmem:[#allocation46_spill] sm:$0xff] %v6647_v48  ;;  %v6649_v49 = vpop.f32.mrb[22].mxu0  ;;  %v6651_v50 = vpop.f32.mrb[22].mxu1 }
 0x2cc   : > { %7404 = vst [vmem:[#allocation47_spill] sm:$0xff] %v6649_v49  ;;  %7405 = vst [vmem:[#allocation48_spill] sm:$0xff] %v6651_v50  ;;  %v6653_v51 = vpop.f32.mrb[23].mxu0  ;;  %v2337_v52 = vpop.f32.mrb[23].mxu1 }
 0x2cd   : > { %7406 = vst [vmem:[#allocation49_spill] sm:$0xff] %v6653_v51  ;;  %v4780_v53 = vpack.c.bf16 %v2337_v52, %v2333_v47 }
 0x2ce   : > { %3223 = vrot.lane.b32.xlu0 %v6609_v32, %s7334_s26  ;;  %2870 = vrot.lane.b32.xlu1 %v6611_v33, %s7334_s26 }
 0x2cf   : > { %4882 = vst [vmem:[%s6552_s0 + $0x28] sm:$0xff] %v4780_v53  }
 0x2d1   : > { %v6660_v54 = vpop.f32.mrb[24].mxu0  ;;  %v6662_v55 = vpop.f32.mrb[24].mxu1 }
 0x2d2   : > { %7407 = vst [vmem:[#allocation50_spill] sm:$0xff] %v6660_v54  ;;  %7408 = vst [vmem:[#allocation51_spill] sm:$0xff] %v6662_v55  ;;  %v2343_v56 = vpop.f32.mrb[25].mxu1  ;;  %3225 = vrot.lane.b32.xlu1 %v6620_v37, %s7334_s26  ;;  %2552 = vrot.lane.b32.xlu0 %v6618_v36, %s7334_s26  ;;  %v6668_v57 = vpop.f32.mrb[25].mxu0 }
 0x2d3   : > { %7409 = vst [vmem:[#allocation52_spill] sm:$0xff] %v6668_v57  ;;  %v6670_v58 = vpop.f32.mrb[26].mxu0  ;;  %v6672_v59 = vpop.f32.mrb[26].mxu1 }
 0x2d4   : > { %7410 = vst [vmem:[#allocation53_spill] sm:$0xff] %v6670_v58  ;;  %7411 = vst [vmem:[#allocation54_spill] sm:$0xff] %v6672_v59  ;;  %v6674_v60 = vpop.f32.mrb[27].mxu0  ;;  %v2347_v61 = vpop.f32.mrb[27].mxu1 }
 0x2d5   : > { %7412 = vst [vmem:[#allocation55_spill] sm:$0xff] %v6674_v60  ;;  %v4785_v62 = vpack.c.bf16 %v2347_v61, %v2343_v56 }
 0x2d6   : > { %2872 = vrot.lane.b32.xlu0 %v6626_v39, %s7334_s26  ;;  %2554 = vrot.lane.b32.xlu1 %v6628_v40, %s7334_s26 }
 0x2d7   : > { %4883 = vst [vmem:[%s6552_s0 + $0x30] sm:$0xff] %v4785_v62  }
 0x2d9   : > { %v6681_v63 = vpop.f32.mrb[28].mxu0  ;;  %v6683_v2 = vpop.f32.mrb[28].mxu1 }
 0x2da   : > { %7413 = vst [vmem:[#allocation56_spill] sm:$0xff] %v6681_v63  ;;  %7414 = vst [vmem:[#allocation57_spill] sm:$0xff] %v6683_v2  ;;  %v2353_v7 = vpop.f32.mrb[29].mxu1  ;;  %3227 = vrot.lane.b32.xlu0 %v6630_v41, %s7334_s26  ;;  %2874 = vrot.lane.b32.xlu1 %v6632_v42, %s7334_s26  ;;  %v6689_v8 = vpop.f32.mrb[29].mxu0 }
 0x2db   : > { %7415 = vst [vmem:[#allocation58_spill] sm:$0xff] %v6689_v8  ;;  %v6691_v11 = vpop.f32.mrb[30].mxu0  ;;  %v6693_v16 = vpop.f32.mrb[30].mxu1 }
 0x2dc   : > { %7416 = vst [vmem:[#allocation59_spill] sm:$0xff] %v6691_v11  ;;  %7417 = vst [vmem:[#allocation60_spill] sm:$0xff] %v6693_v16  ;;  %v6695_v17 = vpop.f32.mrb[31].mxu0  ;;  %v2357_v20 = vpop.f32.mrb[31].mxu1 }
 0x2dd   : > { %7418 = vst [vmem:[#allocation61_spill] sm:$0xff] %v6695_v17  ;;  %v4790_v25 = vpack.c.bf16 %v2357_v20, %v2353_v7 }
 0x2de   : > { %3229 = vrot.lane.b32.xlu1 %v6641_v46, %s7334_s26  ;;  %2556 = vrot.lane.b32.xlu0 %v6639_v45, %s7334_s26 }
 0x2df   : > { %4884 = vst [vmem:[%s6552_s0 + $0x38] sm:$0xff] %v4790_v25  }
 0x2e1   : > { %v6702_v26 = vpop.f32.mrb[32].mxu0  ;;  %v6704_v29 = vpop.f32.mrb[32].mxu1 }
 0x2e2   : > { %7419 = vst [vmem:[#allocation62_spill] sm:$0xff] %v6702_v26  ;;  %7420 = vst [vmem:[#allocation63_spill] sm:$0xff] %v6704_v29  ;;  %v2363_v34 = vpop.f32.mrb[33].mxu1  ;;  %2876 = vrot.lane.b32.xlu0 %v6647_v48, %s7334_s26  ;;  %2558 = vrot.lane.b32.xlu1 %v6649_v49, %s7334_s26  ;;  %v6710_v35 = vpop.f32.mrb[33].mxu0 }
 0x2e3   : > { %7421 = vst [vmem:[#allocation64_spill] sm:$0xff] %v6710_v35  ;;  %v6712_v38 = vpop.f32.mrb[34].mxu0  ;;  %v6714_v43 = vpop.f32.mrb[34].mxu1 }
 0x2e4   : > { %7422 = vst [vmem:[#allocation65_spill] sm:$0xff] %v6712_v38  ;;  %7423 = vst [vmem:[#allocation66_spill] sm:$0xff] %v6714_v43  ;;  %v6716_v44 = vpop.f32.mrb[35].mxu0  ;;  %v2367_v47 = vpop.f32.mrb[35].mxu1 }
 0x2e5   : > { %7424 = vst [vmem:[#allocation67_spill] sm:$0xff] %v6716_v44  ;;  %v4795_v52 = vpack.c.bf16 %v2367_v47, %v2363_v34 }
 0x2e6   : > { %3231 = vrot.lane.b32.xlu0 %v6651_v50, %s7334_s26  ;;  %2878 = vrot.lane.b32.xlu1 %v6653_v51, %s7334_s26 }
 0x2e7   : > { %4885 = vst [vmem:[%s6552_s0 + $0x40] sm:$0xff] %v4795_v52  }
 0x2e9   : > { %v6723_v53 = vpop.f32.mrb[36].mxu0  ;;  %v6725_v56 = vpop.f32.mrb[36].mxu1 }
 0x2ea   : > { %7425 = vst [vmem:[#allocation68_spill] sm:$0xff] %v6723_v53  ;;  %7426 = vst [vmem:[#allocation69_spill] sm:$0xff] %v6725_v56  ;;  %v2373_v61 = vpop.f32.mrb[37].mxu1  ;;  %3233 = vrot.lane.b32.xlu1 %v6662_v55, %s7334_s26  ;;  %2560 = vrot.lane.b32.xlu0 %v6660_v54, %s7334_s26  ;;  %v6731_v62 = vpop.f32.mrb[37].mxu0 }
 0x2eb   : > { %7427 = vst [vmem:[#allocation70_spill] sm:$0xff] %v6731_v62  ;;  %v6733_v7 = vpop.f32.mrb[38].mxu0  ;;  %v6735_v20 = vpop.f32.mrb[38].mxu1 }
 0x2ec   : > { %7428 = vst [vmem:[#allocation71_spill] sm:$0xff] %v6733_v7  ;;  %7429 = vst [vmem:[#allocation72_spill] sm:$0xff] %v6735_v20  ;;  %v6737_v25 = vpop.f32.mrb[39].mxu0  ;;  %v2377_v34 = vpop.f32.mrb[39].mxu1 }
 0x2ed   : > { %7430 = vst [vmem:[#allocation73_spill] sm:$0xff] %v6737_v25  ;;  %v4800_v47 = vpack.c.bf16 %v2377_v34, %v2373_v61 }
 0x2ee   : > { %2880 = vrot.lane.b32.xlu0 %v6668_v57, %s7334_s26  ;;  %2562 = vrot.lane.b32.xlu1 %v6670_v58, %s7334_s26 }
 0x2ef   : > { %4886 = vst [vmem:[%s6552_s0 + $0x48] sm:$0xff] %v4800_v47  }
 0x2f1   : > { %v6744_v52 = vpop.f32.mrb[40].mxu0  ;;  %v6746_v55 = vpop.f32.mrb[40].mxu1 }
 0x2f2   : > { %7431 = vst [vmem:[#allocation74_spill] sm:$0xff] %v6744_v52  ;;  %7432 = vst [vmem:[#allocation75_spill] sm:$0xff] %v6746_v55  ;;  %v2383_v54 = vpop.f32.mrb[41].mxu1  ;;  %3235 = vrot.lane.b32.xlu0 %v6672_v59, %s7334_s26  ;;  %2882 = vrot.lane.b32.xlu1 %v6674_v60, %s7334_s26  ;;  %v6752_v61 = vpop.f32.mrb[41].mxu0 }
 0x2f3   : > { %v6754_v34 = vpop.f32.mrb[42].mxu0  ;;  %v6756_v57 = vpop.f32.mrb[42].mxu1 }
 0x2f4   : > { %v6758_v50 = vpop.f32.mrb[43].mxu0  ;;  %v2387_v47 = vpop.f32.mrb[43].mxu1 }
 0x2f5   : > { %v4805_v58 = vpack.c.bf16 %v2387_v47, %v2383_v54 }
 0x2f6   : > { %3237 = vrot.lane.b32.xlu1 %v6683_v2, %s7334_s26  ;;  %2564 = vrot.lane.b32.xlu0 %v6681_v63, %s7334_s26 }
 0x2f7   : > { %4887 = vst [vmem:[%s6552_s0 + $0x50] sm:$0xff] %v4805_v58  }
 0x2f9   : > { %v6765_v59 = vpop.f32.mrb[44].mxu0  ;;  %v6767_v60 = vpop.f32.mrb[44].mxu1 }
 0x2fa   : > { %v2393_v46 = vpop.f32.mrb[45].mxu1  ;;  %2884 = vrot.lane.b32.xlu0 %v6689_v8, %s7334_s26  ;;  %2566 = vrot.lane.b32.xlu1 %v6691_v11, %s7334_s26  ;;  %v6773_v54 = vpop.f32.mrb[45].mxu0 }
 0x2fb   : > { %v6775_v47 = vpop.f32.mrb[46].mxu0  ;;  %v6777_v2 = vpop.f32.mrb[46].mxu1 }
 0x2fc   : > { %v6779_v51 = vpop.f32.mrb[47].mxu0  ;;  %v2397_v58 = vpop.f32.mrb[47].mxu1 }
 0x2fd   : > { %v4810_v63 = vpack.c.bf16 %v2397_v58, %v2393_v46 }
 0x2fe   : > { %3239 = vrot.lane.b32.xlu0 %v6693_v16, %s7334_s26  ;;  %2886 = vrot.lane.b32.xlu1 %v6695_v17, %s7334_s26 }
 0x2ff   : > { %4888 = vst [vmem:[%s6552_s0 + $0x58] sm:$0xff] %v4810_v63  }
 0x301   : > { %v6786_v8 = vpop.f32.mrb[48].mxu0  ;;  %v6788_v11 = vpop.f32.mrb[48].mxu1 }
 0x302   : > { %v2403_v48 = vpop.f32.mrb[49].mxu1  ;;  %3241 = vrot.lane.b32.xlu1 %v6704_v29, %s7334_s26  ;;  %2568 = vrot.lane.b32.xlu0 %v6702_v26, %s7334_s26  ;;  %v6794_v46 = vpop.f32.mrb[49].mxu0 }
 0x303   : > { %v6796_v58 = vpop.f32.mrb[50].mxu0  ;;  %v6798_v16 = vpop.f32.mrb[50].mxu1 }
 0x304   : > { %v6800_v49 = vpop.f32.mrb[51].mxu0  ;;  %v2407_v63 = vpop.f32.mrb[51].mxu1 }
 0x305   : > { %v4815_v17 = vpack.c.bf16 %v2407_v63, %v2403_v48 }
 0x306   : > { %2888 = vrot.lane.b32.xlu0 %v6710_v35, %s7334_s26  ;;  %2570 = vrot.lane.b32.xlu1 %v6712_v38, %s7334_s26 }
 0x307   : > { %4889 = vst [vmem:[%s6552_s0 + $0x60] sm:$0xff] %v4815_v17  }
 0x309   : > { %v6807_v29 = vpop.f32.mrb[52].mxu0  ;;  %v6809_v26 = vpop.f32.mrb[52].mxu1 }
 0x30a   : > { %v2413_v45 = vpop.f32.mrb[53].mxu1  ;;  %3243 = vrot.lane.b32.xlu0 %v6714_v43, %s7334_s26  ;;  %2890 = vrot.lane.b32.xlu1 %v6716_v44, %s7334_s26  ;;  %v6815_v48 = vpop.f32.mrb[53].mxu0 }
 0x30b   : > { %7433 = vst [vmem:[#allocation76_spill] sm:$0xff] %v6815_v48  ;;  %v6817_v63 = vpop.f32.mrb[54].mxu0  ;;  %v6819_v35 = vpop.f32.mrb[54].mxu1 }
 0x30c   : > { %7434 = vst [vmem:[#allocation77_spill] sm:$0xff] %v6817_v63  ;;  %7435 = vst [vmem:[#allocation78_spill] sm:$0xff] %v6819_v35  ;;  %v6821_v41 = vpop.f32.mrb[55].mxu0  ;;  %v2417_v17 = vpop.f32.mrb[55].mxu1  ;;  %v3273_v63 = vld [vmem:[#allocation11] sm:$0xff] }
 0x30d   : > { %7436 = vst [vmem:[#allocation79_spill] sm:$0xff] %v6821_v41  ;;  %v4820_v38 = vpack.c.bf16 %v2417_v17, %v2413_v45 }
 0x30e   : > { %3245 = vrot.lane.b32.xlu1 %v6725_v56, %s7334_s26  ;;  %2572 = vrot.lane.b32.xlu0 %v6723_v53, %s7334_s26 }
 0x30f   : > { %4890 = vst [vmem:[%s6552_s0 + $0x68] sm:$0xff] %v4820_v38  }
 0x311   : > { %v6828_v43 = vpop.f32.mrb[56].mxu0  ;;  %v6830_v44 = vpop.f32.mrb[56].mxu1 }
 0x312   : > { %7437 = vst [vmem:[#allocation80_spill] sm:$0xff] %v6828_v43  ;;  %7438 = vst [vmem:[#allocation81_spill] sm:$0xff] %v6830_v44  ;;  %v2423_v37 = vpop.f32.mrb[57].mxu1  ;;  %2892 = vrot.lane.b32.xlu0 %v6731_v62, %s7334_s26  ;;  %2574 = vrot.lane.b32.xlu1 %v6733_v7, %s7334_s26  ;;  %v6836_v45 = vpop.f32.mrb[57].mxu0  ;;  %v2441_v44 = vld [vmem:[#allocation7 + $0x8] sm:$0xff]  ;;  %v2440_v7 = vld [vmem:[#allocation7] sm:$0xff] }
 0x313   : > { %7439 = vst [vmem:[#allocation82_spill] sm:$0xff] %v6836_v45  ;;  %v6838_v17 = vpop.f32.mrb[58].mxu0  ;;  %v6840_v56 = vpop.f32.mrb[58].mxu1  ;;  %v2473_v62 = vld [vmem:[#allocation8 + $0x8] sm:$0xff]  ;;  %v2472_v45 = vld [vmem:[#allocation8] sm:$0xff] }
 0x314   : > { %7440 = vst [vmem:[#allocation83_spill] sm:$0xff] %v6838_v17  ;;  %7441 = vst [vmem:[#allocation84_spill] sm:$0xff] %v6840_v56  ;;  %v3210_v53 = vpop.permute.xlu1 %3209  ;;  %v2427_v38 = vpop.f32.mrb[59].mxu1  ;;  %v2825_v56 = vmul.f32 %v2441_v44, %v6544_v6 }
 0x315   : > { %v4825_v42 = vpack.c.bf16 %v2427_v38, %v2423_v37  ;;  %v2537_v39 = vpop.permute.xlu0 %2536  ;;  %v6842_v43 = vpop.f32.mrb[59].mxu0 }
 0x316   : > { %7442 = vst [vmem:[#allocation85_spill] sm:$0xff] %v6842_v43  ;;  %3247 = vrot.lane.b32.xlu0 %v6735_v20, %s7334_s26  ;;  %2894 = vrot.lane.b32.xlu1 %v6737_v25, %s7334_s26  ;;  %v2824_v43 = vmul.f32 %v2440_v7, %v6538_v3 }
 0x317   : > { %4891 = vst [vmem:[%s6552_s0 + $0x70] sm:$0xff] %v4825_v42  }
 0x318   : > { %v2859_v17 = vpop.permute.xlu1 %2858 }
 0x319   : > { %v2857_v40 = vpop.permute.xlu0 %2856  ;;  %v2921_v37 = vmul.f32 %v2859_v17, %v2473_v62  ;;  %v6850_v38 = vpop.f32.mrb[60].mxu0  ;;  %v2600_v17 = vmul.f32 %v2537_v39, %v2472_v45  ;;  %v3305_v39 = vmul.f32 %v3273_v63, %v3210_v53 }
 0x31a   : > { %7443 = vst [vmem:[#allocation86_spill] sm:$0xff] %v6850_v38  ;;  %v2920_v36 = vmul.f32 %v2857_v40, %v2472_v45  ;;  %v6854_v41 = vpop.f32.mrb[60].mxu1  ;;  %3249 = vrot.lane.b32.xlu1 %v6746_v55, %s7334_s26  ;;  %2576 = vrot.lane.b32.xlu0 %v6744_v52, %s7334_s26  ;;  %v6860_v42 = vpop.f32.mrb[61].mxu0  ;;  %v2504_v40 = vmul.f32 %v2440_v7, %v6529_v0  ;;  %v3145_v52 = vld [vmem:[#allocation10] sm:$0xff]  ;;  %v3274_v0 = vld [vmem:[#allocation11 + $0x8] sm:$0xff]  ;;  %v2443_v45 = vld [vmem:[#allocation7 + $0x18] sm:$0xff] }
 0x31b   : > { %7444 = vst [vmem:[#allocation87_spill] sm:$0xff] %v6854_v41  ;;  %7445 = vst [vmem:[#allocation88_spill] sm:$0xff] %v6860_v42  ;;  %v2953_v6 = vadd.f32 %v2921_v37, %v2825_v56  ;;  %v2433_v20 = vpop.f32.mrb[61].mxu1  ;;  %v6862_v25 = vpop.f32.mrb[62].mxu0  ;;  %v2505_v41 = vmul.f32 %v2441_v44, %v6540_v4 }
 0x31c   : > { %v2952_v38 = vadd.f32 %v2920_v36, %v2824_v43  ;;  %v6864_v35 = vpop.f32.mrb[62].mxu1  ;;  %v2541_v3 = vpop.permute.xlu1 %2540  ;;  %v3146_v36 = vld [vmem:[#allocation10 + $0x8] sm:$0xff]  ;;  %v2632_v4 = vadd.f32 %v2600_v17, %v2504_v40  ;;  %v2474_v43 = vld [vmem:[#allocation8 + $0x10] sm:$0xff] }
 0x31d   : > { %7446 = vst [vmem:[#allocation89_spill] sm:$0xff] %v6864_v35  ;;  %v2437_v55 = vpop.f32.mrb[63].mxu1  ;;  %v2539_v48 = vpop.permute.xlu0 %2538  ;;  %v2602_v53 = vmul.f32 %v2541_v3, %v2474_v43  ;;  %v3147_v3 = vld [vmem:[#allocation10 + $0x10] sm:$0xff] }
 0x31e   : > { %v4595_v32 = vpack.c.bf16 %v2953_v6, %v2952_v38  ;;  %v4830_v42 = vpack.c.bf16 %v2437_v55, %v2433_v20  ;;  %v2601_v56 = vmul.f32 %v2539_v48, %v2473_v62  ;;  %v6868_v37 = vpop.f32.mrb[63].mxu0  ;;  %2896 = vrot.lane.b32.xlu0 %v6752_v61, %s7334_s26  ;;  %2578 = vrot.lane.b32.xlu1 %v6754_v34, %s7334_s26  ;;  %v2442_v48 = vld [vmem:[#allocation7 + $0x10] sm:$0xff] }
 0x31f   : > { %v3177_v62 = vmul.f32 %v3145_v52, %v6531_v1  ;;  %v3178_v20 = vmul.f32 %v3146_v36, %v6542_v5  ;;  %v2506_v52 = vmul.f32 %v2442_v48, %v6555_v9  ;;  %v2507_v5 = vmul.f32 %v2443_v45, %v6565_v13  ;;  %v3148_v36 = vld [vmem:[#allocation10 + $0x18] sm:$0xff] }
 0x320   : > { %4847 = vst [vmem:[%s6874_s6 + $0x80] sm:$0xff] %v4595_v32   ;;  %4892 = vst [vmem:[%s6552_s0 + $0x78] sm:$0xff] %v4830_v42   ;;  %v2633_v55 = vadd.f32 %v2601_v56, %v2505_v41  ;;  %v3214_v44 = vpop.permute.xlu1 %3213  ;;  %v2475_v32 = vld [vmem:[#allocation8 + $0x18] sm:$0xff]  ;;  %v3275_v42 = vld [vmem:[#allocation11 + $0x10] sm:$0xff] }
 0x321   : > { %v3212_v7 = vpop.permute.xlu0 %3211  ;;  %v3337_v41 = vadd.f32 %v3305_v39, %v3177_v62  ;;  %v3307_v9 = vmul.f32 %v3275_v42, %v3214_v44  ;;  %v2826_v62 = vmul.f32 %v2442_v48, %v6563_v12 }
 0x322   : > { %v4515_v38 = vpack.c.bf16 %v2633_v55, %v2632_v4  ;;  %v3306_v6 = vmul.f32 %v3274_v0, %v3212_v7  ;;  %3251 = vrot.lane.b32.xlu0 %v6756_v57, %s7334_s26  ;;  %2898 = vrot.lane.b32.xlu1 %v6758_v50, %s7334_s26  ;;  %v2634_v0 = vadd.f32 %v2602_v53, %v2506_v52  ;;  %v3276_v55 = vld [vmem:[#allocation11 + $0x18] sm:$0xff] }
 0x323   : > { %v2827_v7 = vmul.f32 %v2443_v45, %v6569_v15  ;;  %v3179_v53 = vmul.f32 %v3147_v3, %v6557_v10  ;;  %v3277_v3 = vld [vmem:[#allocation11 + $0x20] sm:$0xff] }
 0x324   : > { %4516 = vst [vmem:[%s6874_s6] sm:$0xff] %v4515_v38   ;;  %v3338_v63 = vadd.f32 %v3306_v6, %v3178_v20  ;;  %v2543_v1 = vpop.permute.xlu1 %2542 }
 0x325   : > { %v2861_v17 = vpop.permute.xlu0 %2860  ;;  %v2603_v40 = vmul.f32 %v2543_v1, %v2475_v32  ;;  %v3339_v15 = vadd.f32 %v3307_v9, %v3179_v53  ;;  %v2444_v1 = vld [vmem:[#allocation7 + $0x20] sm:$0xff] }
 0x326   : > { %v4675_v56 = vpack.c.bf16 %v3338_v63, %v3337_v41  ;;  %3253 = vrot.lane.b32.xlu1 %v6767_v60, %s7334_s26  ;;  %2580 = vrot.lane.b32.xlu0 %v6765_v59, %s7334_s26  ;;  %v2922_v39 = vmul.f32 %v2861_v17, %v2474_v43  ;;  %v3180_v43 = vmul.f32 %v3148_v36, %v6567_v14  ;;  %v2445_v14 = vld [vmem:[#allocation7 + $0x28] sm:$0xff] }
 0x327   : > { %v2635_v4 = vadd.f32 %v2603_v40, %v2507_v5  ;;  %v2477_v5 = vld [vmem:[#allocation8 + $0x28] sm:$0xff]  ;;  %v2508_v40 = vmul.f32 %v2444_v1, %v6576_v18 }
 0x328   : > { %4676 = vst [vmem:[%s6893_s27] sm:$0xff] %v4675_v56   ;;  %v2863_v13 = vpop.permute.xlu1 %2862  ;;  %v2954_v44 = vadd.f32 %v2922_v39, %v2826_v62  ;;  %v2509_v56 = vmul.f32 %v2445_v14, %v6586_v22  ;;  %v3149_v39 = vld [vmem:[#allocation10 + $0x20] sm:$0xff]  ;;  %v3278_v62 = vld [vmem:[#allocation11 + $0x28] sm:$0xff]  ;;  %v2828_v22 = vmul.f32 %v2444_v1, %v6584_v21  ;;  %v2479_v1 = vld [vmem:[#allocation8 + $0x38] sm:$0xff] }
 0x329   : > { %v4520_v20 = vpack.c.bf16 %v2635_v4, %v2634_v0  ;;  %v3216_v38 = vpop.permute.xlu0 %3215  ;;  %v2923_v6 = vmul.f32 %v2863_v13, %v2475_v32  ;;  %v2476_v32 = vld [vmem:[#allocation8 + $0x20] sm:$0xff]  ;;  %v3150_v4 = vld [vmem:[#allocation10 + $0x28] sm:$0xff] }
 0x32a   : > { %v3308_v41 = vmul.f32 %v3276_v55, %v3216_v38  ;;  %2900 = vrot.lane.b32.xlu0 %v6773_v54, %s7334_s26  ;;  %2582 = vrot.lane.b32.xlu1 %v6775_v47, %s7334_s26 }
 0x32b   : > { %4832 = vst [vmem:[%s6874_s6 + $0x8] sm:$0xff] %v4520_v20   ;;  %v2955_v12 = vadd.f32 %v2923_v6, %v2827_v7  ;;  %v2829_v20 = vmul.f32 %v2445_v14, %v6590_v24 }
 0x32c   : > { %v3340_v48 = vadd.f32 %v3308_v41, %v3180_v43  ;;  %v3218_v45 = vpop.permute.xlu1 %3217  ;;  %v3181_v43 = vmul.f32 %v3149_v39, %v6578_v19  ;;  %v3182_v41 = vmul.f32 %v3150_v4, %v6588_v23  ;;  %v2447_v23 = vld [vmem:[#allocation7 + $0x38] sm:$0xff] }
 0x32d   : > { %v4600_v63 = vpack.c.bf16 %v2955_v12, %v2954_v44  ;;  %v2545_v10 = vpop.permute.xlu0 %2544  ;;  %v3309_v7 = vmul.f32 %v3277_v3, %v3218_v45  ;;  %v2478_v45 = vld [vmem:[#allocation8 + $0x30] sm:$0xff] }
 0x32e   : > { %v4680_v52 = vpack.c.bf16 %v3340_v48, %v3339_v15  ;;  %3255 = vrot.lane.b32.xlu0 %v6777_v2, %s7334_s26  ;;  %2902 = vrot.lane.b32.xlu1 %v6779_v51, %s7334_s26  ;;  %v2604_v42 = vmul.f32 %v2545_v10, %v2476_v32  ;;  %v3151_v3 = vld [vmem:[#allocation10 + $0x30] sm:$0xff] }
 0x32f   : > { %4848 = vst [vmem:[%s6874_s6 + $0x88] sm:$0xff] %v4600_v63   ;;  %v3341_v24 = vadd.f32 %v3309_v7, %v3181_v43  ;;  %v2446_v63 = vld [vmem:[#allocation7 + $0x30] sm:$0xff]  ;;  %v7449_v43 = vld [vmem:[#allocation77_spill] sm:$0xff] }
 0x330   : > { %4863 = vst [vmem:[%s6893_s27 + $0x8] sm:$0xff] %v4680_v52   ;;  %v2547_v17 = vpop.permute.xlu1 %2546  ;;  %v2636_v55 = vadd.f32 %v2604_v42, %v2508_v40  ;;  %v2511_v42 = vmul.f32 %v2447_v23, %v6607_v31  ;;  %v2830_v31 = vmul.f32 %v2446_v63, %v6605_v30 }
 0x331   : > { %v2865_v36 = vpop.permute.xlu0 %2864  ;;  %v2605_v0 = vmul.f32 %v2547_v17, %v2477_v5  ;;  %v3279_v17 = vld [vmem:[#allocation11 + $0x30] sm:$0xff] }
 0x332   : > { %3257 = vrot.lane.b32.xlu1 %v6788_v11, %s7334_s26  ;;  %2584 = vrot.lane.b32.xlu0 %v6786_v8, %s7334_s26  ;;  %v2924_v9 = vmul.f32 %v2865_v36, %v2476_v32  ;;  %v3152_v36 = vld [vmem:[#allocation10 + $0x38] sm:$0xff] }
 0x333   : > { %v2637_v13 = vadd.f32 %v2605_v0, %v2509_v56 }
 0x334   : > { %v2867_v18 = vpop.permute.xlu1 %2866  ;;  %v2956_v12 = vadd.f32 %v2924_v9, %v2828_v22  ;;  %v3183_v22 = vmul.f32 %v3151_v3, %v6599_v28  ;;  %v7455_v3 = vld [vmem:[#allocation80_spill] sm:$0xff] }
 0x335   : > { %v4525_v38 = vpack.c.bf16 %v2637_v13, %v2636_v55  ;;  %v3220_v6 = vpop.permute.xlu0 %3219  ;;  %v2925_v53 = vmul.f32 %v2867_v18, %v2477_v5  ;;  %v2510_v5 = vmul.f32 %v2446_v63, %v6597_v27  ;;  %v3280_v55 = vld [vmem:[#allocation11 + $0x38] sm:$0xff]  ;;  %v2831_v13 = vmul.f32 %v2447_v23, %v6611_v33  ;;  %v2481_v63 = vld [vmem:[#allocation8 + $0x48] sm:$0xff] }
 0x336   : > { %v3310_v44 = vmul.f32 %v3278_v62, %v3220_v6  ;;  %2904 = vrot.lane.b32.xlu0 %v6794_v46, %s7334_s26  ;;  %2586 = vrot.lane.b32.xlu1 %v6796_v58, %s7334_s26 }
 0x337   : > { %4833 = vst [vmem:[%s6874_s6 + $0x10] sm:$0xff] %v4525_v38   ;;  %v2957_v21 = vadd.f32 %v2925_v53, %v2829_v20  ;;  %v7447_v20 = vld [vmem:[#allocation37_spill] sm:$0xff]  ;;  %v7448_v53 = vld [vmem:[#allocation76_spill] sm:$0xff] }
 0x338   : > { %v3342_v15 = vadd.f32 %v3310_v44, %v3182_v41  ;;  %v3222_v48 = vpop.permute.xlu1 %3221  ;;  %v3184_v38 = vmul.f32 %v3152_v36, %v7447_v20  ;;  %v3153_v36 = vld [vmem:[#allocation10 + $0x40] sm:$0xff] }
 0x339   : > { %v4605_v32 = vpack.c.bf16 %v2957_v21, %v2956_v12  ;;  %v2549_v19 = vpop.permute.xlu0 %2548  ;;  %v3311_v9 = vmul.f32 %v3279_v17, %v3222_v48  ;;  %v2480_v21 = vld [vmem:[#allocation8 + $0x40] sm:$0xff]  ;;  %v2449_v48 = vld [vmem:[#allocation7 + $0x48] sm:$0xff] }
 0x33a   : > { %v4685_v10 = vpack.c.bf16 %v3342_v15, %v3341_v24  ;;  %3259 = vrot.lane.b32.xlu0 %v6798_v16, %s7334_s26  ;;  %2906 = vrot.lane.b32.xlu1 %v6800_v49, %s7334_s26  ;;  %v2606_v14 = vmul.f32 %v2549_v19, %v2478_v45  ;;  %v2448_v15 = vld [vmem:[#allocation7 + $0x40] sm:$0xff]  ;;  %v7451_v19 = vld [vmem:[#allocation79_spill] sm:$0xff] }
 0x33b   : > { %4849 = vst [vmem:[%s6874_s6 + $0x90] sm:$0xff] %v4605_v32   ;;  %v3343_v33 = vadd.f32 %v3311_v9, %v3183_v22  ;;  %v7450_v32 = vld [vmem:[#allocation78_spill] sm:$0xff] }
 0x33c   : > { %4864 = vst [vmem:[%s6893_s27 + $0x10] sm:$0xff] %v4685_v10   ;;  %v2551_v52 = vpop.permute.xlu1 %2550  ;;  %v2638_v0 = vadd.f32 %v2606_v14, %v2510_v5  ;;  %v3282_v9 = vld [vmem:[#allocation11 + $0x48] sm:$0xff] }
 0x33d   : > { %v2869_v40 = vpop.permute.xlu0 %2868  ;;  %v2607_v56 = vmul.f32 %v2551_v52, %v2479_v1  ;;  %v7453_v52 = vld [vmem:[#allocation41_spill] sm:$0xff] }
 0x33e   : > { %3261 = vrot.lane.b32.xlu1 %v6809_v26, %s7334_s26  ;;  %2588 = vrot.lane.b32.xlu0 %v6807_v29, %s7334_s26  ;;  %v2926_v39 = vmul.f32 %v2869_v40, %v2478_v45  ;;  %v2513_v5 = vmul.f32 %v2449_v48, %v7453_v52 }
 0x33f   : > { %v2639_v4 = vadd.f32 %v2607_v56, %v2511_v42  ;;  %v3281_v42 = vld [vmem:[#allocation11 + $0x40] sm:$0xff] }
 0x340   : > { %v2871_v27 = vpop.permute.xlu1 %2870  ;;  %v2958_v41 = vadd.f32 %v2926_v39, %v2830_v31  ;;  %v7454_v56 = vld [vmem:[#allocation81_spill] sm:$0xff] }
 0x341   : > { %v4530_v62 = vpack.c.bf16 %v2639_v4, %v2638_v0  ;;  %v3224_v7 = vpop.permute.xlu0 %3223  ;;  %v2927_v18 = vmul.f32 %v2871_v27, %v2479_v1  ;;  %v7452_v1 = vld [vmem:[#allocation38_spill] sm:$0xff] }
 0x342   : > { %v3312_v6 = vmul.f32 %v3280_v55, %v3224_v7  ;;  %2908 = vrot.lane.b32.xlu0 %v7448_v53, %s7334_s26  ;;  %2590 = vrot.lane.b32.xlu1 %v7449_v43, %s7334_s26  ;;  %v2512_v14 = vmul.f32 %v2448_v15, %v7452_v1  ;;  %v3154_v0 = vld [vmem:[#allocation10 + $0x48] sm:$0xff]  ;;  %v7457_v7 = vld [vmem:[#allocation43_spill] sm:$0xff] }
 0x343   : > { %4834 = vst [vmem:[%s6874_s6 + $0x18] sm:$0xff] %v4530_v62   ;;  %v2959_v30 = vadd.f32 %v2927_v18, %v2831_v13  ;;  %v7456_v13 = vld [vmem:[#allocation40_spill] sm:$0xff]  ;;  %v2833_v18 = vmul.f32 %v2449_v48, %v7457_v7  ;;  %v2450_v1 = vld [vmem:[#allocation7 + $0x50] sm:$0xff] }
 0x344   : > { %v3344_v44 = vadd.f32 %v3312_v6, %v3184_v38  ;;  %v3226_v12 = vpop.permute.xlu1 %3225  ;;  %v2832_v62 = vmul.f32 %v2448_v15, %v7456_v13  ;;  %v7458_v6 = vld [vmem:[#allocation39_spill] sm:$0xff] }
 0x345   : > { %v4610_v24 = vpack.c.bf16 %v2959_v30, %v2958_v41  ;;  %v2553_v28 = vpop.permute.xlu0 %2552  ;;  %v3313_v27 = vmul.f32 %v3281_v42, %v3226_v12  ;;  %v3185_v41 = vmul.f32 %v3153_v36, %v7458_v6  ;;  %v7459_v30 = vld [vmem:[#allocation42_spill] sm:$0xff]  ;;  %v7463_v42 = vld [vmem:[#allocation85_spill] sm:$0xff]  ;;  %v7466_v13 = vld [vmem:[#allocation87_spill] sm:$0xff] }
 0x346   : > { %v4690_v45 = vpack.c.bf16 %v3344_v44, %v3343_v33  ;;  %3263 = vrot.lane.b32.xlu0 %v7450_v32, %s7334_s26  ;;  %2910 = vrot.lane.b32.xlu1 %v7451_v19, %s7334_s26  ;;  %v2608_v23 = vmul.f32 %v2553_v28, %v2480_v21  ;;  %v3186_v33 = vmul.f32 %v3154_v0, %v7459_v30  ;;  %v7464_v0 = vld [vmem:[#allocation44_spill] sm:$0xff]  ;;  %v3155_v7 = vld [vmem:[#allocation10 + $0x50] sm:$0xff] }
 0x347   : > { %4850 = vst [vmem:[%s6874_s6 + $0x98] sm:$0xff] %v4610_v24   ;;  %v7460_v24 = vld [vmem:[#allocation82_spill] sm:$0xff]  ;;  %v3345_v15 = vadd.f32 %v3313_v27, %v3185_v41  ;;  %v3284_v6 = vld [vmem:[#allocation11 + $0x58] sm:$0xff] }
 0x348   : > { %4865 = vst [vmem:[%s6893_s27 + $0x18] sm:$0xff] %v4690_v45   ;;  %v2555_v10 = vpop.permute.xlu1 %2554  ;;  %v2640_v39 = vadd.f32 %v2608_v23, %v2512_v14  ;;  %v2451_v14 = vld [vmem:[#allocation7 + $0x58] sm:$0xff] }
 0x349   : > { %v2873_v17 = vpop.permute.xlu0 %2872  ;;  %v2609_v40 = vmul.f32 %v2555_v10, %v2481_v63 }
 0x34a   : > { %3265 = vrot.lane.b32.xlu1 %v7454_v56, %s7334_s26  ;;  %2592 = vrot.lane.b32.xlu0 %v7455_v3, %s7334_s26  ;;  %v2928_v4 = vmul.f32 %v2873_v17, %v2480_v21  ;;  %v7461_v21 = vld [vmem:[#allocation83_spill] sm:$0xff]  ;;  %v2483_v17 = vld [vmem:[#allocation8 + $0x58] sm:$0xff] }
 0x34b   : > { %v2641_v55 = vadd.f32 %v2609_v40, %v2513_v5  ;;  %v7462_v5 = vld [vmem:[#allocation84_spill] sm:$0xff] }
 0x34c   : > { %v2875_v31 = vpop.permute.xlu1 %2874  ;;  %v2960_v12 = vadd.f32 %v2928_v4, %v2832_v62  ;;  %v7465_v4 = vld [vmem:[#allocation47_spill] sm:$0xff]  ;;  %v7467_v62 = vld [vmem:[#allocation86_spill] sm:$0xff] }
 0x34d   : > { %v4535_v22 = vpack.c.bf16 %v2641_v55, %v2640_v39  ;;  %v3228_v20 = vpop.permute.xlu0 %3227  ;;  %v2929_v38 = vmul.f32 %v2875_v31, %v2481_v63  ;;  %v2482_v63 = vld [vmem:[#allocation8 + $0x50] sm:$0xff]  ;;  %v2514_v39 = vmul.f32 %v2450_v1, %v7464_v0  ;;  %v2515_v55 = vmul.f32 %v2451_v14, %v7465_v4 }
 0x34e   : > { %v3314_v44 = vmul.f32 %v3282_v9, %v3228_v20  ;;  %2912 = vrot.lane.b32.xlu0 %v7460_v24, %s7334_s26  ;;  %2594 = vrot.lane.b32.xlu1 %v7461_v21, %s7334_s26  ;;  %v3283_v9 = vld [vmem:[#allocation11 + $0x50] sm:$0xff] }
 0x34f   : > { %4835 = vst [vmem:[%s6874_s6 + $0x20] sm:$0xff] %v4535_v22   ;;  %v2961_v28 = vadd.f32 %v2929_v38, %v2833_v18  ;;  %v3156_v18 = vld [vmem:[#allocation10 + $0x58] sm:$0xff] }
 0x350   : > { %v3346_v48 = vadd.f32 %v3314_v44, %v3186_v33  ;;  %v3230_v45 = vpop.permute.xlu1 %3229  ;;  %v7468_v33 = vld [vmem:[#allocation46_spill] sm:$0xff] }
 0x351   : > { %v4615_v23 = vpack.c.bf16 %v2961_v28, %v2960_v12  ;;  %v2557_v10 = vpop.permute.xlu0 %2556  ;;  %v3315_v41 = vmul.f32 %v3283_v9, %v3230_v45  ;;  %v2834_v44 = vmul.f32 %v2450_v1, %v7468_v33  ;;  %v7469_v12 = vld [vmem:[#allocation49_spill] sm:$0xff] }
 0x352   : > { %v4695_v52 = vpack.c.bf16 %v3346_v48, %v3345_v15  ;;  %3267 = vrot.lane.b32.xlu0 %v7462_v5, %s7334_s26  ;;  %2914 = vrot.lane.b32.xlu1 %v7463_v42, %s7334_s26  ;;  %v2610_v40 = vmul.f32 %v2557_v10, %v2482_v63  ;;  %v2835_v28 = vmul.f32 %v2451_v14, %v7469_v12  ;;  %v7470_v10 = vld [vmem:[#allocation45_spill] sm:$0xff] }
 0x353   : > { %4851 = vst [vmem:[%s6874_s6 + $0xa0] sm:$0xff] %v4615_v23   ;;  %v3285_v33 = vld [vmem:[#allocation11 + $0x60] sm:$0xff] }
 0x354   : > { %4866 = vst [vmem:[%s6893_s27 + $0x20] sm:$0xff] %v4695_v52   ;;  %v2559_v36 = vpop.permute.xlu1 %2558  ;;  %v2642_v22 = vadd.f32 %v2610_v40, %v2514_v39  ;;  %v3187_v52 = vmul.f32 %v3155_v7, %v7470_v10  ;;  %v7472_v40 = vld [vmem:[#allocation88_spill] sm:$0xff] }
 0x355   : > { %v2877_v27 = vpop.permute.xlu0 %2876  ;;  %v2611_v31 = vmul.f32 %v2559_v36, %v2483_v17  ;;  %v7471_v36 = vld [vmem:[#allocation48_spill] sm:$0xff] }
 0x356   : > { %3269 = vrot.lane.b32.xlu1 %v7466_v13, %s7334_s26  ;;  %2596 = vrot.lane.b32.xlu0 %v7467_v62, %s7334_s26  ;;  %v2930_v20 = vmul.f32 %v2877_v27, %v2482_v63  ;;  %v3188_v0 = vmul.f32 %v3156_v18, %v7471_v36  ;;  %v3347_v1 = vadd.f32 %v3315_v41, %v3187_v52  ;;  %v2452_v27 = vld [vmem:[#allocation7 + $0x60] sm:$0xff]  ;;  %v2485_v18 = vld [vmem:[#allocation8 + $0x68] sm:$0xff] }
 0x357   : > { %v2643_v38 = vadd.f32 %v2611_v31, %v2515_v55  ;;  %v2453_v31 = vld [vmem:[#allocation7 + $0x68] sm:$0xff]  ;;  %v7474_v41 = vld [vmem:[#allocation53_spill] sm:$0xff] }
 0x358   : > { %v2879_v30 = vpop.permute.xlu1 %2878  ;;  %v2962_v45 = vadd.f32 %v2930_v20, %v2834_v44  ;;  %v3286_v52 = vld [vmem:[#allocation11 + $0x68] sm:$0xff] }
 0x359   : > { %v4540_v15 = vpack.c.bf16 %v2643_v38, %v2642_v22  ;;  %v3232_v48 = vpop.permute.xlu0 %3231  ;;  %v2931_v23 = vmul.f32 %v2879_v30, %v2483_v17  ;;  %v2484_v17 = vld [vmem:[#allocation8 + $0x60] sm:$0xff]  ;;  %v7473_v38 = vld [vmem:[#allocation50_spill] sm:$0xff]  ;;  %v2517_v30 = vmul.f32 %v2453_v31, %v7474_v41 }
 0x35a   : > { %v3316_v4 = vmul.f32 %v3284_v6, %v3232_v48  ;;  %2916 = vrot.lane.b32.xlu0 %v7472_v40, %s7334_s26  ;;  %2598 = vrot.lane.b32.xlu1 %v6862_v25, %s7334_s26  ;;  %v2516_v6 = vmul.f32 %v2452_v27, %v7473_v38  ;;  %v7478_v41 = vld [vmem:[#allocation54_spill] sm:$0xff] }
 0x35b   : > { %4836 = vst [vmem:[%s6874_s6 + $0x28] sm:$0xff] %v4540_v15   ;;  %v2963_v63 = vadd.f32 %v2931_v23, %v2835_v28  ;;  %v3157_v28 = vld [vmem:[#allocation10 + $0x60] sm:$0xff]  ;;  %v3158_v15 = vld [vmem:[#allocation10 + $0x68] sm:$0xff] }
 0x35c   : > { %v3348_v14 = vadd.f32 %v3316_v4, %v3188_v0  ;;  %v3234_v39 = vpop.permute.xlu1 %3233  ;;  %v7475_v4 = vld [vmem:[#allocation52_spill] sm:$0xff] }
 0x35d   : > { %v4620_v55 = vpack.c.bf16 %v2963_v63, %v2962_v45  ;;  %v2561_v9 = vpop.permute.xlu0 %2560  ;;  %v3317_v36 = vmul.f32 %v3285_v33, %v3234_v39  ;;  %v2836_v45 = vmul.f32 %v2452_v27, %v7475_v4  ;;  %v7476_v63 = vld [vmem:[#allocation55_spill] sm:$0xff] }
 0x35e   : > { %v4700_v7 = vpack.c.bf16 %v3348_v14, %v3347_v1  ;;  %3271 = vrot.lane.b32.xlu0 %v6864_v35, %s7334_s26  ;;  %2918 = vrot.lane.b32.xlu1 %v6868_v37, %s7334_s26  ;;  %v2612_v22 = vmul.f32 %v2561_v9, %v2484_v17  ;;  %v2837_v1 = vmul.f32 %v2453_v31, %v7476_v63  ;;  %v2486_v33 = vld [vmem:[#allocation8 + $0x70] sm:$0xff]  ;;  %v3160_v63 = vld [vmem:[#allocation10 + $0x78] sm:$0xff]  ;;  %s7093_s26 = scalar_lea.hbm %s7503_s4, %s4373_s7  ;;  %s3690_s7 = scalar_lea.sflag [#allocation4], %s6527_s21 }
 0x35f   : > { %4852 = vst [vmem:[%s6874_s6 + $0xa8] sm:$0xff] %v4620_v55   ;;  %v2454_v31 = vld [vmem:[#allocation7 + $0x70] sm:$0xff] }
 0x360   : > { %4867 = vst [vmem:[%s6893_s27 + $0x28] sm:$0xff] %v4700_v7   ;;  %v2563_v20 = vpop.permute.xlu1 %2562  ;;  %v2644_v48 = vadd.f32 %v2612_v22, %v2516_v6  ;;  %v7477_v7 = vld [vmem:[#allocation51_spill] sm:$0xff] }
 0x361   : > { %v2881_v44 = vpop.permute.xlu0 %2880  ;;  %v2613_v12 = vmul.f32 %v2563_v20, %v2485_v18  ;;  %v3189_v38 = vmul.f32 %v3157_v28, %v7477_v7  ;;  %v3190_v20 = vmul.f32 %v3158_v15, %v7478_v41  ;;  %v7479_v15 = vld [vmem:[#allocation56_spill] sm:$0xff]  ;;  %v3287_v4 = vld [vmem:[#allocation11 + $0x70] sm:$0xff]  ;;  %v7481_v41 = vld [vmem:[#allocation58_spill] sm:$0xff] }
 0x362   : > { %v2932_v23 = vmul.f32 %v2881_v44, %v2484_v17 }
 0x363   : > { %v2645_v10 = vadd.f32 %v2613_v12, %v2517_v30  ;;  %v3349_v6 = vadd.f32 %v3317_v36, %v3189_v38  ;;  %v2455_v12 = vld [vmem:[#allocation7 + $0x78] sm:$0xff] }
 0x364   : > { %v2883_v0 = vpop.permute.xlu1 %2882  ;;  %v2964_v22 = vadd.f32 %v2932_v23, %v2836_v45 }
 0x365   : > { %v4545_v14 = vpack.c.bf16 %v2645_v10, %v2644_v48  ;;  %v3236_v55 = vpop.permute.xlu0 %3235  ;;  %v2933_v9 = vmul.f32 %v2883_v0, %v2485_v18  ;;  %v2487_v18 = vld [vmem:[#allocation8 + $0x78] sm:$0xff]  ;;  %v7480_v0 = vld [vmem:[#allocation59_spill] sm:$0xff] }
 0x366   : > { %v3318_v35 = vmul.f32 %v3286_v52, %v3236_v55  ;;  %v2518_v52 = vmul.f32 %v2454_v31, %v7479_v15  ;;  %v2519_v23 = vmul.f32 %v2455_v12, %v7480_v0  ;;  %v7484_v15 = vld [vmem:[#allocation60_spill] sm:$0xff] }
 0x367   : > { %4837 = vst [vmem:[%s6874_s6 + $0x30] sm:$0xff] %v4545_v14   ;;  %v2965_v17 = vadd.f32 %v2933_v9, %v2837_v1  ;;  %v3288_v9 = vld [vmem:[#allocation11 + $0x78] sm:$0xff] }
 0x368   : > { %v3350_v39 = vadd.f32 %v3318_v35, %v3190_v20  ;;  %v3238_v30 = vpop.permute.xlu1 %3237  ;;  %v3159_v35 = vld [vmem:[#allocation10 + $0x70] sm:$0xff]  ;;  %v2838_v20 = vmul.f32 %v2454_v31, %v7481_v41  ;;  %v3289_v41 = vld [vmem:[#allocation11 + $0x80] sm:$0xff] }
 0x369   : > { %v4625_v27 = vpack.c.bf16 %v2965_v17, %v2964_v22  ;;  %v2565_v44 = vpop.permute.xlu0 %2564  ;;  %v3319_v7 = vmul.f32 %v3287_v4, %v3238_v30  ;;  %v7482_v22 = vld [vmem:[#allocation61_spill] sm:$0xff] }
 0x36a   : > { %v4705_v48 = vpack.c.bf16 %v3350_v39, %v3349_v6  ;;  %v2614_v28 = vmul.f32 %v2565_v44, %v2486_v33  ;;  %v2839_v17 = vmul.f32 %v2455_v12, %v7482_v22  ;;  %v7483_v44 = vld [vmem:[#allocation57_spill] sm:$0xff] }
 0x36b   : > { %4853 = vst [vmem:[%s6874_s6 + $0xb0] sm:$0xff] %v4625_v27   ;;  %v2488_v4 = vld [vmem:[#allocation8 + $0x80] sm:$0xff] }
 0x36c   : > { %4868 = vst [vmem:[%s6893_s27 + $0x30] sm:$0xff] %v4705_v48   ;;  %v2567_v10 = vpop.permute.xlu1 %2566  ;;  %v2646_v1 = vadd.f32 %v2614_v28, %v2518_v52  ;;  %v3191_v48 = vmul.f32 %v3159_v35, %v7483_v44  ;;  %v2456_v12 = vld [vmem:[#allocation7 + $0x80] sm:$0xff]  ;;  %v3290_v44 = vld [vmem:[#allocation11 + $0x88] sm:$0xff] }
 0x36d   : > { %v2885_v45 = vpop.permute.xlu0 %2884  ;;  %v2615_v36 = vmul.f32 %v2567_v10, %v2487_v18  ;;  %v3192_v10 = vmul.f32 %v3160_v63, %v7484_v15  ;;  %v7485_v63 = vld [vmem:[#allocation62_spill] sm:$0xff]  ;;  %v3161_v22 = vld [vmem:[#allocation10 + $0x80] sm:$0xff] }
 0x36e   : > { %v2934_v14 = vmul.f32 %v2885_v45, %v2486_v33  ;;  %v3351_v52 = vadd.f32 %v3319_v7, %v3191_v48 }
 0x36f   : > { %v2647_v55 = vadd.f32 %v2615_v36, %v2519_v23  ;;  %v2457_v36 = vld [vmem:[#allocation7 + $0x88] sm:$0xff] }
 0x370   : > { %v2887_v38 = vpop.permute.xlu1 %2886  ;;  %v2966_v28 = vadd.f32 %v2934_v14, %v2838_v20 }
 0x371   : > { %v4550_v6 = vpack.c.bf16 %v2647_v55, %v2646_v1  ;;  %v3240_v39 = vpop.permute.xlu0 %3239  ;;  %v2935_v27 = vmul.f32 %v2887_v38, %v2487_v18  ;;  %v2489_v18 = vld [vmem:[#allocation8 + $0x88] sm:$0xff]  ;;  %v7486_v38 = vld [vmem:[#allocation65_spill] sm:$0xff] }
 0x372   : > { %v3320_v0 = vmul.f32 %v3288_v9, %v3240_v39  ;;  %v2520_v9 = vmul.f32 %v2456_v12, %v7485_v63  ;;  %v2521_v14 = vmul.f32 %v2457_v36, %v7486_v38  ;;  %v7490_v63 = vld [vmem:[#allocation66_spill] sm:$0xff] }
 0x373   : > { %4838 = vst [vmem:[%s6874_s6 + $0x38] sm:$0xff] %v4550_v6   ;;  %v2967_v33 = vadd.f32 %v2935_v27, %v2839_v17  ;;  %v3162_v17 = vld [vmem:[#allocation10 + $0x88] sm:$0xff] }
 0x374   : > { %v3352_v30 = vadd.f32 %v3320_v0, %v3192_v10  ;;  %v3242_v23 = vpop.permute.xlu1 %3241  ;;  %v7487_v10 = vld [vmem:[#allocation64_spill] sm:$0xff] }
 0x375   : > { %v4630_v31 = vpack.c.bf16 %v2967_v33, %v2966_v28  ;;  %v2569_v45 = vpop.permute.xlu0 %2568  ;;  %v3321_v48 = vmul.f32 %v3289_v41, %v3242_v23  ;;  %v2840_v0 = vmul.f32 %v2456_v12, %v7487_v10  ;;  %v7488_v28 = vld [vmem:[#allocation67_spill] sm:$0xff] }
 0x376   : > { %v4710_v1 = vpack.c.bf16 %v3352_v30, %v3351_v52  ;;  %v2616_v35 = vmul.f32 %v2569_v45, %v2488_v4  ;;  %v2841_v33 = vmul.f32 %v2457_v36, %v7488_v28  ;;  %v7489_v45 = vld [vmem:[#allocation63_spill] sm:$0xff] }
 0x377   : > { %4854 = vst [vmem:[%s6874_s6 + $0xb8] sm:$0xff] %v4630_v31   ;;  %v2490_v41 = vld [vmem:[#allocation8 + $0x90] sm:$0xff] }
 0x378   : > { %4869 = vst [vmem:[%s6893_s27 + $0x38] sm:$0xff] %v4710_v1   ;;  %v2571_v55 = vpop.permute.xlu1 %2570  ;;  %v2648_v6 = vadd.f32 %v2616_v35, %v2520_v9  ;;  %v3193_v1 = vmul.f32 %v3161_v22, %v7489_v45  ;;  %v2458_v36 = vld [vmem:[#allocation7 + $0x90] sm:$0xff]  ;;  %v3292_v45 = vld [vmem:[#allocation11 + $0x98] sm:$0xff] }
 0x379   : > { %v2889_v20 = vpop.permute.xlu0 %2888  ;;  %v2617_v7 = vmul.f32 %v2571_v55, %v2489_v18  ;;  %v3194_v55 = vmul.f32 %v3162_v17, %v7490_v63  ;;  %v7491_v17 = vld [vmem:[#allocation68_spill] sm:$0xff]  ;;  %v3291_v10 = vld [vmem:[#allocation11 + $0x90] sm:$0xff] }
 0x37a   : > { %v2936_v39 = vmul.f32 %v2889_v20, %v2488_v4  ;;  %v3353_v9 = vadd.f32 %v3321_v48, %v3193_v1  ;;  %v3163_v28 = vld [vmem:[#allocation10 + $0x90] sm:$0xff] }
 0x37b   : > { %v2649_v27 = vadd.f32 %v2617_v7, %v2521_v14  ;;  %v2459_v7 = vld [vmem:[#allocation7 + $0x98] sm:$0xff] }
 0x37c   : > { %v2891_v15 = vpop.permute.xlu1 %2890  ;;  %v2968_v35 = vadd.f32 %v2936_v39, %v2840_v0 }
 0x37d   : > { %v4555_v52 = vpack.c.bf16 %v2649_v27, %v2648_v6  ;;  %v3244_v30 = vpop.permute.xlu0 %3243  ;;  %v2937_v31 = vmul.f32 %v2891_v15, %v2489_v18  ;;  %v2491_v18 = vld [vmem:[#allocation8 + $0x98] sm:$0xff]  ;;  %v7492_v15 = vld [vmem:[#allocation71_spill] sm:$0xff] }
 0x37e   : > { %v3322_v38 = vmul.f32 %v3290_v44, %v3244_v30  ;;  %v2522_v44 = vmul.f32 %v2458_v36, %v7491_v17  ;;  %v2523_v39 = vmul.f32 %v2459_v7, %v7492_v15  ;;  %v7496_v17 = vld [vmem:[#allocation72_spill] sm:$0xff] }
 0x37f   : > { %4839 = vst [vmem:[%s6874_s6 + $0x40] sm:$0xff] %v4555_v52   ;;  %v2969_v4 = vadd.f32 %v2937_v31, %v2841_v33  ;;  %v3164_v33 = vld [vmem:[#allocation10 + $0x98] sm:$0xff] }
 0x380   : > { %v3354_v23 = vadd.f32 %v3322_v38, %v3194_v55  ;;  %v3246_v14 = vpop.permute.xlu1 %3245  ;;  %v7493_v55 = vld [vmem:[#allocation70_spill] sm:$0xff] }
 0x381   : > { %v4635_v12 = vpack.c.bf16 %v2969_v4, %v2968_v35  ;;  %v2573_v20 = vpop.permute.xlu0 %2572  ;;  %v3323_v1 = vmul.f32 %v3291_v10, %v3246_v14  ;;  %v2842_v38 = vmul.f32 %v2458_v36, %v7493_v55  ;;  %v7494_v35 = vld [vmem:[#allocation73_spill] sm:$0xff] }
 0x382   : > { %v4715_v6 = vpack.c.bf16 %v3354_v23, %v3353_v9  ;;  %v2618_v22 = vmul.f32 %v2573_v20, %v2490_v41  ;;  %v2843_v4 = vmul.f32 %v2459_v7, %v7494_v35  ;;  %v7495_v20 = vld [vmem:[#allocation69_spill] sm:$0xff]  ;;  %v3166_v35 = vld [vmem:[#allocation10 + $0xa8] sm:$0xff] }
 0x383   : > { %4855 = vst [vmem:[%s6874_s6 + $0xc0] sm:$0xff] %v4635_v12   ;;  %v2492_v10 = vld [vmem:[#allocation8 + $0xa0] sm:$0xff] }
 0x384   : > { %4870 = vst [vmem:[%s6893_s27 + $0x40] sm:$0xff] %v4715_v6   ;;  %v2575_v27 = vpop.permute.xlu1 %2574  ;;  %v2650_v52 = vadd.f32 %v2618_v22, %v2522_v44  ;;  %v3195_v6 = vmul.f32 %v3163_v28, %v7495_v20  ;;  %v2460_v7 = vld [vmem:[#allocation7 + $0xa0] sm:$0xff] }
 0x385   : > { %v2893_v0 = vpop.permute.xlu0 %2892  ;;  %v2619_v48 = vmul.f32 %v2575_v27, %v2491_v18  ;;  %v3196_v27 = vmul.f32 %v3164_v33, %v7496_v17  ;;  %v7497_v33 = vld [vmem:[#allocation74_spill] sm:$0xff]  ;;  %v2844_v17 = vmul.f32 %v2460_v7, %v6752_v61 }
 0x386   : > { %v2938_v30 = vmul.f32 %v2893_v0, %v2490_v41  ;;  %v3355_v44 = vadd.f32 %v3323_v1, %v3195_v6 }
 0x387   : > { %v2651_v31 = vadd.f32 %v2619_v48, %v2523_v39  ;;  %v2461_v48 = vld [vmem:[#allocation7 + $0xa8] sm:$0xff] }
 0x388   : > { %v2895_v63 = vpop.permute.xlu1 %2894  ;;  %v2970_v22 = vadd.f32 %v2938_v30, %v2842_v38  ;;  %v2525_v30 = vmul.f32 %v2461_v48, %v6754_v34  ;;  %v3165_v38 = vld [vmem:[#allocation10 + $0xa0] sm:$0xff]  ;;  %v7498_v34 = vld [vmem:[#allocation75_spill] sm:$0xff] }
 0x389   : > { %v4560_v9 = vpack.c.bf16 %v2651_v31, %v2650_v52  ;;  %v3248_v23 = vpop.permute.xlu0 %3247  ;;  %v2939_v12 = vmul.f32 %v2895_v63, %v2491_v18  ;;  %v2493_v18 = vld [vmem:[#allocation8 + $0xa8] sm:$0xff]  ;;  %v3293_v63 = vld [vmem:[#allocation11 + $0xa0] sm:$0xff] }
 0x38a   : > { %v3324_v15 = vmul.f32 %v3292_v45, %v3248_v23  ;;  %v2524_v45 = vmul.f32 %v2460_v7, %v7497_v33 }
 0x38b   : > { %4840 = vst [vmem:[%s6874_s6 + $0x48] sm:$0xff] %v4560_v9   ;;  %v2971_v41 = vadd.f32 %v2939_v12, %v2843_v4  ;;  %v3294_v12 = vld [vmem:[#allocation11 + $0xa8] sm:$0xff] }
 0x38c   : > { %v3356_v14 = vadd.f32 %v3324_v15, %v3196_v27  ;;  %v3250_v39 = vpop.permute.xlu1 %3249  ;;  %v2845_v27 = vmul.f32 %v2461_v48, %v6758_v50  ;;  %v2462_v50 = vld [vmem:[#allocation7 + $0xb0] sm:$0xff]  ;;  %v2463_v48 = vld [vmem:[#allocation7 + $0xb8] sm:$0xff] }
 0x38d   : > { %v4640_v36 = vpack.c.bf16 %v2971_v41, %v2970_v22  ;;  %v2577_v0 = vpop.permute.xlu0 %2576  ;;  %v3325_v20 = vmul.f32 %v3293_v63, %v3250_v39  ;;  %v2527_v63 = vmul.f32 %v2463_v48, %v6775_v47 }
 0x38e   : > { %v4720_v52 = vpack.c.bf16 %v3356_v14, %v3355_v44  ;;  %v2620_v28 = vmul.f32 %v2577_v0, %v2492_v10  ;;  %v3197_v44 = vmul.f32 %v3165_v38, %v7498_v34  ;;  %v3198_v14 = vmul.f32 %v3166_v35, %v6756_v57  ;;  %v3167_v35 = vld [vmem:[#allocation10 + $0xb0] sm:$0xff] }
 0x38f   : > { %4856 = vst [vmem:[%s6874_s6 + $0xc8] sm:$0xff] %v4640_v36   ;;  %v2526_v57 = vmul.f32 %v2462_v50, %v6765_v59  ;;  %v3199_v47 = vmul.f32 %v3167_v35, %v6767_v60 }
 0x390   : > { %4871 = vst [vmem:[%s6893_s27 + $0x48] sm:$0xff] %v4720_v52   ;;  %v2579_v31 = vpop.permute.xlu1 %2578  ;;  %v2652_v4 = vadd.f32 %v2620_v28, %v2524_v45  ;;  %v3357_v52 = vadd.f32 %v3325_v20, %v3197_v44  ;;  %v3296_v20 = vld [vmem:[#allocation11 + $0xb8] sm:$0xff] }
 0x391   : > { %v2897_v55 = vpop.permute.xlu0 %2896  ;;  %v2621_v1 = vmul.f32 %v2579_v31, %v2493_v18  ;;  %v2494_v31 = vld [vmem:[#allocation8 + $0xb0] sm:$0xff] }
 0x392   : > { %v2940_v9 = vmul.f32 %v2897_v55, %v2492_v10  ;;  %v3295_v55 = vld [vmem:[#allocation11 + $0xb0] sm:$0xff] }
 0x393   : > { %v2653_v23 = vadd.f32 %v2621_v1, %v2525_v30 }
 0x394   : > { %v2899_v6 = vpop.permute.xlu1 %2898  ;;  %v2972_v0 = vadd.f32 %v2940_v9, %v2844_v17 }
 0x395   : > { %v4565_v15 = vpack.c.bf16 %v2653_v23, %v2652_v4  ;;  %v3252_v22 = vpop.permute.xlu0 %3251  ;;  %v2941_v41 = vmul.f32 %v2899_v6, %v2493_v18  ;;  %v2495_v18 = vld [vmem:[#allocation8 + $0xb8] sm:$0xff] }
 0x396   : > { %v3326_v36 = vmul.f32 %v3294_v12, %v3252_v22  ;;  %v3168_v4 = vld [vmem:[#allocation10 + $0xb8] sm:$0xff] }
 0x397   : > { %4841 = vst [vmem:[%s6874_s6 + $0x50] sm:$0xff] %v4565_v15   ;;  %v2973_v10 = vadd.f32 %v2941_v41, %v2845_v27  ;;  %v2846_v27 = vmul.f32 %v2462_v50, %v6773_v54  ;;  %v2847_v15 = vmul.f32 %v2463_v48, %v6779_v51  ;;  %v3200_v34 = vmul.f32 %v3168_v4, %v6777_v2  ;;  %v2464_v51 = vld [vmem:[#allocation7 + $0xc0] sm:$0xff] }
 0x398   : > { %v3358_v39 = vadd.f32 %v3326_v36, %v3198_v14  ;;  %v3254_v28 = vpop.permute.xlu1 %3253  ;;  %v2528_v2 = vmul.f32 %v2464_v51, %v6786_v8 }
 0x399   : > { %v4645_v61 = vpack.c.bf16 %v2973_v10, %v2972_v0  ;;  %v2581_v7 = vpop.permute.xlu0 %2580  ;;  %v3327_v6 = vmul.f32 %v3295_v55, %v3254_v28 }
 0x39a   : > { %v4725_v33 = vpack.c.bf16 %v3358_v39, %v3357_v52  ;;  %v2622_v45 = vmul.f32 %v2581_v7, %v2494_v31  ;;  %v2496_v39 = vld [vmem:[#allocation8 + $0xc0] sm:$0xff]  ;;  %v2497_v7 = vld [vmem:[#allocation8 + $0xc8] sm:$0xff] }
 0x39b   : > { %4857 = vst [vmem:[%s6874_s6 + $0xd0] sm:$0xff] %v4645_v61   ;;  %v3359_v0 = vadd.f32 %v3327_v6, %v3199_v47  ;;  %v2498_v47 = vld [vmem:[#allocation8 + $0xd0] sm:$0xff] }
 0x39c   : > { %4872 = vst [vmem:[%s6893_s27 + $0x50] sm:$0xff] %v4725_v33   ;;  %v2583_v30 = vpop.permute.xlu1 %2582  ;;  %v2654_v9 = vadd.f32 %v2622_v45, %v2526_v57  ;;  %v3297_v33 = vld [vmem:[#allocation11 + $0xc0] sm:$0xff]  ;;  %v3170_v57 = vld [vmem:[#allocation10 + $0xc8] sm:$0xff] }
 0x39d   : > { %v2901_v1 = vpop.permute.xlu0 %2900  ;;  %v2623_v38 = vmul.f32 %v2583_v30, %v2495_v18  ;;  %v3169_v30 = vld [vmem:[#allocation10 + $0xc0] sm:$0xff]  ;;  %v3202_v6 = vmul.f32 %v3170_v57, %v6798_v16 }
 0x39e   : > { %v2942_v23 = vmul.f32 %v2901_v1, %v2494_v31  ;;  %v2465_v31 = vld [vmem:[#allocation7 + $0xc8] sm:$0xff] }
 0x39f   : > { %v2655_v12 = vadd.f32 %v2623_v38, %v2527_v63  ;;  %v2529_v48 = vmul.f32 %v2465_v31, %v6796_v58  ;;  %v3298_v38 = vld [vmem:[#allocation11 + $0xc8] sm:$0xff]  ;;  %v3201_v58 = vmul.f32 %v3169_v30, %v6788_v11 }
 0x3a0   : > { %v2903_v17 = vpop.permute.xlu1 %2902  ;;  %v2974_v14 = vadd.f32 %v2942_v23, %v2846_v27  ;;  %v2849_v23 = vmul.f32 %v2465_v31, %v6800_v49  ;;  %v2466_v49 = vld [vmem:[#allocation7 + $0xd0] sm:$0xff] }
 0x3a1   : > { %v4570_v22 = vpack.c.bf16 %v2655_v12, %v2654_v9  ;;  %v3256_v59 = vpop.permute.xlu0 %3255  ;;  %v2943_v41 = vmul.f32 %v2903_v17, %v2495_v18  ;;  %v2848_v9 = vmul.f32 %v2464_v51, %v6794_v46  ;;  %v2530_v16 = vmul.f32 %v2466_v49, %v6807_v29  ;;  %v3172_v51 = vld [vmem:[#allocation10 + $0xd8] sm:$0xff] }
 0x3a2   : > { %v3328_v44 = vmul.f32 %v3296_v20, %v3256_v59  ;;  %v3204_v30 = vmul.f32 %v3172_v51, %v7450_v32 }
 0x3a3   : > { %4842 = vst [vmem:[%s6874_s6 + $0x58] sm:$0xff] %v4570_v22   ;;  %v2975_v36 = vadd.f32 %v2943_v41, %v2847_v15 }
 0x3a4   : > { %v3360_v10 = vadd.f32 %v3328_v44, %v3200_v34  ;;  %v3258_v52 = vpop.permute.xlu1 %3257  ;;  %v2467_v44 = vld [vmem:[#allocation7 + $0xd8] sm:$0xff] }
 0x3a5   : > { %v4650_v54 = vpack.c.bf16 %v2975_v36, %v2974_v14  ;;  %v2585_v28 = vpop.permute.xlu0 %2584  ;;  %v3329_v35 = vmul.f32 %v3297_v33, %v3258_v52  ;;  %v2499_v36 = vld [vmem:[#allocation8 + $0xd8] sm:$0xff]  ;;  %v3299_v52 = vld [vmem:[#allocation11 + $0xd0] sm:$0xff]  ;;  %v2851_v33 = vmul.f32 %v2467_v44, %v7451_v19  ;;  %v2468_v19 = vld [vmem:[#allocation7 + $0xe0] sm:$0xff] }
 0x3a6   : > { %v4730_v61 = vpack.c.bf16 %v3360_v10, %v3359_v0  ;;  %v2624_v60 = vmul.f32 %v2585_v28, %v2496_v39  ;;  %v2531_v10 = vmul.f32 %v2467_v44, %v7449_v43  ;;  %v3171_v28 = vld [vmem:[#allocation10 + $0xd0] sm:$0xff]  ;;  %v2532_v32 = vmul.f32 %v2468_v19, %v7455_v3 }
 0x3a7   : > { %4858 = vst [vmem:[%s6874_s6 + $0xd8] sm:$0xff] %v4650_v54   ;;  %v3361_v22 = vadd.f32 %v3329_v35, %v3201_v58  ;;  %v3203_v43 = vmul.f32 %v3171_v28, %v6809_v26  ;;  %v2852_v44 = vmul.f32 %v2468_v19, %v7460_v24  ;;  %v2502_v28 = vld [vmem:[#allocation8 + $0xf0] sm:$0xff] }
 0x3a8   : > { %4873 = vst [vmem:[%s6893_s27 + $0x58] sm:$0xff] %v4730_v61   ;;  %v2587_v50 = vpop.permute.xlu1 %2586  ;;  %v2656_v63 = vadd.f32 %v2624_v60, %v2528_v2  ;;  %v3300_v60 = vld [vmem:[#allocation11 + $0xd8] sm:$0xff] }
 0x3a9   : > { %v2905_v18 = vpop.permute.xlu0 %2904  ;;  %v2625_v45 = vmul.f32 %v2587_v50, %v2497_v7 }
 0x3aa   : > { %v2944_v55 = vmul.f32 %v2905_v18, %v2496_v39 }
 0x3ab   : > { %v2657_v1 = vadd.f32 %v2625_v45, %v2529_v48  ;;  %v2850_v48 = vmul.f32 %v2466_v49, %v7448_v53 }
 0x3ac   : > { %v2907_v4 = vpop.permute.xlu1 %2906  ;;  %v2976_v27 = vadd.f32 %v2944_v55, %v2848_v9 }
 0x3ad   : > { %v4575_v12 = vpack.c.bf16 %v2657_v1, %v2656_v63  ;;  %v3260_v8 = vpop.permute.xlu0 %3259  ;;  %v2945_v20 = vmul.f32 %v2907_v4, %v2497_v7  ;;  %v2500_v4 = vld [vmem:[#allocation8 + $0xe0] sm:$0xff] }
 0x3ae   : > { %v3330_v17 = vmul.f32 %v3298_v38, %v3260_v8  ;;  %v2501_v8 = vld [vmem:[#allocation8 + $0xe8] sm:$0xff] }
 0x3af   : > { %4843 = vst [vmem:[%s6874_s6 + $0x60] sm:$0xff] %v4575_v12   ;;  %v2977_v15 = vadd.f32 %v2945_v20, %v2849_v23  ;;  %v2469_v23 = vld [vmem:[#allocation7 + $0xe8] sm:$0xff] }
 0x3b0   : > { %v3362_v59 = vadd.f32 %v3330_v17, %v3202_v6  ;;  %v3262_v41 = vpop.permute.xlu1 %3261  ;;  %v2533_v58 = vmul.f32 %v2469_v23, %v7461_v21  ;;  %v3301_v6 = vld [vmem:[#allocation11 + $0xe0] sm:$0xff] }
 0x3b1   : > { %v4655_v46 = vpack.c.bf16 %v2977_v15, %v2976_v27  ;;  %v2589_v34 = vpop.permute.xlu0 %2588  ;;  %v3331_v50 = vmul.f32 %v3299_v52, %v3262_v41  ;;  %v3173_v15 = vld [vmem:[#allocation10 + $0xe0] sm:$0xff] }
 0x3b2   : > { %v4735_v14 = vpack.c.bf16 %v3362_v59, %v3361_v22  ;;  %v2626_v11 = vmul.f32 %v2589_v34, %v2498_v47  ;;  %v3174_v22 = vld [vmem:[#allocation10 + $0xe8] sm:$0xff]  ;;  %v3205_v21 = vmul.f32 %v3173_v15, %v7454_v56  ;;  %v2471_v56 = vld [vmem:[#allocation7 + $0xf8] sm:$0xff] }
 0x3b3   : > { %4859 = vst [vmem:[%s6874_s6 + $0xe0] sm:$0xff] %v4655_v46   ;;  %v3363_v1 = vadd.f32 %v3331_v50, %v3203_v43  ;;  %v3302_v46 = vld [vmem:[#allocation11 + $0xe8] sm:$0xff] }
 0x3b4   : > { %4874 = vst [vmem:[%s6893_s27 + $0x60] sm:$0xff] %v4735_v14   ;;  %v2591_v0 = vpop.permute.xlu1 %2590  ;;  %v2658_v31 = vadd.f32 %v2626_v11, %v2530_v16  ;;  %v2853_v14 = vmul.f32 %v2469_v23, %v7463_v42 }
 0x3b5   : > { %v2909_v39 = vpop.permute.xlu0 %2908  ;;  %v2627_v54 = vmul.f32 %v2591_v0, %v2499_v36  ;;  %v3206_v0 = vmul.f32 %v3174_v22, %v7462_v5 }
 0x3b6   : > { %v2946_v61 = vmul.f32 %v2909_v39, %v2498_v47 }
 0x3b7   : > { %v2659_v7 = vadd.f32 %v2627_v54, %v2531_v10 }
 0x3b8   : > { %v2911_v2 = vpop.permute.xlu1 %2910  ;;  %v2978_v63 = vadd.f32 %v2946_v61, %v2850_v48  ;;  %v3303_v48 = vld [vmem:[#allocation11 + $0xf0] sm:$0xff] }
 0x3b9   : > { %v4580_v18 = vpack.c.bf16 %v2659_v7, %v2658_v31  ;;  %v3264_v29 = vpop.permute.xlu0 %3263  ;;  %v2947_v45 = vmul.f32 %v2911_v2, %v2499_v36  ;;  %v2470_v31 = vld [vmem:[#allocation7 + $0xf0] sm:$0xff]  ;;  %v2503_v7 = vld [vmem:[#allocation8 + $0xf8] sm:$0xff]  ;;  %v2535_v2 = vmul.f32 %v2471_v56, %v6862_v25 }
 0x3ba   : > { %v3332_v57 = vmul.f32 %v3300_v60, %v3264_v29  ;;  %v2534_v50 = vmul.f32 %v2470_v31, %v7467_v62  ;;  %v3175_v29 = vld [vmem:[#allocation10 + $0xf0] sm:$0xff]  ;;  %v2854_v25 = vmul.f32 %v2470_v31, %v7472_v40  ;;  %v2855_v62 = vmul.f32 %v2471_v56, %v6868_v37 }
 0x3bb   : > { %4844 = vst [vmem:[%s6874_s6 + $0x68] sm:$0xff] %v4580_v18   ;;  %v2979_v55 = vadd.f32 %v2947_v45, %v2851_v33  ;;  %v3176_v45 = vld [vmem:[#allocation10 + $0xf8] sm:$0xff] }
 0x3bc   : > { %v3364_v38 = vadd.f32 %v3332_v57, %v3204_v30  ;;  %v3266_v35 = vpop.permute.xlu1 %3265 }
 0x3bd   : > { %v4660_v53 = vpack.c.bf16 %v2979_v55, %v2978_v63  ;;  %v2593_v9 = vpop.permute.xlu0 %2592  ;;  %v3333_v34 = vmul.f32 %v3301_v6, %v3266_v35  ;;  %v3304_v63 = vld [vmem:[#allocation11 + $0xf8] sm:$0xff] }
 0x3be   : > { %v4740_v12 = vpack.c.bf16 %v3364_v38, %v3363_v1  ;;  %v2628_v26 = vmul.f32 %v2593_v9, %v2500_v4  ;;  %v7501_v9 = vld [vmem:[#allocation89_spill] sm:$0xff] }
 0x3bf   : > { %4860 = vst [vmem:[%s6874_s6 + $0xe8] sm:$0xff] %v4660_v53   ;;  %v3365_v39 = vadd.f32 %v3333_v34, %v3205_v21  ;;  %v3207_v53 = vmul.f32 %v3175_v29, %v7466_v13  ;;  %v3208_v19 = vmul.f32 %v3176_v45, %v7501_v9 }
 0x3c0   : > { %4875 = vst [vmem:[%s6893_s27 + $0x68] sm:$0xff] %v4740_v12   ;;  %v2595_v20 = vpop.permute.xlu1 %2594  ;;  %v2660_v59 = vadd.f32 %v2628_v26, %v2532_v32 }
 0x3c1   : > { %v2913_v17 = vpop.permute.xlu0 %2912  ;;  %v2629_v27 = vmul.f32 %v2595_v20, %v2501_v8 }
 0x3c2   : > { %v2948_v41 = vmul.f32 %v2913_v17, %v2500_v4 }
 0x3c3   : > { %v2661_v47 = vadd.f32 %v2629_v27, %v2533_v58 }
 0x3c4   : > { %v2915_v49 = vpop.permute.xlu1 %2914  ;;  %v2980_v10 = vadd.f32 %v2948_v41, %v2852_v44 }
 0x3c5   : > { %v4585_v36 = vpack.c.bf16 %v2661_v47, %v2660_v59  ;;  %v3268_v3 = vpop.permute.xlu0 %3267  ;;  %v2949_v11 = vmul.f32 %v2915_v49, %v2501_v8 }
 0x3c6   : > { %v3334_v16 = vmul.f32 %v3302_v46, %v3268_v3 }
 0x3c7   : > { %4845 = vst [vmem:[%s6874_s6 + $0x70] sm:$0xff] %v4585_v36   ;;  %v2981_v52 = vadd.f32 %v2949_v11, %v2853_v14 }
 0x3c8   : > { %v3366_v54 = vadd.f32 %v3334_v16, %v3206_v0  ;;  %v3270_v24 = vpop.permute.xlu1 %3269 }
 0x3c9   : > { %v4665_v42 = vpack.c.bf16 %v2981_v52, %v2980_v10  ;;  %v2597_v51 = vpop.permute.xlu0 %2596  ;;  %v3335_v55 = vmul.f32 %v3303_v48, %v3270_v24 }
 0x3ca   : > { %v4745_v61 = vpack.c.bf16 %v3366_v54, %v3365_v39  ;;  %v2630_v5 = vmul.f32 %v2597_v51, %v2502_v28 }
 0x3cb   : > { %4861 = vst [vmem:[%s6874_s6 + $0xf0] sm:$0xff] %v4665_v42   ;;  %v3367_v37 = vadd.f32 %v3335_v55, %v3207_v53 }
 0x3cc   : > { %4876 = vst [vmem:[%s6893_s27 + $0x70] sm:$0xff] %v4745_v61   ;;  %v2599_v60 = vpop.permute.xlu1 %2598  ;;  %v2662_v43 = vadd.f32 %v2630_v5, %v2534_v50 }
 0x3cd   : > { %v2917_v33 = vpop.permute.xlu0 %2916  ;;  %v2631_v18 = vmul.f32 %v2599_v60, %v2503_v7 }
 0x3ce   : > { %v2950_v30 = vmul.f32 %v2917_v33, %v2502_v28 }
 0x3cf   : > { %v2663_v57 = vadd.f32 %v2631_v18, %v2535_v2 }
 0x3d0   : > { %v2919_v1 = vpop.permute.xlu1 %2918  ;;  %v2982_v12 = vadd.f32 %v2950_v30, %v2854_v25 }
 0x3d1   : > { %v4590_v38 = vpack.c.bf16 %v2663_v57, %v2662_v43  ;;  %v3272_v35 = vpop.permute.xlu0 %3271  ;;  %v2951_v4 = vmul.f32 %v2919_v1, %v2503_v7 }
 0x3d2   : > { %v3336_v23 = vmul.f32 %v3304_v63, %v3272_v35 }
 0x3d3   : > { %4846 = vst [vmem:[%s6874_s6 + $0x78] sm:$0xff] %v4590_v38   ;;  %v2983_v8 = vadd.f32 %v2951_v4, %v2855_v62 }
 0x3d4   : > { %v3368_v40 = vadd.f32 %v3336_v23, %v3208_v19 }
 0x3d5   : > { %v4670_v26 = vpack.c.bf16 %v2983_v8, %v2982_v12 }
 0x3d6   : > { %v4750_v13 = vpack.c.bf16 %v3368_v40, %v3367_v37 }
 0x3d7   : > { %4862 = vst [vmem:[%s6874_s6 + $0xf8] sm:$0xff] %v4670_v26  }
 0x3d8   : > { %4877 = vst [vmem:[%s6893_s27 + $0x78] sm:$0xff] %v4750_v13  }
 0x3d9   : > { %5682 = shalt.err (!%p5679_p7)
}
 0x3da   : > { %s5683_s17 = scalar_lea.hbm %s7093_s26, 4096  ;;  %s5687_s27 = scalar_lea.hbm %s7503_s4, 16384 }
 0x3db   : > { %p5684_p0 = scmp.ne.s32.totalorder %s7093_s26, %s5683_s17  ;;  %p5688_p4 = scmp.lt.u32.totalorder %s7093_s26, %s7503_s4 }
 0x3dc   : > { %p5689_p10 = scmp.lt.u32.totalorder %s5687_s27, %s5683_s17  ;;  %p5691_p3 = scmp.lt.u32.totalorder %s5683_s17, %s7093_s26 }
 0x3dd   : > { %p5685_p1 = pnand %p5684_p0, %p7508_p9 }
 0x3de   : > { %p5690_p11 = por %p5689_p10, %p5688_p4 }
 0x3df   : > { %p5686_p13 = pneg %p5685_p1 }
 0x3e0   : > { %p5692_p2 = por %p5691_p3, %p5690_p11 }
 0x3e2   : > { %p5693_p6 = pnand %p5692_p2, %p5686_p13 }
 0x3e4   : > { %5696 = shalt.err (!%p5693_p6)
}
 0x3e5   : > { %s5905_s14 = smov 4   ;;  %s7509_s3 = smov 64  }
 0x3e6   : > { %5041 = dma.vmem_to_hbm [thread:$0]  (%p7508_p9), %s7095_s8, 4096, %s7093_s26, %s3690_s7, %s7509_s3, %s7509_s3, %s5905_s14  }
 0x3e7   : > { %s7510_s30 = sand.u32 1, %s6022_s19   ;;  %s5697_s17 = scalar_lea.vmem %s7102_s15, 2048 }
 0x3e8   : > { %s7142_s1 = scalar_lea.sflag [#allocation15], %s7510_s30  ;;  %p5698_p5 = scmp.ne.s32.totalorder %s7102_s15, %s5697_s17 }
 0x3e9   : > { %s5906_s28 = smov [#allocation14]  }
 0x3ea   : > { %p5699_p8 = pnand %p5698_p5, %p7508_p9  ;;  %s5701_s6 = sshll.u32 %s5906_s28, 4  ;;  %s5702_s6 = int_to_ptr.vmem [resolvable:$false] %s5701_s6 }
 0x3eb   : > { %s5703_s21 = scalar_lea.vmem %s5702_s6, 4096  ;;  %p5704_p7 = scmp.lt.s32.totalorder %s7102_s15, %s5702_s6 }
 0x3ec   : > { %p5700_p12 = pneg %p5699_p8  ;;  %p5705_p0 = scmp.lt.s32.totalorder %s5703_s21, %s5697_s17 }
 0x3ee   : > { %p5706_p1 = por %p5705_p0, %p5704_p7 }
 0x3f0   : > { %p5707_p13 = pnand %p5706_p1, %p5700_p12 }
 0x3f2   : > { %5710 = shalt.err (!%p5707_p13)
}
 0x3f3   : > { %s5711_s19 = scalar_lea.hbm %s7100_s2, 2048  ;;  %s5715_s7 = scalar_lea.hbm %s7505_s23, 8192 }
 0x3f4   : > { %p5712_p4 = scmp.ne.s32.totalorder %s7100_s2, %s5711_s19  ;;  %p5716_p3 = scmp.lt.u32.totalorder %s7100_s2, %s7505_s23 }
 0x3f5   : > { %p5717_p2 = scmp.lt.u32.totalorder %s5715_s7, %s5711_s19  ;;  %p5719_p5 = scmp.lt.u32.totalorder %s5711_s19, %s7100_s2 }
 0x3f6   : > { %p5713_p10 = pnand %p5712_p4, %p7508_p9 }
 0x3f7   : > { %p5718_p6 = por %p5717_p2, %p5716_p3 }
 0x3f8   : > { %p5714_p11 = pneg %p5713_p10 }
 0x3f9   : > { %p5720_p8 = por %p5719_p5, %p5718_p6 }
 0x3fb   : > { %p5721_p12 = pnand %p5720_p8, %p5714_p11 }
 0x3fd   : > { %5724 = shalt.err (!%p5721_p12)
}
 0x3fe   : > { %5042 = dma.vmem_to_hbm [thread:$0]  (%p7508_p9), %s7102_s15, 2048, %s7100_s2, %s7142_s1, %s7509_s3, %s7509_s3, %s5905_s14  }
 0x3ff   : > { %s5725_s0 = scalar_lea.vmem %s7110_s5, 2048  ;;  %s5907_s30 = smov [#allocation16]  }
 0x400   : > { %p5726_p7 = scmp.ne.s32.totalorder %s7110_s5, %s5725_s0  ;;  %s5729_s17 = sshll.u32 %s5907_s30, 4  ;;  %s5730_s17 = int_to_ptr.vmem [resolvable:$false] %s5729_s17 }
 0x401   : > { %s5731_s28 = scalar_lea.vmem %s5730_s17, 4096  ;;  %p5732_p13 = scmp.lt.s32.totalorder %s7110_s5, %s5730_s17 }
 0x402   : > { %p5727_p0 = pnand %p5726_p7, %p7508_p9  ;;  %p5733_p4 = scmp.lt.s32.totalorder %s5731_s28, %s5725_s0 }
 0x404   : > { %p5728_p1 = pneg %p5727_p0  ;;  %p5734_p10 = por %p5733_p4, %p5732_p13 }
 0x406   : > { %p5735_p11 = pnand %p5734_p10, %p5728_p1 }
 0x408   : > { %5738 = shalt.err (!%p5735_p11)
}
 0x409   : > { %s5739_s15 = scalar_lea.hbm %s7108_s24, 2048  ;;  %s5743_s21 = scalar_lea.hbm %s7507_s20, 8192 }
 0x40a   : > { %p5740_p3 = scmp.ne.s32.totalorder %s7108_s24, %s5739_s15  ;;  %p5744_p5 = scmp.lt.u32.totalorder %s7108_s24, %s7507_s20 }
 0x40b   : > { %p5745_p8 = scmp.lt.u32.totalorder %s5743_s21, %s5739_s15  ;;  %p5747_p7 = scmp.lt.u32.totalorder %s5739_s15, %s7108_s24 }
 0x40c   : > { %p5741_p2 = pnand %p5740_p3, %p7508_p9 }
 0x40d   : > { %p5746_p12 = por %p5745_p8, %p5744_p5 }
 0x40e   : > { %p5742_p6 = pneg %p5741_p2 }
 0x40f   : > { %p5748_p0 = por %p5747_p7, %p5746_p12 }
 0x411   : > { %p5749_p1 = pnand %p5748_p0, %p5742_p6 }
 0x413   : > { %5752 = shalt.err (!%p5749_p1)
}
 0x414   : > { %5043 = dma.vmem_to_hbm [thread:$0]  (%p7508_p9), %s7110_s5, 2048, %s7108_s24, %s7142_s1, %s7509_s3, %s7509_s3, %s5905_s14  }
 0x415 PF: > { %s7511_s8 = sld [smem:[#allocation24_spill]]  ;;  %s7512_s7 = sld [smem:[#allocation31_spill]] }
 0x416   : > { %p5086_p13 = scmp.ge.s32.totalorder %s5891_s18, 2 }
 0x41b   : > { %s3772_s27 = sand.u32 1, %s7511_s8   ;;  %p7513_p4 = scmp.ne.s32.totalorder %s7512_s7, 0 }
 0x41c   : > { %s3773_s22 = scalar_lea.sflag [#allocation4], %s3772_s27 }
 0x41d   : > { %p5068_p10 = pnand %p5086_p13, %p7513_p4 }
 0x41f   : > { %5830 = dma.done.wait (!%p5068_p10), %s3773_s22, 4096  }
 0x420   : > { %5832 = vsyncadd (!%p5068_p10), %s3773_s22, 4294963200  ;;  %s7514_s25 = sadd.s32 4294967294, %s5891_s18  }
 0x421   : > { %s3781_s0 = sand.u32 1, %s7514_s25  }
 0x422   : > { %s3782_s30 = scalar_lea.sflag [#allocation15], %s3781_s0 }
 0x423   : > { %5834 = dma.done.wait (!%p5068_p10), %s3782_s30, 4096  }
 0x424   : > { %5836 = vsyncadd (!%p5068_p10), %s3782_s30, 4294963200  ;;  %s33_s18 = sadd.s32 1, %s5891_s18   ;;  %s7516_s27 = sld [smem:[#allocation25_spill]] }
 0x425   : > { %p7201_p9 = scmp.ge.s32.totalorder %s33_s18, 6   ;;  %s7517_s24 = sld [smem:[#allocation35_spill]] }
 0x426   : > { %s7518_s14 = sld [smem:[#allocation36_spill]]  ;;  %s7519_s15 = sld [smem:[#allocation28_spill]] }
 0x427   : > { %s7520_s3 = sld [smem:[#allocation33_spill]]  ;;  %s7521_s17 = sld [smem:[#allocation34_spill]] }
 0x428   : > { %s7522_s28 = smov %s5847_s29  ;;  %s7523_s29 = smov %s6255_s11 }
 0x429   : > { %s7524_s30 = smov %s5855_s9  ;;  %s7525_s9 = smov %s5859_s10 }
 0x42a   : > { %s7527_s11 = smov %s5867_s12  ;;  %s7528_s12 = smov %s5871_s13 }
 0x42b   : > { %s7526_s10 = smov %s7517_s24  ;;  %32 = sbr.rel (!%p7201_p9) target bundleno = 26 (0x1a), region = 155 }
 0x42c   : > { %s7529_s13 = smov %s7518_s14  ;;  %s7530_s14 = smov %s5883_s16 }
 0x42d   : > { %s7531_s16 = smov %s7520_s3 }
 0x432   :  { %3796 = vsyncpa [#allocation3], 1 }
 0x433   :  { %3798 = vsyncpa [#allocation3 + $0x1], 1 }
 0x434   :  { %3799 = vsyncpa [#allocation6], 1 }
 0x435   :  { %3801 = vsyncpa [#allocation6 + $0x1], 1 }
 0x436   :  { %3802 = vsyncpa [#allocation9], 1 }
 0x437   :  { %3803 = vsyncpa [#allocation12], 1 }
 0x438   :  { %3804 = vsyncpa [#allocation4], 1 }
 0x439   :  { %3806 = vsyncpa [#allocation4 + $0x1], 1 }
 0x43a   :  { %3807 = vsyncpa [#allocation15], 1 }
 0x43b   :  { %3809 = vsyncpa [#allocation15 + $0x1], 1 }

</bundles_post_ra>
